<compile_context>
chip_gen: v5e
topology: v5e:2x2
jax: 0.10.0
libtpu: 0.0.40
codegen_flags: <defaults>
</compile_context>

<pallas_src>
import functools
import math

import jax
import jax.numpy as jnp
from jax import lax
from jax.experimental import pallas as pl


LN_EPS = 1e-12          # HF ViT layer_norm_eps
NEG_INF = -1e30         # logit padding so padded lanes vanish under softmax
LANES = 128


# ----------------------------- fused Pallas kernel --------------------------

def _fused_forward_kernel(flat_ref, keep_ref, addend_ref, vec_ref, proj_w_ref,
                          wqkv0_ref, wo0_ref, w10_ref, w20_ref,
                          wqkv1_ref, wo1_ref, w11_ref, w21_ref,
                          head_w_ref, out_ref,
                          *, B, S, H, n_heads, n_layers, eps):
    f32 = jnp.float32
    dh = H // n_heads
    scale = f32(1.0 / math.sqrt(dh))
    inv_sqrt2 = f32(1.0 / math.sqrt(2.0))

    def vrow(r, n):                         # (1, n) row of the packed bias/gain slab
        return vec_ref[r:r + 1, :n]

    def layernorm(x, g, b):
        mu = jnp.mean(x, axis=-1, keepdims=True)
        var = jnp.mean(jnp.square(x - mu), axis=-1, keepdims=True)
        return (x - mu) * lax.rsqrt(var + f32(eps)) * g + b

    def softmax_rows(s):                    # reciprocal on the (otherwise idle) EUP
        m = jnp.max(s, axis=-1, keepdims=True)
        e = jnp.exp(s - m)
        return e * pl.reciprocal(jnp.sum(e, axis=-1, keepdims=True), approx=True)

    layer_refs = ((wqkv0_ref, wo0_ref, w10_ref, w20_ref),
                  (wqkv1_ref, wo1_ref, w11_ref, w21_ref))
    proj_w = proj_w_ref[...]

    for b in range(B):                      # B*S = 18 rows, fully VMEM-resident
        # fused patch embedding (Conv2d k=stride=P == matmul) + mask-token /
        # scale-embed / cls / positional assembly (keep & addend precomputed,
        # proj_b folded into addend).
        x = (jnp.dot(flat_ref[b], proj_w, preferred_element_type=f32)
             * keep_ref[b] + addend_ref[b])                          # (S, H)

        for l in range(n_layers):
            wqkv_ref, wo_ref, w1_ref, w2_ref = layer_refs[l]
            base = 8 * l

            # ---- attention block (pre-LN), fused QKV matmul ----
            h1 = layernorm(x, vrow(base + 0, H), vrow(base + 1, H))
            qkv = (jnp.dot(h1, wqkv_ref[...], preferred_element_type=f32)
                   + vrow(base + 2, 3 * H))                          # (S, 3H)
            attn_out = None
            for h in range(n_heads):                                 # unrolled heads
                qh = qkv[:, h * dh:(h + 1) * dh]
                kh = qkv[:, H + h * dh:H + (h + 1) * dh]
                vh = qkv[:, 2 * H + h * dh:2 * H + (h + 1) * dh]
                s = lax.dot_general(qh, kh, (((1,), (1,)), ((), ())),
                                    preferred_element_type=f32) * scale
                probs = softmax_rows(s)                              # (S, S)
                ctx = jnp.dot(probs, vh, preferred_element_type=f32)  # (S, dh)
                # concat_h(ctx_h) @ Wo  ==  sum_h ctx_h @ Wo[h*dh:(h+1)*dh]
                contrib = jnp.dot(ctx, wo_ref[h * dh:(h + 1) * dh, :],
                                  preferred_element_type=f32)
                attn_out = contrib if attn_out is None else attn_out + contrib
            x = x + attn_out + vrow(base + 3, H)                     # residual

            # ---- MLP block (pre-LN), exact-erf GELU ----
            h2 = layernorm(x, vrow(base + 4, H), vrow(base + 5, H))
            inter = (jnp.dot(h2, w1_ref[...], preferred_element_type=f32)
                     + vrow(base + 6, w1_ref.shape[1]))
            inter = 0.5 * inter * (1.0 + lax.erf(inter * inv_sqrt2))
            x = (x + jnp.dot(inter, w2_ref[...], preferred_element_type=f32)
                 + vrow(base + 7, H))                                # residual

        # ---- final LayerNorm + MlpHead (dropout = eval identity, softmax) ----
        fbase = 8 * n_layers
        xf = layernorm(x, vrow(fbase + 0, H), vrow(fbase + 1, H))
        cls = xf[0:1, :]                                             # (1, H)
        pmean = (jnp.sum(xf, axis=0, keepdims=True) - cls) * f32(1.0 / (S - 1))
        # concat([cls, mean]) @ W == cls @ W[:H] + mean @ W[H:]; W is zero-padded
        # to 128 output lanes (lane-dense store) and padded bias is -1e30.
        logits = (jnp.dot(cls, head_w_ref[:H, :], preferred_element_type=f32)
                  + jnp.dot(pmean, head_w_ref[H:, :], preferred_element_type=f32)
                  + vrow(fbase + 2, out_ref.shape[1]))
        out_ref[b:b + 1, :] = softmax_rows(logits)


# ----------------------------- parameters -----------------------------------

def init_params(key, *, in_ch=3, patch=4, hidden=32, n_layers=2, n_heads=4,
                inter=128, n_classes=10, scales=2):
    keys = iter(jax.random.split(key, 64))

    def nrm(shape, std=0.02):
        return (std * jax.random.normal(next(keys), shape)).astype(jnp.float32)

    p = {
        "proj_w": nrm((in_ch * patch * patch, hidden)),   # Conv2d(k=stride=P) as matmul
        "proj_b": jnp.zeros((hidden,), jnp.float32),
        "mask_token": jnp.zeros((1, 1, hidden), jnp.float32),
        "se": nrm((1, scales, hidden)),
        "cls_token": nrm((1, 1, hidden)),
        "ln_f_g": jnp.ones((hidden,), jnp.float32),
        "ln_f_b": jnp.zeros((hidden,), jnp.float32),
        "head_w": nrm((hidden * 2, n_classes)),
        "head_b": jnp.zeros((n_classes,), jnp.float32),
        "layers": [],
    }
    for _ in range(n_layers):
        p["layers"].append({
            "ln1_g": jnp.ones((hidden,), jnp.float32),
            "ln1_b": jnp.zeros((hidden,), jnp.float32),
            "wq": nrm((hidden, hidden)), "bq": jnp.zeros((hidden,), jnp.float32),
            "wk": nrm((hidden, hidden)), "bk": jnp.zeros((hidden,), jnp.float32),
            "wv": nrm((hidden, hidden)), "bv": jnp.zeros((hidden,), jnp.float32),
            "wo": nrm((hidden, hidden)), "bo": jnp.zeros((hidden,), jnp.float32),
            "ln2_g": jnp.ones((hidden,), jnp.float32),
            "ln2_b": jnp.zeros((hidden,), jnp.float32),
            "w1": nrm((hidden, inter)), "b1": jnp.zeros((inter,), jnp.float32),
            "w2": nrm((inter, hidden)), "b2": jnp.zeros((hidden,), jnp.float32),
        })
    return p


# ----------------------------- forward pass ----------------------------------

def model_forward(p, patches, pos_embeds, masks, *, n_heads=4, n_classes=10):
    B, S = patches.shape[0], patches.shape[1]
    H = p["proj_w"].shape[1]
    n_layers = len(p["layers"])
    assert n_layers == 2, "fused kernel is specialized to 2 encoder layers"

    # ---- tiny XLA-side token assembly (mask token / scale-embed / cls / pos) ----
    pt = patches[:, 1:]                                   # drop slot 0 (as in PyTorch)
    flat = pt.reshape(B, S - 1, -1).astype(jnp.float32)   # conv-weight flatten order
    flat = jnp.concatenate(
        [jnp.zeros((B, 1, flat.shape[-1]), jnp.float32), flat], axis=1)  # (B,S,C*P*P)

    m = masks[:, 1:]
    pad = (m == 9).astype(jnp.float32)[:, :, None]        # padding -> mask token
    m_clean = jnp.where(m == 9, 0, m)
    scale_embed = jnp.take(p["se"][0], m_clean, axis=0)   # (B, L, H)

    keep_patch = 1.0 - pad
    keep = jnp.concatenate([jnp.zeros((B, 1, 1), jnp.float32), keep_patch], axis=1)
    keep = jnp.broadcast_to(keep, (B, S, H)).astype(jnp.float32)

    addend_patch = (p["proj_b"][None, None, :] * keep_patch
                    + p["mask_token"] * pad
                    + scale_embed
                    + pos_embeds[:, 1:, :])
    addend_cls = jnp.broadcast_to(p["cls_token"] + pos_embeds[:, :1, :], (B, 1, H))
    addend = jnp.concatenate([addend_cls, addend_patch], axis=1)     # (B, S, H)

    # ---- pack every small gain/bias vector into one (rows, 128) VMEM slab ----
    def row(v):
        return jnp.pad(v.astype(jnp.float32), (0, LANES - v.shape[0]))

    rows, mats = [], []
    for layer in p["layers"]:
        wqkv = jnp.concatenate([layer["wq"], layer["wk"], layer["wv"]], axis=1)
        bqkv = jnp.concatenate([layer["bq"], layer["bk"], layer["bv"]])
        mats += [wqkv, layer["wo"], layer["w1"], layer["w2"]]
        rows += [row(layer["ln1_g"]), row(layer["ln1_b"]), row(bqkv),
                 row(layer["bo"]), row(layer["ln2_g"]), row(layer["ln2_b"]),
                 row(layer["b1"]), row(layer["b2"])]
    head_b_pad = jnp.concatenate(
        [p["head_b"].astype(jnp.float32),
         jnp.full((LANES - n_classes,), NEG_INF, jnp.float32)])
    rows += [row(p["ln_f_g"]), row(p["ln_f_b"]), head_b_pad]
    vec = jnp.stack(rows)                                            # (8*L+3, 128)

    head_w_pad = jnp.pad(p["head_w"].astype(jnp.float32),
                         ((0, 0), (0, LANES - n_classes)))           # (2H, 128)

    kernel = functools.partial(_fused_forward_kernel, B=B, S=S, H=H,
                               n_heads=n_heads, n_layers=n_layers, eps=LN_EPS)
    out = pl.pallas_call(
        kernel,
        out_shape=jax.ShapeDtypeStruct((B, LANES), jnp.float32),     # lane-dense store
    )(flat, keep, addend, vec, p["proj_w"], *mats, head_w_pad)

    return out[:, :n_classes]                                        # (B, n_classes)
    # TODO(synk): HF pretrained-weight loading / Swin / mixout / aadb multi-class
    # branches are out of scope for this synthetic kernel.


# ----------------------------- main ------------------------------------------

if __name__ == "__main__":
    key = jax.random.PRNGKey(0)
    k_patch, k_param, k_pos = jax.random.split(key, 3)

    B, Lp1, C, P, HID, NCLS = 2, 9, 3, 4, 32, 10     # 8 usable patches + dropped slot 0
    patches = jax.random.normal(k_patch, (B, Lp1, C, P, P), dtype=jnp.float32)
    pos_embeds = 0.02 * jax.random.normal(k_pos, (1, Lp1, HID), dtype=jnp.float32)
    masks = jnp.array([[0, 0, 1, 0, 1, 0, 1, 0, 9],
                       [0, 1, 1, 0, 0, 9, 9, 0, 1]], dtype=jnp.int32)

    params = init_params(k_param, in_ch=C, patch=P, hidden=HID,
                         n_layers=2, n_heads=4, inter=128, n_classes=NCLS, scales=2)

    fwd = jax.jit(functools.partial(model_forward, n_heads=4, n_classes=NCLS))
    preds = jax.block_until_ready(fwd(params, patches, pos_embeds, masks))

    assert preds.shape == (B, NCLS)
    assert bool(jnp.all(jnp.isfinite(preds)))
    # softmax rows must sum to ~1 (approx EUP reciprocal => slightly looser tol)
    assert bool(jnp.all(jnp.abs(jnp.sum(preds, axis=-1) - 1.0) < 2e-3))
    print("KERNEL_OK")
</pallas_src>

<mosaic_0001>
module attributes {stable_mosaic.version = 11 : i64} {
  func.func @_fused_forward_kernel(%arg0: memref<2x9x48xf32, #tpu.memory_space<vmem>>, %arg1: memref<2x9x32xf32, #tpu.memory_space<vmem>>, %arg2: memref<2x9x32xf32, #tpu.memory_space<vmem>>, %arg3: memref<19x128xf32, #tpu.memory_space<vmem>>, %arg4: memref<48x32xf32, #tpu.memory_space<vmem>>, %arg5: memref<32x96xf32, #tpu.memory_space<vmem>>, %arg6: memref<32x32xf32, #tpu.memory_space<vmem>>, %arg7: memref<32x128xf32, #tpu.memory_space<vmem>>, %arg8: memref<128x32xf32, #tpu.memory_space<vmem>>, %arg9: memref<32x96xf32, #tpu.memory_space<vmem>>, %arg10: memref<32x32xf32, #tpu.memory_space<vmem>>, %arg11: memref<32x128xf32, #tpu.memory_space<vmem>>, %arg12: memref<128x32xf32, #tpu.memory_space<vmem>>, %arg13: memref<64x128xf32, #tpu.memory_space<vmem>>, %arg14: memref<2x128xf32, #tpu.memory_space<vmem>>) attributes {dimension_semantics = [], scalar_prefetch = 0 : i64, scratch_operands = 0 : i64, tpu.core_type = #tpu.core_type<tc>} {
    %c0 = arith.constant 0 : index
    %c0_0 = arith.constant 0 : index
    %0 = vector.load %arg4[%c0, %c0_0] : memref<48x32xf32, #tpu.memory_space<vmem>>, vector<48x32xf32>
    %c0_1 = arith.constant 0 : index
    %c0_2 = arith.constant 0 : index
    %c0_3 = arith.constant 0 : index
    %1 = vector.load %arg0[%c0_1, %c0_2, %c0_3] : memref<2x9x48xf32, #tpu.memory_space<vmem>>, vector<1x9x48xf32>
    %2 = vector.shape_cast %1 : vector<1x9x48xf32> to vector<9x48xf32>
    %cst = arith.constant dense<0.000000e+00> : vector<9x32xf32>
    %3 = tpu.matmul %2, %0, %cst {dimension_numbers = #tpu.dot_dimension_numbers<[1], [0], [0], [1], [0, 0, 1, 1], [], []>} : vector<9x48xf32>, vector<48x32xf32>, vector<9x32xf32> -> vector<9x32xf32>
    %c0_4 = arith.constant 0 : index
    %c0_5 = arith.constant 0 : index
    %c0_6 = arith.constant 0 : index
    %4 = vector.load %arg1[%c0_4, %c0_5, %c0_6] : memref<2x9x32xf32, #tpu.memory_space<vmem>>, vector<1x9x32xf32>
    %5 = vector.shape_cast %4 : vector<1x9x32xf32> to vector<9x32xf32>
    %6 = arith.mulf %3, %5 : vector<9x32xf32>
    %c0_7 = arith.constant 0 : index
    %c0_8 = arith.constant 0 : index
    %c0_9 = arith.constant 0 : index
    %7 = vector.load %arg2[%c0_7, %c0_8, %c0_9] : memref<2x9x32xf32, #tpu.memory_space<vmem>>, vector<1x9x32xf32>
    %8 = vector.shape_cast %7 : vector<1x9x32xf32> to vector<9x32xf32>
    %9 = arith.addf %6, %8 : vector<9x32xf32>
    %c0_10 = arith.constant 0 : index
    %c0_11 = arith.constant 0 : index
    %10 = vector.load %arg3[%c0_10, %c0_11] : memref<19x128xf32, #tpu.memory_space<vmem>>, vector<1x32xf32>
    %c1 = arith.constant 1 : index
    %c0_12 = arith.constant 0 : index
    %11 = vector.load %arg3[%c1, %c0_12] : memref<19x128xf32, #tpu.memory_space<vmem>>, vector<1x32xf32>
    %cst_13 = arith.constant dense<0.000000e+00> : vector<9xf32>
    %12 = vector.multi_reduction <add>, %9, %cst_13 [1] : vector<9x32xf32> to vector<9xf32>
    %13 = vector.shape_cast %12 : vector<9xf32> to vector<9x1xf32>
    %cst_14 = arith.constant 3.200000e+01 : f32
    %14 = vector.broadcast %cst_14 : f32 to vector<9x1xf32>
    %15 = arith.divf %13, %14 : vector<9x1xf32>
    %16 = vector.broadcast %15 : vector<9x1xf32> to vector<9x32xf32>
    %17 = arith.subf %9, %16 : vector<9x32xf32>
    %18 = arith.mulf %17, %17 : vector<9x32xf32>
    %cst_15 = arith.constant dense<0.000000e+00> : vector<9xf32>
    %19 = vector.multi_reduction <add>, %18, %cst_15 [1] : vector<9x32xf32> to vector<9xf32>
    %20 = vector.shape_cast %19 : vector<9xf32> to vector<9x1xf32>
    %cst_16 = arith.constant 3.200000e+01 : f32
    %21 = vector.broadcast %cst_16 : f32 to vector<9x1xf32>
    %22 = arith.divf %20, %21 : vector<9x1xf32>
    %23 = vector.broadcast %15 : vector<9x1xf32> to vector<9x32xf32>
    %24 = arith.subf %9, %23 : vector<9x32xf32>
    %cst_17 = arith.constant 9.99999996E-13 : f32
    %25 = vector.broadcast %cst_17 : f32 to vector<9x1xf32>
    %26 = arith.addf %22, %25 : vector<9x1xf32>
    %27 = math.rsqrt %26 : vector<9x1xf32>
    %28 = vector.broadcast %27 : vector<9x1xf32> to vector<9x32xf32>
    %29 = arith.mulf %24, %28 : vector<9x32xf32>
    %30 = vector.broadcast %10 : vector<1x32xf32> to vector<9x32xf32>
    %31 = arith.mulf %29, %30 : vector<9x32xf32>
    %32 = vector.broadcast %11 : vector<1x32xf32> to vector<9x32xf32>
    %33 = arith.addf %31, %32 : vector<9x32xf32>
    %c0_18 = arith.constant 0 : index
    %c0_19 = arith.constant 0 : index
    %34 = vector.load %arg5[%c0_18, %c0_19] : memref<32x96xf32, #tpu.memory_space<vmem>>, vector<32x96xf32>
    %cst_20 = arith.constant dense<0.000000e+00> : vector<9x96xf32>
    %35 = tpu.matmul %33, %34, %cst_20 {dimension_numbers = #tpu.dot_dimension_numbers<[1], [0], [0], [1], [0, 0, 1, 1], [], []>} : vector<9x32xf32>, vector<32x96xf32>, vector<9x96xf32> -> vector<9x96xf32>
    %c2 = arith.constant 2 : index
    %c0_21 = arith.constant 0 : index
    %36 = vector.load %arg3[%c2, %c0_21] : memref<19x128xf32, #tpu.memory_space<vmem>>, vector<1x96xf32>
    %37 = vector.broadcast %36 : vector<1x96xf32> to vector<9x96xf32>
    %38 = arith.addf %35, %37 : vector<9x96xf32>
    %39 = vector.extract_strided_slice %38 {offsets = [0, 0], sizes = [9, 8], strides = [1, 1]} : vector<9x96xf32> to vector<9x8xf32>
    %40 = vector.extract_strided_slice %38 {offsets = [0, 32], sizes = [9, 8], strides = [1, 1]} : vector<9x96xf32> to vector<9x8xf32>
    %41 = vector.extract_strided_slice %38 {offsets = [0, 64], sizes = [9, 8], strides = [1, 1]} : vector<9x96xf32> to vector<9x8xf32>
    %cst_22 = arith.constant dense<0.000000e+00> : vector<9x9xf32>
    %42 = tpu.matmul %39, %40, %cst_22 {dimension_numbers = #tpu.dot_dimension_numbers<[1], [1], [0], [0], [0, 0, 1, 0], [], []>} : vector<9x8xf32>, vector<9x8xf32>, vector<9x9xf32> -> vector<9x9xf32>
    %cst_23 = arith.constant 0.353553385 : f32
    %43 = vector.broadcast %cst_23 : f32 to vector<9x9xf32>
    %44 = arith.mulf %42, %43 : vector<9x9xf32>
    %cst_24 = arith.constant dense<0xFF800000> : vector<9xf32>
    %45 = vector.multi_reduction <maximumf>, %44, %cst_24 [1] : vector<9x9xf32> to vector<9xf32>
    %46 = vector.shape_cast %45 : vector<9xf32> to vector<9x1xf32>
    %47 = vector.broadcast %46 : vector<9x1xf32> to vector<9x9xf32>
    %48 = arith.subf %44, %47 : vector<9x9xf32>
    %49 = math.exp %48 : vector<9x9xf32>
    %cst_25 = arith.constant dense<0.000000e+00> : vector<9xf32>
    %50 = vector.multi_reduction <add>, %49, %cst_25 [1] : vector<9x9xf32> to vector<9xf32>
    %51 = vector.shape_cast %50 : vector<9xf32> to vector<9x1xf32>
    %52 = tpu.reciprocal %51 {approx = true} : vector<9x1xf32> -> vector<9x1xf32>
    %53 = vector.broadcast %52 : vector<9x1xf32> to vector<9x9xf32>
    %54 = arith.mulf %49, %53 : vector<9x9xf32>
    %cst_26 = arith.constant dense<0.000000e+00> : vector<9x8xf32>
    %55 = tpu.matmul %54, %41, %cst_26 {dimension_numbers = #tpu.dot_dimension_numbers<[1], [0], [0], [1], [0, 0, 1, 1], [], []>} : vector<9x9xf32>, vector<9x8xf32>, vector<9x8xf32> -> vector<9x8xf32>
    %c0_27 = arith.constant 0 : index
    %c0_28 = arith.constant 0 : index
    %56 = vector.load %arg6[%c0_27, %c0_28] : memref<32x32xf32, #tpu.memory_space<vmem>>, vector<8x32xf32>
    %cst_29 = arith.constant dense<0.000000e+00> : vector<9x32xf32>
    %57 = tpu.matmul %55, %56, %cst_29 {dimension_numbers = #tpu.dot_dimension_numbers<[1], [0], [0], [1], [0, 0, 1, 1], [], []>} : vector<9x8xf32>, vector<8x32xf32>, vector<9x32xf32> -> vector<9x32xf32>
    %58 = vector.extract_strided_slice %38 {offsets = [0, 8], sizes = [9, 8], strides = [1, 1]} : vector<9x96xf32> to vector<9x8xf32>
    %59 = vector.extract_strided_slice %38 {offsets = [0, 40], sizes = [9, 8], strides = [1, 1]} : vector<9x96xf32> to vector<9x8xf32>
    %60 = vector.extract_strided_slice %38 {offsets = [0, 72], sizes = [9, 8], strides = [1, 1]} : vector<9x96xf32> to vector<9x8xf32>
    %cst_30 = arith.constant dense<0.000000e+00> : vector<9x9xf32>
    %61 = tpu.matmul %58, %59, %cst_30 {dimension_numbers = #tpu.dot_dimension_numbers<[1], [1], [0], [0], [0, 0, 1, 0], [], []>} : vector<9x8xf32>, vector<9x8xf32>, vector<9x9xf32> -> vector<9x9xf32>
    %cst_31 = arith.constant 0.353553385 : f32
    %62 = vector.broadcast %cst_31 : f32 to vector<9x9xf32>
    %63 = arith.mulf %61, %62 : vector<9x9xf32>
    %cst_32 = arith.constant dense<0xFF800000> : vector<9xf32>
    %64 = vector.multi_reduction <maximumf>, %63, %cst_32 [1] : vector<9x9xf32> to vector<9xf32>
    %65 = vector.shape_cast %64 : vector<9xf32> to vector<9x1xf32>
    %66 = vector.broadcast %65 : vector<9x1xf32> to vector<9x9xf32>
    %67 = arith.subf %63, %66 : vector<9x9xf32>
    %68 = math.exp %67 : vector<9x9xf32>
    %cst_33 = arith.constant dense<0.000000e+00> : vector<9xf32>
    %69 = vector.multi_reduction <add>, %68, %cst_33 [1] : vector<9x9xf32> to vector<9xf32>
    %70 = vector.shape_cast %69 : vector<9xf32> to vector<9x1xf32>
    %71 = tpu.reciprocal %70 {approx = true} : vector<9x1xf32> -> vector<9x1xf32>
    %72 = vector.broadcast %71 : vector<9x1xf32> to vector<9x9xf32>
    %73 = arith.mulf %68, %72 : vector<9x9xf32>
    %cst_34 = arith.constant dense<0.000000e+00> : vector<9x8xf32>
    %74 = tpu.matmul %73, %60, %cst_34 {dimension_numbers = #tpu.dot_dimension_numbers<[1], [0], [0], [1], [0, 0, 1, 1], [], []>} : vector<9x9xf32>, vector<9x8xf32>, vector<9x8xf32> -> vector<9x8xf32>
    %c8 = arith.constant 8 : index
    %c0_35 = arith.constant 0 : index
    %75 = vector.load %arg6[%c8, %c0_35] : memref<32x32xf32, #tpu.memory_space<vmem>>, vector<8x32xf32>
    %cst_36 = arith.constant dense<0.000000e+00> : vector<9x32xf32>
    %76 = tpu.matmul %74, %75, %cst_36 {dimension_numbers = #tpu.dot_dimension_numbers<[1], [0], [0], [1], [0, 0, 1, 1], [], []>} : vector<9x8xf32>, vector<8x32xf32>, vector<9x32xf32> -> vector<9x32xf32>
    %77 = arith.addf %57, %76 : vector<9x32xf32>
    %78 = vector.extract_strided_slice %38 {offsets = [0, 16], sizes = [9, 8], strides = [1, 1]} : vector<9x96xf32> to vector<9x8xf32>
    %79 = vector.extract_strided_slice %38 {offsets = [0, 48], sizes = [9, 8], strides = [1, 1]} : vector<9x96xf32> to vector<9x8xf32>
    %80 = vector.extract_strided_slice %38 {offsets = [0, 80], sizes = [9, 8], strides = [1, 1]} : vector<9x96xf32> to vector<9x8xf32>
    %cst_37 = arith.constant dense<0.000000e+00> : vector<9x9xf32>
    %81 = tpu.matmul %78, %79, %cst_37 {dimension_numbers = #tpu.dot_dimension_numbers<[1], [1], [0], [0], [0, 0, 1, 0], [], []>} : vector<9x8xf32>, vector<9x8xf32>, vector<9x9xf32> -> vector<9x9xf32>
    %cst_38 = arith.constant 0.353553385 : f32
    %82 = vector.broadcast %cst_38 : f32 to vector<9x9xf32>
    %83 = arith.mulf %81, %82 : vector<9x9xf32>
    %cst_39 = arith.constant dense<0xFF800000> : vector<9xf32>
    %84 = vector.multi_reduction <maximumf>, %83, %cst_39 [1] : vector<9x9xf32> to vector<9xf32>
    %85 = vector.shape_cast %84 : vector<9xf32> to vector<9x1xf32>
    %86 = vector.broadcast %85 : vector<9x1xf32> to vector<9x9xf32>
    %87 = arith.subf %83, %86 : vector<9x9xf32>
    %88 = math.exp %87 : vector<9x9xf32>
    %cst_40 = arith.constant dense<0.000000e+00> : vector<9xf32>
    %89 = vector.multi_reduction <add>, %88, %cst_40 [1] : vector<9x9xf32> to vector<9xf32>
    %90 = vector.shape_cast %89 : vector<9xf32> to vector<9x1xf32>
    %91 = tpu.reciprocal %90 {approx = true} : vector<9x1xf32> -> vector<9x1xf32>
    %92 = vector.broadcast %91 : vector<9x1xf32> to vector<9x9xf32>
    %93 = arith.mulf %88, %92 : vector<9x9xf32>
    %cst_41 = arith.constant dense<0.000000e+00> : vector<9x8xf32>
    %94 = tpu.matmul %93, %80, %cst_41 {dimension_numbers = #tpu.dot_dimension_numbers<[1], [0], [0], [1], [0, 0, 1, 1], [], []>} : vector<9x9xf32>, vector<9x8xf32>, vector<9x8xf32> -> vector<9x8xf32>
    %c16 = arith.constant 16 : index
    %c0_42 = arith.constant 0 : index
    %95 = vector.load %arg6[%c16, %c0_42] : memref<32x32xf32, #tpu.memory_space<vmem>>, vector<8x32xf32>
    %cst_43 = arith.constant dense<0.000000e+00> : vector<9x32xf32>
    %96 = tpu.matmul %94, %95, %cst_43 {dimension_numbers = #tpu.dot_dimension_numbers<[1], [0], [0], [1], [0, 0, 1, 1], [], []>} : vector<9x8xf32>, vector<8x32xf32>, vector<9x32xf32> -> vector<9x32xf32>
    %97 = arith.addf %77, %96 : vector<9x32xf32>
    %98 = vector.extract_strided_slice %38 {offsets = [0, 24], sizes = [9, 8], strides = [1, 1]} : vector<9x96xf32> to vector<9x8xf32>
    %99 = vector.extract_strided_slice %38 {offsets = [0, 56], sizes = [9, 8], strides = [1, 1]} : vector<9x96xf32> to vector<9x8xf32>
    %100 = vector.extract_strided_slice %38 {offsets = [0, 88], sizes = [9, 8], strides = [1, 1]} : vector<9x96xf32> to vector<9x8xf32>
    %cst_44 = arith.constant dense<0.000000e+00> : vector<9x9xf32>
    %101 = tpu.matmul %98, %99, %cst_44 {dimension_numbers = #tpu.dot_dimension_numbers<[1], [1], [0], [0], [0, 0, 1, 0], [], []>} : vector<9x8xf32>, vector<9x8xf32>, vector<9x9xf32> -> vector<9x9xf32>
    %cst_45 = arith.constant 0.353553385 : f32
    %102 = vector.broadcast %cst_45 : f32 to vector<9x9xf32>
    %103 = arith.mulf %101, %102 : vector<9x9xf32>
    %cst_46 = arith.constant dense<0xFF800000> : vector<9xf32>
    %104 = vector.multi_reduction <maximumf>, %103, %cst_46 [1] : vector<9x9xf32> to vector<9xf32>
    %105 = vector.shape_cast %104 : vector<9xf32> to vector<9x1xf32>
    %106 = vector.broadcast %105 : vector<9x1xf32> to vector<9x9xf32>
    %107 = arith.subf %103, %106 : vector<9x9xf32>
    %108 = math.exp %107 : vector<9x9xf32>
    %cst_47 = arith.constant dense<0.000000e+00> : vector<9xf32>
    %109 = vector.multi_reduction <add>, %108, %cst_47 [1] : vector<9x9xf32> to vector<9xf32>
    %110 = vector.shape_cast %109 : vector<9xf32> to vector<9x1xf32>
    %111 = tpu.reciprocal %110 {approx = true} : vector<9x1xf32> -> vector<9x1xf32>
    %112 = vector.broadcast %111 : vector<9x1xf32> to vector<9x9xf32>
    %113 = arith.mulf %108, %112 : vector<9x9xf32>
    %cst_48 = arith.constant dense<0.000000e+00> : vector<9x8xf32>
    %114 = tpu.matmul %113, %100, %cst_48 {dimension_numbers = #tpu.dot_dimension_numbers<[1], [0], [0], [1], [0, 0, 1, 1], [], []>} : vector<9x9xf32>, vector<9x8xf32>, vector<9x8xf32> -> vector<9x8xf32>
    %c24 = arith.constant 24 : index
    %c0_49 = arith.constant 0 : index
    %115 = vector.load %arg6[%c24, %c0_49] : memref<32x32xf32, #tpu.memory_space<vmem>>, vector<8x32xf32>
    %cst_50 = arith.constant dense<0.000000e+00> : vector<9x32xf32>
    %116 = tpu.matmul %114, %115, %cst_50 {dimension_numbers = #tpu.dot_dimension_numbers<[1], [0], [0], [1], [0, 0, 1, 1], [], []>} : vector<9x8xf32>, vector<8x32xf32>, vector<9x32xf32> -> vector<9x32xf32>
    %117 = arith.addf %97, %116 : vector<9x32xf32>
    %118 = arith.addf %9, %117 : vector<9x32xf32>
    %c3 = arith.constant 3 : index
    %c0_51 = arith.constant 0 : index
    %119 = vector.load %arg3[%c3, %c0_51] : memref<19x128xf32, #tpu.memory_space<vmem>>, vector<1x32xf32>
    %120 = vector.broadcast %119 : vector<1x32xf32> to vector<9x32xf32>
    %121 = arith.addf %118, %120 : vector<9x32xf32>
    %c4 = arith.constant 4 : index
    %c0_52 = arith.constant 0 : index
    %122 = vector.load %arg3[%c4, %c0_52] : memref<19x128xf32, #tpu.memory_space<vmem>>, vector<1x32xf32>
    %c5 = arith.constant 5 : index
    %c0_53 = arith.constant 0 : index
    %123 = vector.load %arg3[%c5, %c0_53] : memref<19x128xf32, #tpu.memory_space<vmem>>, vector<1x32xf32>
    %cst_54 = arith.constant dense<0.000000e+00> : vector<9xf32>
    %124 = vector.multi_reduction <add>, %121, %cst_54 [1] : vector<9x32xf32> to vector<9xf32>
    %125 = vector.shape_cast %124 : vector<9xf32> to vector<9x1xf32>
    %cst_55 = arith.constant 3.200000e+01 : f32
    %126 = vector.broadcast %cst_55 : f32 to vector<9x1xf32>
    %127 = arith.divf %125, %126 : vector<9x1xf32>
    %128 = vector.broadcast %127 : vector<9x1xf32> to vector<9x32xf32>
    %129 = arith.subf %121, %128 : vector<9x32xf32>
    %130 = arith.mulf %129, %129 : vector<9x32xf32>
    %cst_56 = arith.constant dense<0.000000e+00> : vector<9xf32>
    %131 = vector.multi_reduction <add>, %130, %cst_56 [1] : vector<9x32xf32> to vector<9xf32>
    %132 = vector.shape_cast %131 : vector<9xf32> to vector<9x1xf32>
    %cst_57 = arith.constant 3.200000e+01 : f32
    %133 = vector.broadcast %cst_57 : f32 to vector<9x1xf32>
    %134 = arith.divf %132, %133 : vector<9x1xf32>
    %135 = vector.broadcast %127 : vector<9x1xf32> to vector<9x32xf32>
    %136 = arith.subf %121, %135 : vector<9x32xf32>
    %cst_58 = arith.constant 9.99999996E-13 : f32
    %137 = vector.broadcast %cst_58 : f32 to vector<9x1xf32>
    %138 = arith.addf %134, %137 : vector<9x1xf32>
    %139 = math.rsqrt %138 : vector<9x1xf32>
    %140 = vector.broadcast %139 : vector<9x1xf32> to vector<9x32xf32>
    %141 = arith.mulf %136, %140 : vector<9x32xf32>
    %142 = vector.broadcast %122 : vector<1x32xf32> to vector<9x32xf32>
    %143 = arith.mulf %141, %142 : vector<9x32xf32>
    %144 = vector.broadcast %123 : vector<1x32xf32> to vector<9x32xf32>
    %145 = arith.addf %143, %144 : vector<9x32xf32>
    %c0_59 = arith.constant 0 : index
    %c0_60 = arith.constant 0 : index
    %146 = vector.load %arg7[%c0_59, %c0_60] : memref<32x128xf32, #tpu.memory_space<vmem>>, vector<32x128xf32>
    %cst_61 = arith.constant dense<0.000000e+00> : vector<9x128xf32>
    %147 = tpu.matmul %145, %146, %cst_61 {dimension_numbers = #tpu.dot_dimension_numbers<[1], [0], [0], [1], [0, 0, 1, 1], [], []>} : vector<9x32xf32>, vector<32x128xf32>, vector<9x128xf32> -> vector<9x128xf32>
    %c6 = arith.constant 6 : index
    %c0_62 = arith.constant 0 : index
    %148 = vector.load %arg3[%c6, %c0_62] : memref<19x128xf32, #tpu.memory_space<vmem>>, vector<1x128xf32>
    %149 = vector.broadcast %148 : vector<1x128xf32> to vector<9x128xf32>
    %150 = arith.addf %147, %149 : vector<9x128xf32>
    %cst_63 = arith.constant 5.000000e-01 : f32
    %151 = vector.broadcast %cst_63 : f32 to vector<9x128xf32>
    %152 = arith.mulf %151, %150 : vector<9x128xf32>
    %cst_64 = arith.constant 0.707106769 : f32
    %153 = vector.broadcast %cst_64 : f32 to vector<9x128xf32>
    %154 = arith.mulf %150, %153 : vector<9x128xf32>
    %155 = math.erf %154 : vector<9x128xf32>
    %cst_65 = arith.constant 1.000000e+00 : f32
    %156 = vector.broadcast %cst_65 : f32 to vector<9x128xf32>
    %157 = arith.addf %156, %155 : vector<9x128xf32>
    %158 = arith.mulf %152, %157 : vector<9x128xf32>
    %c0_66 = arith.constant 0 : index
    %c0_67 = arith.constant 0 : index
    %159 = vector.load %arg8[%c0_66, %c0_67] : memref<128x32xf32, #tpu.memory_space<vmem>>, vector<128x32xf32>
    %cst_68 = arith.constant dense<0.000000e+00> : vector<9x32xf32>
    %160 = tpu.matmul %158, %159, %cst_68 {dimension_numbers = #tpu.dot_dimension_numbers<[1], [0], [0], [1], [0, 0, 1, 1], [], []>} : vector<9x128xf32>, vector<128x32xf32>, vector<9x32xf32> -> vector<9x32xf32>
    %161 = arith.addf %121, %160 : vector<9x32xf32>
    %c7 = arith.constant 7 : index
    %c0_69 = arith.constant 0 : index
    %162 = vector.load %arg3[%c7, %c0_69] : memref<19x128xf32, #tpu.memory_space<vmem>>, vector<1x32xf32>
    %163 = vector.broadcast %162 : vector<1x32xf32> to vector<9x32xf32>
    %164 = arith.addf %161, %163 : vector<9x32xf32>
    %c8_70 = arith.constant 8 : index
    %c0_71 = arith.constant 0 : index
    %165 = vector.load %arg3[%c8_70, %c0_71] : memref<19x128xf32, #tpu.memory_space<vmem>>, vector<1x32xf32>
    %c9 = arith.constant 9 : index
    %c0_72 = arith.constant 0 : index
    %166 = vector.load %arg3[%c9, %c0_72] : memref<19x128xf32, #tpu.memory_space<vmem>>, vector<1x32xf32>
    %cst_73 = arith.constant dense<0.000000e+00> : vector<9xf32>
    %167 = vector.multi_reduction <add>, %164, %cst_73 [1] : vector<9x32xf32> to vector<9xf32>
    %168 = vector.shape_cast %167 : vector<9xf32> to vector<9x1xf32>
    %cst_74 = arith.constant 3.200000e+01 : f32
    %169 = vector.broadcast %cst_74 : f32 to vector<9x1xf32>
    %170 = arith.divf %168, %169 : vector<9x1xf32>
    %171 = vector.broadcast %170 : vector<9x1xf32> to vector<9x32xf32>
    %172 = arith.subf %164, %171 : vector<9x32xf32>
    %173 = arith.mulf %172, %172 : vector<9x32xf32>
    %cst_75 = arith.constant dense<0.000000e+00> : vector<9xf32>
    %174 = vector.multi_reduction <add>, %173, %cst_75 [1] : vector<9x32xf32> to vector<9xf32>
    %175 = vector.shape_cast %174 : vector<9xf32> to vector<9x1xf32>
    %cst_76 = arith.constant 3.200000e+01 : f32
    %176 = vector.broadcast %cst_76 : f32 to vector<9x1xf32>
    %177 = arith.divf %175, %176 : vector<9x1xf32>
    %178 = vector.broadcast %170 : vector<9x1xf32> to vector<9x32xf32>
    %179 = arith.subf %164, %178 : vector<9x32xf32>
    %cst_77 = arith.constant 9.99999996E-13 : f32
    %180 = vector.broadcast %cst_77 : f32 to vector<9x1xf32>
    %181 = arith.addf %177, %180 : vector<9x1xf32>
    %182 = math.rsqrt %181 : vector<9x1xf32>
    %183 = vector.broadcast %182 : vector<9x1xf32> to vector<9x32xf32>
    %184 = arith.mulf %179, %183 : vector<9x32xf32>
    %185 = vector.broadcast %165 : vector<1x32xf32> to vector<9x32xf32>
    %186 = arith.mulf %184, %185 : vector<9x32xf32>
    %187 = vector.broadcast %166 : vector<1x32xf32> to vector<9x32xf32>
    %188 = arith.addf %186, %187 : vector<9x32xf32>
    %c0_78 = arith.constant 0 : index
    %c0_79 = arith.constant 0 : index
    %189 = vector.load %arg9[%c0_78, %c0_79] : memref<32x96xf32, #tpu.memory_space<vmem>>, vector<32x96xf32>
    %cst_80 = arith.constant dense<0.000000e+00> : vector<9x96xf32>
    %190 = tpu.matmul %188, %189, %cst_80 {dimension_numbers = #tpu.dot_dimension_numbers<[1], [0], [0], [1], [0, 0, 1, 1], [], []>} : vector<9x32xf32>, vector<32x96xf32>, vector<9x96xf32> -> vector<9x96xf32>
    %c10 = arith.constant 10 : index
    %c0_81 = arith.constant 0 : index
    %191 = vector.load %arg3[%c10, %c0_81] : memref<19x128xf32, #tpu.memory_space<vmem>>, vector<1x96xf32>
    %192 = vector.broadcast %191 : vector<1x96xf32> to vector<9x96xf32>
    %193 = arith.addf %190, %192 : vector<9x96xf32>
    %194 = vector.extract_strided_slice %193 {offsets = [0, 0], sizes = [9, 8], strides = [1, 1]} : vector<9x96xf32> to vector<9x8xf32>
    %195 = vector.extract_strided_slice %193 {offsets = [0, 32], sizes = [9, 8], strides = [1, 1]} : vector<9x96xf32> to vector<9x8xf32>
    %196 = vector.extract_strided_slice %193 {offsets = [0, 64], sizes = [9, 8], strides = [1, 1]} : vector<9x96xf32> to vector<9x8xf32>
    %cst_82 = arith.constant dense<0.000000e+00> : vector<9x9xf32>
    %197 = tpu.matmul %194, %195, %cst_82 {dimension_numbers = #tpu.dot_dimension_numbers<[1], [1], [0], [0], [0, 0, 1, 0], [], []>} : vector<9x8xf32>, vector<9x8xf32>, vector<9x9xf32> -> vector<9x9xf32>
    %cst_83 = arith.constant 0.353553385 : f32
    %198 = vector.broadcast %cst_83 : f32 to vector<9x9xf32>
    %199 = arith.mulf %197, %198 : vector<9x9xf32>
    %cst_84 = arith.constant dense<0xFF800000> : vector<9xf32>
    %200 = vector.multi_reduction <maximumf>, %199, %cst_84 [1] : vector<9x9xf32> to vector<9xf32>
    %201 = vector.shape_cast %200 : vector<9xf32> to vector<9x1xf32>
    %202 = vector.broadcast %201 : vector<9x1xf32> to vector<9x9xf32>
    %203 = arith.subf %199, %202 : vector<9x9xf32>
    %204 = math.exp %203 : vector<9x9xf32>
    %cst_85 = arith.constant dense<0.000000e+00> : vector<9xf32>
    %205 = vector.multi_reduction <add>, %204, %cst_85 [1] : vector<9x9xf32> to vector<9xf32>
    %206 = vector.shape_cast %205 : vector<9xf32> to vector<9x1xf32>
    %207 = tpu.reciprocal %206 {approx = true} : vector<9x1xf32> -> vector<9x1xf32>
    %208 = vector.broadcast %207 : vector<9x1xf32> to vector<9x9xf32>
    %209 = arith.mulf %204, %208 : vector<9x9xf32>
    %cst_86 = arith.constant dense<0.000000e+00> : vector<9x8xf32>
    %210 = tpu.matmul %209, %196, %cst_86 {dimension_numbers = #tpu.dot_dimension_numbers<[1], [0], [0], [1], [0, 0, 1, 1], [], []>} : vector<9x9xf32>, vector<9x8xf32>, vector<9x8xf32> -> vector<9x8xf32>
    %c0_87 = arith.constant 0 : index
    %c0_88 = arith.constant 0 : index
    %211 = vector.load %arg10[%c0_87, %c0_88] : memref<32x32xf32, #tpu.memory_space<vmem>>, vector<8x32xf32>
    %cst_89 = arith.constant dense<0.000000e+00> : vector<9x32xf32>
    %212 = tpu.matmul %210, %211, %cst_89 {dimension_numbers = #tpu.dot_dimension_numbers<[1], [0], [0], [1], [0, 0, 1, 1], [], []>} : vector<9x8xf32>, vector<8x32xf32>, vector<9x32xf32> -> vector<9x32xf32>
    %213 = vector.extract_strided_slice %193 {offsets = [0, 8], sizes = [9, 8], strides = [1, 1]} : vector<9x96xf32> to vector<9x8xf32>
    %214 = vector.extract_strided_slice %193 {offsets = [0, 40], sizes = [9, 8], strides = [1, 1]} : vector<9x96xf32> to vector<9x8xf32>
    %215 = vector.extract_strided_slice %193 {offsets = [0, 72], sizes = [9, 8], strides = [1, 1]} : vector<9x96xf32> to vector<9x8xf32>
    %cst_90 = arith.constant dense<0.000000e+00> : vector<9x9xf32>
    %216 = tpu.matmul %213, %214, %cst_90 {dimension_numbers = #tpu.dot_dimension_numbers<[1], [1], [0], [0], [0, 0, 1, 0], [], []>} : vector<9x8xf32>, vector<9x8xf32>, vector<9x9xf32> -> vector<9x9xf32>
    %cst_91 = arith.constant 0.353553385 : f32
    %217 = vector.broadcast %cst_91 : f32 to vector<9x9xf32>
    %218 = arith.mulf %216, %217 : vector<9x9xf32>
    %cst_92 = arith.constant dense<0xFF800000> : vector<9xf32>
    %219 = vector.multi_reduction <maximumf>, %218, %cst_92 [1] : vector<9x9xf32> to vector<9xf32>
    %220 = vector.shape_cast %219 : vector<9xf32> to vector<9x1xf32>
    %221 = vector.broadcast %220 : vector<9x1xf32> to vector<9x9xf32>
    %222 = arith.subf %218, %221 : vector<9x9xf32>
    %223 = math.exp %222 : vector<9x9xf32>
    %cst_93 = arith.constant dense<0.000000e+00> : vector<9xf32>
    %224 = vector.multi_reduction <add>, %223, %cst_93 [1] : vector<9x9xf32> to vector<9xf32>
    %225 = vector.shape_cast %224 : vector<9xf32> to vector<9x1xf32>
    %226 = tpu.reciprocal %225 {approx = true} : vector<9x1xf32> -> vector<9x1xf32>
    %227 = vector.broadcast %226 : vector<9x1xf32> to vector<9x9xf32>
    %228 = arith.mulf %223, %227 : vector<9x9xf32>
    %cst_94 = arith.constant dense<0.000000e+00> : vector<9x8xf32>
    %229 = tpu.matmul %228, %215, %cst_94 {dimension_numbers = #tpu.dot_dimension_numbers<[1], [0], [0], [1], [0, 0, 1, 1], [], []>} : vector<9x9xf32>, vector<9x8xf32>, vector<9x8xf32> -> vector<9x8xf32>
    %c8_95 = arith.constant 8 : index
    %c0_96 = arith.constant 0 : index
    %230 = vector.load %arg10[%c8_95, %c0_96] : memref<32x32xf32, #tpu.memory_space<vmem>>, vector<8x32xf32>
    %cst_97 = arith.constant dense<0.000000e+00> : vector<9x32xf32>
    %231 = tpu.matmul %229, %230, %cst_97 {dimension_numbers = #tpu.dot_dimension_numbers<[1], [0], [0], [1], [0, 0, 1, 1], [], []>} : vector<9x8xf32>, vector<8x32xf32>, vector<9x32xf32> -> vector<9x32xf32>
    %232 = arith.addf %212, %231 : vector<9x32xf32>
    %233 = vector.extract_strided_slice %193 {offsets = [0, 16], sizes = [9, 8], strides = [1, 1]} : vector<9x96xf32> to vector<9x8xf32>
    %234 = vector.extract_strided_slice %193 {offsets = [0, 48], sizes = [9, 8], strides = [1, 1]} : vector<9x96xf32> to vector<9x8xf32>
    %235 = vector.extract_strided_slice %193 {offsets = [0, 80], sizes = [9, 8], strides = [1, 1]} : vector<9x96xf32> to vector<9x8xf32>
    %cst_98 = arith.constant dense<0.000000e+00> : vector<9x9xf32>
    %236 = tpu.matmul %233, %234, %cst_98 {dimension_numbers = #tpu.dot_dimension_numbers<[1], [1], [0], [0], [0, 0, 1, 0], [], []>} : vector<9x8xf32>, vector<9x8xf32>, vector<9x9xf32> -> vector<9x9xf32>
    %cst_99 = arith.constant 0.353553385 : f32
    %237 = vector.broadcast %cst_99 : f32 to vector<9x9xf32>
    %238 = arith.mulf %236, %237 : vector<9x9xf32>
    %cst_100 = arith.constant dense<0xFF800000> : vector<9xf32>
    %239 = vector.multi_reduction <maximumf>, %238, %cst_100 [1] : vector<9x9xf32> to vector<9xf32>
    %240 = vector.shape_cast %239 : vector<9xf32> to vector<9x1xf32>
    %241 = vector.broadcast %240 : vector<9x1xf32> to vector<9x9xf32>
    %242 = arith.subf %238, %241 : vector<9x9xf32>
    %243 = math.exp %242 : vector<9x9xf32>
    %cst_101 = arith.constant dense<0.000000e+00> : vector<9xf32>
    %244 = vector.multi_reduction <add>, %243, %cst_101 [1] : vector<9x9xf32> to vector<9xf32>
    %245 = vector.shape_cast %244 : vector<9xf32> to vector<9x1xf32>
    %246 = tpu.reciprocal %245 {approx = true} : vector<9x1xf32> -> vector<9x1xf32>
    %247 = vector.broadcast %246 : vector<9x1xf32> to vector<9x9xf32>
    %248 = arith.mulf %243, %247 : vector<9x9xf32>
    %cst_102 = arith.constant dense<0.000000e+00> : vector<9x8xf32>
    %249 = tpu.matmul %248, %235, %cst_102 {dimension_numbers = #tpu.dot_dimension_numbers<[1], [0], [0], [1], [0, 0, 1, 1], [], []>} : vector<9x9xf32>, vector<9x8xf32>, vector<9x8xf32> -> vector<9x8xf32>
    %c16_103 = arith.constant 16 : index
    %c0_104 = arith.constant 0 : index
    %250 = vector.load %arg10[%c16_103, %c0_104] : memref<32x32xf32, #tpu.memory_space<vmem>>, vector<8x32xf32>
    %cst_105 = arith.constant dense<0.000000e+00> : vector<9x32xf32>
    %251 = tpu.matmul %249, %250, %cst_105 {dimension_numbers = #tpu.dot_dimension_numbers<[1], [0], [0], [1], [0, 0, 1, 1], [], []>} : vector<9x8xf32>, vector<8x32xf32>, vector<9x32xf32> -> vector<9x32xf32>
    %252 = arith.addf %232, %251 : vector<9x32xf32>
    %253 = vector.extract_strided_slice %193 {offsets = [0, 24], sizes = [9, 8], strides = [1, 1]} : vector<9x96xf32> to vector<9x8xf32>
    %254 = vector.extract_strided_slice %193 {offsets = [0, 56], sizes = [9, 8], strides = [1, 1]} : vector<9x96xf32> to vector<9x8xf32>
    %255 = vector.extract_strided_slice %193 {offsets = [0, 88], sizes = [9, 8], strides = [1, 1]} : vector<9x96xf32> to vector<9x8xf32>
    %cst_106 = arith.constant dense<0.000000e+00> : vector<9x9xf32>
    %256 = tpu.matmul %253, %254, %cst_106 {dimension_numbers = #tpu.dot_dimension_numbers<[1], [1], [0], [0], [0, 0, 1, 0], [], []>} : vector<9x8xf32>, vector<9x8xf32>, vector<9x9xf32> -> vector<9x9xf32>
    %cst_107 = arith.constant 0.353553385 : f32
    %257 = vector.broadcast %cst_107 : f32 to vector<9x9xf32>
    %258 = arith.mulf %256, %257 : vector<9x9xf32>
    %cst_108 = arith.constant dense<0xFF800000> : vector<9xf32>
    %259 = vector.multi_reduction <maximumf>, %258, %cst_108 [1] : vector<9x9xf32> to vector<9xf32>
    %260 = vector.shape_cast %259 : vector<9xf32> to vector<9x1xf32>
    %261 = vector.broadcast %260 : vector<9x1xf32> to vector<9x9xf32>
    %262 = arith.subf %258, %261 : vector<9x9xf32>
    %263 = math.exp %262 : vector<9x9xf32>
    %cst_109 = arith.constant dense<0.000000e+00> : vector<9xf32>
    %264 = vector.multi_reduction <add>, %263, %cst_109 [1] : vector<9x9xf32> to vector<9xf32>
    %265 = vector.shape_cast %264 : vector<9xf32> to vector<9x1xf32>
    %266 = tpu.reciprocal %265 {approx = true} : vector<9x1xf32> -> vector<9x1xf32>
    %267 = vector.broadcast %266 : vector<9x1xf32> to vector<9x9xf32>
    %268 = arith.mulf %263, %267 : vector<9x9xf32>
    %cst_110 = arith.constant dense<0.000000e+00> : vector<9x8xf32>
    %269 = tpu.matmul %268, %255, %cst_110 {dimension_numbers = #tpu.dot_dimension_numbers<[1], [0], [0], [1], [0, 0, 1, 1], [], []>} : vector<9x9xf32>, vector<9x8xf32>, vector<9x8xf32> -> vector<9x8xf32>
    %c24_111 = arith.constant 24 : index
    %c0_112 = arith.constant 0 : index
    %270 = vector.load %arg10[%c24_111, %c0_112] : memref<32x32xf32, #tpu.memory_space<vmem>>, vector<8x32xf32>
    %cst_113 = arith.constant dense<0.000000e+00> : vector<9x32xf32>
    %271 = tpu.matmul %269, %270, %cst_113 {dimension_numbers = #tpu.dot_dimension_numbers<[1], [0], [0], [1], [0, 0, 1, 1], [], []>} : vector<9x8xf32>, vector<8x32xf32>, vector<9x32xf32> -> vector<9x32xf32>
    %272 = arith.addf %252, %271 : vector<9x32xf32>
    %273 = arith.addf %164, %272 : vector<9x32xf32>
    %c11 = arith.constant 11 : index
    %c0_114 = arith.constant 0 : index
    %274 = vector.load %arg3[%c11, %c0_114] : memref<19x128xf32, #tpu.memory_space<vmem>>, vector<1x32xf32>
    %275 = vector.broadcast %274 : vector<1x32xf32> to vector<9x32xf32>
    %276 = arith.addf %273, %275 : vector<9x32xf32>
    %c12 = arith.constant 12 : index
    %c0_115 = arith.constant 0 : index
    %277 = vector.load %arg3[%c12, %c0_115] : memref<19x128xf32, #tpu.memory_space<vmem>>, vector<1x32xf32>
    %c13 = arith.constant 13 : index
    %c0_116 = arith.constant 0 : index
    %278 = vector.load %arg3[%c13, %c0_116] : memref<19x128xf32, #tpu.memory_space<vmem>>, vector<1x32xf32>
    %cst_117 = arith.constant dense<0.000000e+00> : vector<9xf32>
    %279 = vector.multi_reduction <add>, %276, %cst_117 [1] : vector<9x32xf32> to vector<9xf32>
    %280 = vector.shape_cast %279 : vector<9xf32> to vector<9x1xf32>
    %cst_118 = arith.constant 3.200000e+01 : f32
    %281 = vector.broadcast %cst_118 : f32 to vector<9x1xf32>
    %282 = arith.divf %280, %281 : vector<9x1xf32>
    %283 = vector.broadcast %282 : vector<9x1xf32> to vector<9x32xf32>
    %284 = arith.subf %276, %283 : vector<9x32xf32>
    %285 = arith.mulf %284, %284 : vector<9x32xf32>
    %cst_119 = arith.constant dense<0.000000e+00> : vector<9xf32>
    %286 = vector.multi_reduction <add>, %285, %cst_119 [1] : vector<9x32xf32> to vector<9xf32>
    %287 = vector.shape_cast %286 : vector<9xf32> to vector<9x1xf32>
    %cst_120 = arith.constant 3.200000e+01 : f32
    %288 = vector.broadcast %cst_120 : f32 to vector<9x1xf32>
    %289 = arith.divf %287, %288 : vector<9x1xf32>
    %290 = vector.broadcast %282 : vector<9x1xf32> to vector<9x32xf32>
    %291 = arith.subf %276, %290 : vector<9x32xf32>
    %cst_121 = arith.constant 9.99999996E-13 : f32
    %292 = vector.broadcast %cst_121 : f32 to vector<9x1xf32>
    %293 = arith.addf %289, %292 : vector<9x1xf32>
    %294 = math.rsqrt %293 : vector<9x1xf32>
    %295 = vector.broadcast %294 : vector<9x1xf32> to vector<9x32xf32>
    %296 = arith.mulf %291, %295 : vector<9x32xf32>
    %297 = vector.broadcast %277 : vector<1x32xf32> to vector<9x32xf32>
    %298 = arith.mulf %296, %297 : vector<9x32xf32>
    %299 = vector.broadcast %278 : vector<1x32xf32> to vector<9x32xf32>
    %300 = arith.addf %298, %299 : vector<9x32xf32>
    %c0_122 = arith.constant 0 : index
    %c0_123 = arith.constant 0 : index
    %301 = vector.load %arg11[%c0_122, %c0_123] : memref<32x128xf32, #tpu.memory_space<vmem>>, vector<32x128xf32>
    %cst_124 = arith.constant dense<0.000000e+00> : vector<9x128xf32>
    %302 = tpu.matmul %300, %301, %cst_124 {dimension_numbers = #tpu.dot_dimension_numbers<[1], [0], [0], [1], [0, 0, 1, 1], [], []>} : vector<9x32xf32>, vector<32x128xf32>, vector<9x128xf32> -> vector<9x128xf32>
    %c14 = arith.constant 14 : index
    %c0_125 = arith.constant 0 : index
    %303 = vector.load %arg3[%c14, %c0_125] : memref<19x128xf32, #tpu.memory_space<vmem>>, vector<1x128xf32>
    %304 = vector.broadcast %303 : vector<1x128xf32> to vector<9x128xf32>
    %305 = arith.addf %302, %304 : vector<9x128xf32>
    %cst_126 = arith.constant 5.000000e-01 : f32
    %306 = vector.broadcast %cst_126 : f32 to vector<9x128xf32>
    %307 = arith.mulf %306, %305 : vector<9x128xf32>
    %cst_127 = arith.constant 0.707106769 : f32
    %308 = vector.broadcast %cst_127 : f32 to vector<9x128xf32>
    %309 = arith.mulf %305, %308 : vector<9x128xf32>
    %310 = math.erf %309 : vector<9x128xf32>
    %cst_128 = arith.constant 1.000000e+00 : f32
    %311 = vector.broadcast %cst_128 : f32 to vector<9x128xf32>
    %312 = arith.addf %311, %310 : vector<9x128xf32>
    %313 = arith.mulf %307, %312 : vector<9x128xf32>
    %c0_129 = arith.constant 0 : index
    %c0_130 = arith.constant 0 : index
    %314 = vector.load %arg12[%c0_129, %c0_130] : memref<128x32xf32, #tpu.memory_space<vmem>>, vector<128x32xf32>
    %cst_131 = arith.constant dense<0.000000e+00> : vector<9x32xf32>
    %315 = tpu.matmul %313, %314, %cst_131 {dimension_numbers = #tpu.dot_dimension_numbers<[1], [0], [0], [1], [0, 0, 1, 1], [], []>} : vector<9x128xf32>, vector<128x32xf32>, vector<9x32xf32> -> vector<9x32xf32>
    %316 = arith.addf %276, %315 : vector<9x32xf32>
    %c15 = arith.constant 15 : index
    %c0_132 = arith.constant 0 : index
    %317 = vector.load %arg3[%c15, %c0_132] : memref<19x128xf32, #tpu.memory_space<vmem>>, vector<1x32xf32>
    %318 = vector.broadcast %317 : vector<1x32xf32> to vector<9x32xf32>
    %319 = arith.addf %316, %318 : vector<9x32xf32>
    %c16_133 = arith.constant 16 : index
    %c0_134 = arith.constant 0 : index
    %320 = vector.load %arg3[%c16_133, %c0_134] : memref<19x128xf32, #tpu.memory_space<vmem>>, vector<1x32xf32>
    %c17 = arith.constant 17 : index
    %c0_135 = arith.constant 0 : index
    %321 = vector.load %arg3[%c17, %c0_135] : memref<19x128xf32, #tpu.memory_space<vmem>>, vector<1x32xf32>
    %cst_136 = arith.constant dense<0.000000e+00> : vector<9xf32>
    %322 = vector.multi_reduction <add>, %319, %cst_136 [1] : vector<9x32xf32> to vector<9xf32>
    %323 = vector.shape_cast %322 : vector<9xf32> to vector<9x1xf32>
    %cst_137 = arith.constant 3.200000e+01 : f32
    %324 = vector.broadcast %cst_137 : f32 to vector<9x1xf32>
    %325 = arith.divf %323, %324 : vector<9x1xf32>
    %326 = vector.broadcast %325 : vector<9x1xf32> to vector<9x32xf32>
    %327 = arith.subf %319, %326 : vector<9x32xf32>
    %328 = arith.mulf %327, %327 : vector<9x32xf32>
    %cst_138 = arith.constant dense<0.000000e+00> : vector<9xf32>
    %329 = vector.multi_reduction <add>, %328, %cst_138 [1] : vector<9x32xf32> to vector<9xf32>
    %330 = vector.shape_cast %329 : vector<9xf32> to vector<9x1xf32>
    %cst_139 = arith.constant 3.200000e+01 : f32
    %331 = vector.broadcast %cst_139 : f32 to vector<9x1xf32>
    %332 = arith.divf %330, %331 : vector<9x1xf32>
    %333 = vector.broadcast %325 : vector<9x1xf32> to vector<9x32xf32>
    %334 = arith.subf %319, %333 : vector<9x32xf32>
    %cst_140 = arith.constant 9.99999996E-13 : f32
    %335 = vector.broadcast %cst_140 : f32 to vector<9x1xf32>
    %336 = arith.addf %332, %335 : vector<9x1xf32>
    %337 = math.rsqrt %336 : vector<9x1xf32>
    %338 = vector.broadcast %337 : vector<9x1xf32> to vector<9x32xf32>
    %339 = arith.mulf %334, %338 : vector<9x32xf32>
    %340 = vector.broadcast %320 : vector<1x32xf32> to vector<9x32xf32>
    %341 = arith.mulf %339, %340 : vector<9x32xf32>
    %342 = vector.broadcast %321 : vector<1x32xf32> to vector<9x32xf32>
    %343 = arith.addf %341, %342 : vector<9x32xf32>
    %344 = vector.extract_strided_slice %343 {offsets = [0, 0], sizes = [1, 32], strides = [1, 1]} : vector<9x32xf32> to vector<1x32xf32>
    %cst_141 = arith.constant dense<0.000000e+00> : vector<32xf32>
    %345 = vector.multi_reduction <add>, %343, %cst_141 [0] : vector<9x32xf32> to vector<32xf32>
    %346 = vector.shape_cast %345 : vector<32xf32> to vector<1x32xf32>
    %347 = arith.subf %346, %344 : vector<1x32xf32>
    %cst_142 = arith.constant 1.250000e-01 : f32
    %348 = vector.broadcast %cst_142 : f32 to vector<1x32xf32>
    %349 = arith.mulf %347, %348 : vector<1x32xf32>
    %c0_143 = arith.constant 0 : index
    %c0_144 = arith.constant 0 : index
    %350 = vector.load %arg13[%c0_143, %c0_144] : memref<64x128xf32, #tpu.memory_space<vmem>>, vector<32x128xf32>
    %cst_145 = arith.constant dense<0.000000e+00> : vector<1x128xf32>
    %351 = tpu.matmul %344, %350, %cst_145 {dimension_numbers = #tpu.dot_dimension_numbers<[1], [0], [0], [1], [0, 0, 1, 1], [], []>} : vector<1x32xf32>, vector<32x128xf32>, vector<1x128xf32> -> vector<1x128xf32>
    %c32 = arith.constant 32 : index
    %c0_146 = arith.constant 0 : index
    %352 = vector.load %arg13[%c32, %c0_146] : memref<64x128xf32, #tpu.memory_space<vmem>>, vector<32x128xf32>
    %cst_147 = arith.constant dense<0.000000e+00> : vector<1x128xf32>
    %353 = tpu.matmul %349, %352, %cst_147 {dimension_numbers = #tpu.dot_dimension_numbers<[1], [0], [0], [1], [0, 0, 1, 1], [], []>} : vector<1x32xf32>, vector<32x128xf32>, vector<1x128xf32> -> vector<1x128xf32>
    %354 = arith.addf %351, %353 : vector<1x128xf32>
    %c18 = arith.constant 18 : index
    %c0_148 = arith.constant 0 : index
    %355 = vector.load %arg3[%c18, %c0_148] : memref<19x128xf32, #tpu.memory_space<vmem>>, vector<1x128xf32>
    %356 = arith.addf %354, %355 : vector<1x128xf32>
    %cst_149 = arith.constant dense<0xFF800000> : vector<1xf32>
    %357 = vector.multi_reduction <maximumf>, %356, %cst_149 [1] : vector<1x128xf32> to vector<1xf32>
    %358 = vector.shape_cast %357 : vector<1xf32> to vector<1x1xf32>
    %359 = vector.broadcast %358 : vector<1x1xf32> to vector<1x128xf32>
    %360 = arith.subf %356, %359 : vector<1x128xf32>
    %361 = math.exp %360 : vector<1x128xf32>
    %cst_150 = arith.constant dense<0.000000e+00> : vector<1xf32>
    %362 = vector.multi_reduction <add>, %361, %cst_150 [1] : vector<1x128xf32> to vector<1xf32>
    %363 = vector.shape_cast %362 : vector<1xf32> to vector<1x1xf32>
    %364 = tpu.reciprocal %363 {approx = true} : vector<1x1xf32> -> vector<1x1xf32>
    %365 = vector.broadcast %364 : vector<1x1xf32> to vector<1x128xf32>
    %366 = arith.mulf %361, %365 : vector<1x128xf32>
    %c0_151 = arith.constant 0 : index
    %c0_152 = arith.constant 0 : index
    %367 = vector.load %arg14[%c0_151, %c0_152] : memref<2x128xf32, #tpu.memory_space<vmem>>, vector<1x128xf32>
    tpu.vector_store %arg14[%c0_151, %c0_152], %366 {strides = array<i32>} : memref<2x128xf32, #tpu.memory_space<vmem>>, vector<1x128xf32>,
    %c1_153 = arith.constant 1 : index
    %c0_154 = arith.constant 0 : index
    %c0_155 = arith.constant 0 : index
    %368 = vector.load %arg0[%c1_153, %c0_154, %c0_155] : memref<2x9x48xf32, #tpu.memory_space<vmem>>, vector<1x9x48xf32>
    %369 = vector.shape_cast %368 : vector<1x9x48xf32> to vector<9x48xf32>
    %cst_156 = arith.constant dense<0.000000e+00> : vector<9x32xf32>
    %370 = tpu.matmul %369, %0, %cst_156 {dimension_numbers = #tpu.dot_dimension_numbers<[1], [0], [0], [1], [0, 0, 1, 1], [], []>} : vector<9x48xf32>, vector<48x32xf32>, vector<9x32xf32> -> vector<9x32xf32>
    %c1_157 = arith.constant 1 : index
    %c0_158 = arith.constant 0 : index
    %c0_159 = arith.constant 0 : index
    %371 = vector.load %arg1[%c1_157, %c0_158, %c0_159] : memref<2x9x32xf32, #tpu.memory_space<vmem>>, vector<1x9x32xf32>
    %372 = vector.shape_cast %371 : vector<1x9x32xf32> to vector<9x32xf32>
    %373 = arith.mulf %370, %372 : vector<9x32xf32>
    %c1_160 = arith.constant 1 : index
    %c0_161 = arith.constant 0 : index
    %c0_162 = arith.constant 0 : index
    %374 = vector.load %arg2[%c1_160, %c0_161, %c0_162] : memref<2x9x32xf32, #tpu.memory_space<vmem>>, vector<1x9x32xf32>
    %375 = vector.shape_cast %374 : vector<1x9x32xf32> to vector<9x32xf32>
    %376 = arith.addf %373, %375 : vector<9x32xf32>
    %c0_163 = arith.constant 0 : index
    %c0_164 = arith.constant 0 : index
    %377 = vector.load %arg3[%c0_163, %c0_164] : memref<19x128xf32, #tpu.memory_space<vmem>>, vector<1x32xf32>
    %c1_165 = arith.constant 1 : index
    %c0_166 = arith.constant 0 : index
    %378 = vector.load %arg3[%c1_165, %c0_166] : memref<19x128xf32, #tpu.memory_space<vmem>>, vector<1x32xf32>
    %cst_167 = arith.constant dense<0.000000e+00> : vector<9xf32>
    %379 = vector.multi_reduction <add>, %376, %cst_167 [1] : vector<9x32xf32> to vector<9xf32>
    %380 = vector.shape_cast %379 : vector<9xf32> to vector<9x1xf32>
    %cst_168 = arith.constant 3.200000e+01 : f32
    %381 = vector.broadcast %cst_168 : f32 to vector<9x1xf32>
    %382 = arith.divf %380, %381 : vector<9x1xf32>
    %383 = vector.broadcast %382 : vector<9x1xf32> to vector<9x32xf32>
    %384 = arith.subf %376, %383 : vector<9x32xf32>
    %385 = arith.mulf %384, %384 : vector<9x32xf32>
    %cst_169 = arith.constant dense<0.000000e+00> : vector<9xf32>
    %386 = vector.multi_reduction <add>, %385, %cst_169 [1] : vector<9x32xf32> to vector<9xf32>
    %387 = vector.shape_cast %386 : vector<9xf32> to vector<9x1xf32>
    %cst_170 = arith.constant 3.200000e+01 : f32
    %388 = vector.broadcast %cst_170 : f32 to vector<9x1xf32>
    %389 = arith.divf %387, %388 : vector<9x1xf32>
    %390 = vector.broadcast %382 : vector<9x1xf32> to vector<9x32xf32>
    %391 = arith.subf %376, %390 : vector<9x32xf32>
    %cst_171 = arith.constant 9.99999996E-13 : f32
    %392 = vector.broadcast %cst_171 : f32 to vector<9x1xf32>
    %393 = arith.addf %389, %392 : vector<9x1xf32>
    %394 = math.rsqrt %393 : vector<9x1xf32>
    %395 = vector.broadcast %394 : vector<9x1xf32> to vector<9x32xf32>
    %396 = arith.mulf %391, %395 : vector<9x32xf32>
    %397 = vector.broadcast %377 : vector<1x32xf32> to vector<9x32xf32>
    %398 = arith.mulf %396, %397 : vector<9x32xf32>
    %399 = vector.broadcast %378 : vector<1x32xf32> to vector<9x32xf32>
    %400 = arith.addf %398, %399 : vector<9x32xf32>
    %c0_172 = arith.constant 0 : index
    %c0_173 = arith.constant 0 : index
    %401 = vector.load %arg5[%c0_172, %c0_173] : memref<32x96xf32, #tpu.memory_space<vmem>>, vector<32x96xf32>
    %cst_174 = arith.constant dense<0.000000e+00> : vector<9x96xf32>
    %402 = tpu.matmul %400, %401, %cst_174 {dimension_numbers = #tpu.dot_dimension_numbers<[1], [0], [0], [1], [0, 0, 1, 1], [], []>} : vector<9x32xf32>, vector<32x96xf32>, vector<9x96xf32> -> vector<9x96xf32>
    %c2_175 = arith.constant 2 : index
    %c0_176 = arith.constant 0 : index
    %403 = vector.load %arg3[%c2_175, %c0_176] : memref<19x128xf32, #tpu.memory_space<vmem>>, vector<1x96xf32>
    %404 = vector.broadcast %403 : vector<1x96xf32> to vector<9x96xf32>
    %405 = arith.addf %402, %404 : vector<9x96xf32>
    %406 = vector.extract_strided_slice %405 {offsets = [0, 0], sizes = [9, 8], strides = [1, 1]} : vector<9x96xf32> to vector<9x8xf32>
    %407 = vector.extract_strided_slice %405 {offsets = [0, 32], sizes = [9, 8], strides = [1, 1]} : vector<9x96xf32> to vector<9x8xf32>
    %408 = vector.extract_strided_slice %405 {offsets = [0, 64], sizes = [9, 8], strides = [1, 1]} : vector<9x96xf32> to vector<9x8xf32>
    %cst_177 = arith.constant dense<0.000000e+00> : vector<9x9xf32>
    %409 = tpu.matmul %406, %407, %cst_177 {dimension_numbers = #tpu.dot_dimension_numbers<[1], [1], [0], [0], [0, 0, 1, 0], [], []>} : vector<9x8xf32>, vector<9x8xf32>, vector<9x9xf32> -> vector<9x9xf32>
    %cst_178 = arith.constant 0.353553385 : f32
    %410 = vector.broadcast %cst_178 : f32 to vector<9x9xf32>
    %411 = arith.mulf %409, %410 : vector<9x9xf32>
    %cst_179 = arith.constant dense<0xFF800000> : vector<9xf32>
    %412 = vector.multi_reduction <maximumf>, %411, %cst_179 [1] : vector<9x9xf32> to vector<9xf32>
    %413 = vector.shape_cast %412 : vector<9xf32> to vector<9x1xf32>
    %414 = vector.broadcast %413 : vector<9x1xf32> to vector<9x9xf32>
    %415 = arith.subf %411, %414 : vector<9x9xf32>
    %416 = math.exp %415 : vector<9x9xf32>
    %cst_180 = arith.constant dense<0.000000e+00> : vector<9xf32>
    %417 = vector.multi_reduction <add>, %416, %cst_180 [1] : vector<9x9xf32> to vector<9xf32>
    %418 = vector.shape_cast %417 : vector<9xf32> to vector<9x1xf32>
    %419 = tpu.reciprocal %418 {approx = true} : vector<9x1xf32> -> vector<9x1xf32>
    %420 = vector.broadcast %419 : vector<9x1xf32> to vector<9x9xf32>
    %421 = arith.mulf %416, %420 : vector<9x9xf32>
    %cst_181 = arith.constant dense<0.000000e+00> : vector<9x8xf32>
    %422 = tpu.matmul %421, %408, %cst_181 {dimension_numbers = #tpu.dot_dimension_numbers<[1], [0], [0], [1], [0, 0, 1, 1], [], []>} : vector<9x9xf32>, vector<9x8xf32>, vector<9x8xf32> -> vector<9x8xf32>
    %c0_182 = arith.constant 0 : index
    %c0_183 = arith.constant 0 : index
    %423 = vector.load %arg6[%c0_182, %c0_183] : memref<32x32xf32, #tpu.memory_space<vmem>>, vector<8x32xf32>
    %cst_184 = arith.constant dense<0.000000e+00> : vector<9x32xf32>
    %424 = tpu.matmul %422, %423, %cst_184 {dimension_numbers = #tpu.dot_dimension_numbers<[1], [0], [0], [1], [0, 0, 1, 1], [], []>} : vector<9x8xf32>, vector<8x32xf32>, vector<9x32xf32> -> vector<9x32xf32>
    %425 = vector.extract_strided_slice %405 {offsets = [0, 8], sizes = [9, 8], strides = [1, 1]} : vector<9x96xf32> to vector<9x8xf32>
    %426 = vector.extract_strided_slice %405 {offsets = [0, 40], sizes = [9, 8], strides = [1, 1]} : vector<9x96xf32> to vector<9x8xf32>
    %427 = vector.extract_strided_slice %405 {offsets = [0, 72], sizes = [9, 8], strides = [1, 1]} : vector<9x96xf32> to vector<9x8xf32>
    %cst_185 = arith.constant dense<0.000000e+00> : vector<9x9xf32>
    %428 = tpu.matmul %425, %426, %cst_185 {dimension_numbers = #tpu.dot_dimension_numbers<[1], [1], [0], [0], [0, 0, 1, 0], [], []>} : vector<9x8xf32>, vector<9x8xf32>, vector<9x9xf32> -> vector<9x9xf32>
    %cst_186 = arith.constant 0.353553385 : f32
    %429 = vector.broadcast %cst_186 : f32 to vector<9x9xf32>
    %430 = arith.mulf %428, %429 : vector<9x9xf32>
    %cst_187 = arith.constant dense<0xFF800000> : vector<9xf32>
    %431 = vector.multi_reduction <maximumf>, %430, %cst_187 [1] : vector<9x9xf32> to vector<9xf32>
    %432 = vector.shape_cast %431 : vector<9xf32> to vector<9x1xf32>
    %433 = vector.broadcast %432 : vector<9x1xf32> to vector<9x9xf32>
    %434 = arith.subf %430, %433 : vector<9x9xf32>
    %435 = math.exp %434 : vector<9x9xf32>
    %cst_188 = arith.constant dense<0.000000e+00> : vector<9xf32>
    %436 = vector.multi_reduction <add>, %435, %cst_188 [1] : vector<9x9xf32> to vector<9xf32>
    %437 = vector.shape_cast %436 : vector<9xf32> to vector<9x1xf32>
    %438 = tpu.reciprocal %437 {approx = true} : vector<9x1xf32> -> vector<9x1xf32>
    %439 = vector.broadcast %438 : vector<9x1xf32> to vector<9x9xf32>
    %440 = arith.mulf %435, %439 : vector<9x9xf32>
    %cst_189 = arith.constant dense<0.000000e+00> : vector<9x8xf32>
    %441 = tpu.matmul %440, %427, %cst_189 {dimension_numbers = #tpu.dot_dimension_numbers<[1], [0], [0], [1], [0, 0, 1, 1], [], []>} : vector<9x9xf32>, vector<9x8xf32>, vector<9x8xf32> -> vector<9x8xf32>
    %c8_190 = arith.constant 8 : index
    %c0_191 = arith.constant 0 : index
    %442 = vector.load %arg6[%c8_190, %c0_191] : memref<32x32xf32, #tpu.memory_space<vmem>>, vector<8x32xf32>
    %cst_192 = arith.constant dense<0.000000e+00> : vector<9x32xf32>
    %443 = tpu.matmul %441, %442, %cst_192 {dimension_numbers = #tpu.dot_dimension_numbers<[1], [0], [0], [1], [0, 0, 1, 1], [], []>} : vector<9x8xf32>, vector<8x32xf32>, vector<9x32xf32> -> vector<9x32xf32>
    %444 = arith.addf %424, %443 : vector<9x32xf32>
    %445 = vector.extract_strided_slice %405 {offsets = [0, 16], sizes = [9, 8], strides = [1, 1]} : vector<9x96xf32> to vector<9x8xf32>
    %446 = vector.extract_strided_slice %405 {offsets = [0, 48], sizes = [9, 8], strides = [1, 1]} : vector<9x96xf32> to vector<9x8xf32>
    %447 = vector.extract_strided_slice %405 {offsets = [0, 80], sizes = [9, 8], strides = [1, 1]} : vector<9x96xf32> to vector<9x8xf32>
    %cst_193 = arith.constant dense<0.000000e+00> : vector<9x9xf32>
    %448 = tpu.matmul %445, %446, %cst_193 {dimension_numbers = #tpu.dot_dimension_numbers<[1], [1], [0], [0], [0, 0, 1, 0], [], []>} : vector<9x8xf32>, vector<9x8xf32>, vector<9x9xf32> -> vector<9x9xf32>
    %cst_194 = arith.constant 0.353553385 : f32
    %449 = vector.broadcast %cst_194 : f32 to vector<9x9xf32>
    %450 = arith.mulf %448, %449 : vector<9x9xf32>
    %cst_195 = arith.constant dense<0xFF800000> : vector<9xf32>
    %451 = vector.multi_reduction <maximumf>, %450, %cst_195 [1] : vector<9x9xf32> to vector<9xf32>
    %452 = vector.shape_cast %451 : vector<9xf32> to vector<9x1xf32>
    %453 = vector.broadcast %452 : vector<9x1xf32> to vector<9x9xf32>
    %454 = arith.subf %450, %453 : vector<9x9xf32>
    %455 = math.exp %454 : vector<9x9xf32>
    %cst_196 = arith.constant dense<0.000000e+00> : vector<9xf32>
    %456 = vector.multi_reduction <add>, %455, %cst_196 [1] : vector<9x9xf32> to vector<9xf32>
    %457 = vector.shape_cast %456 : vector<9xf32> to vector<9x1xf32>
    %458 = tpu.reciprocal %457 {approx = true} : vector<9x1xf32> -> vector<9x1xf32>
    %459 = vector.broadcast %458 : vector<9x1xf32> to vector<9x9xf32>
    %460 = arith.mulf %455, %459 : vector<9x9xf32>
    %cst_197 = arith.constant dense<0.000000e+00> : vector<9x8xf32>
    %461 = tpu.matmul %460, %447, %cst_197 {dimension_numbers = #tpu.dot_dimension_numbers<[1], [0], [0], [1], [0, 0, 1, 1], [], []>} : vector<9x9xf32>, vector<9x8xf32>, vector<9x8xf32> -> vector<9x8xf32>
    %c16_198 = arith.constant 16 : index
    %c0_199 = arith.constant 0 : index
    %462 = vector.load %arg6[%c16_198, %c0_199] : memref<32x32xf32, #tpu.memory_space<vmem>>, vector<8x32xf32>
    %cst_200 = arith.constant dense<0.000000e+00> : vector<9x32xf32>
    %463 = tpu.matmul %461, %462, %cst_200 {dimension_numbers = #tpu.dot_dimension_numbers<[1], [0], [0], [1], [0, 0, 1, 1], [], []>} : vector<9x8xf32>, vector<8x32xf32>, vector<9x32xf32> -> vector<9x32xf32>
    %464 = arith.addf %444, %463 : vector<9x32xf32>
    %465 = vector.extract_strided_slice %405 {offsets = [0, 24], sizes = [9, 8], strides = [1, 1]} : vector<9x96xf32> to vector<9x8xf32>
    %466 = vector.extract_strided_slice %405 {offsets = [0, 56], sizes = [9, 8], strides = [1, 1]} : vector<9x96xf32> to vector<9x8xf32>
    %467 = vector.extract_strided_slice %405 {offsets = [0, 88], sizes = [9, 8], strides = [1, 1]} : vector<9x96xf32> to vector<9x8xf32>
    %cst_201 = arith.constant dense<0.000000e+00> : vector<9x9xf32>
    %468 = tpu.matmul %465, %466, %cst_201 {dimension_numbers = #tpu.dot_dimension_numbers<[1], [1], [0], [0], [0, 0, 1, 0], [], []>} : vector<9x8xf32>, vector<9x8xf32>, vector<9x9xf32> -> vector<9x9xf32>
    %cst_202 = arith.constant 0.353553385 : f32
    %469 = vector.broadcast %cst_202 : f32 to vector<9x9xf32>
    %470 = arith.mulf %468, %469 : vector<9x9xf32>
    %cst_203 = arith.constant dense<0xFF800000> : vector<9xf32>
    %471 = vector.multi_reduction <maximumf>, %470, %cst_203 [1] : vector<9x9xf32> to vector<9xf32>
    %472 = vector.shape_cast %471 : vector<9xf32> to vector<9x1xf32>
    %473 = vector.broadcast %472 : vector<9x1xf32> to vector<9x9xf32>
    %474 = arith.subf %470, %473 : vector<9x9xf32>
    %475 = math.exp %474 : vector<9x9xf32>
    %cst_204 = arith.constant dense<0.000000e+00> : vector<9xf32>
    %476 = vector.multi_reduction <add>, %475, %cst_204 [1] : vector<9x9xf32> to vector<9xf32>
    %477 = vector.shape_cast %476 : vector<9xf32> to vector<9x1xf32>
    %478 = tpu.reciprocal %477 {approx = true} : vector<9x1xf32> -> vector<9x1xf32>
    %479 = vector.broadcast %478 : vector<9x1xf32> to vector<9x9xf32>
    %480 = arith.mulf %475, %479 : vector<9x9xf32>
    %cst_205 = arith.constant dense<0.000000e+00> : vector<9x8xf32>
    %481 = tpu.matmul %480, %467, %cst_205 {dimension_numbers = #tpu.dot_dimension_numbers<[1], [0], [0], [1], [0, 0, 1, 1], [], []>} : vector<9x9xf32>, vector<9x8xf32>, vector<9x8xf32> -> vector<9x8xf32>
    %c24_206 = arith.constant 24 : index
    %c0_207 = arith.constant 0 : index
    %482 = vector.load %arg6[%c24_206, %c0_207] : memref<32x32xf32, #tpu.memory_space<vmem>>, vector<8x32xf32>
    %cst_208 = arith.constant dense<0.000000e+00> : vector<9x32xf32>
    %483 = tpu.matmul %481, %482, %cst_208 {dimension_numbers = #tpu.dot_dimension_numbers<[1], [0], [0], [1], [0, 0, 1, 1], [], []>} : vector<9x8xf32>, vector<8x32xf32>, vector<9x32xf32> -> vector<9x32xf32>
    %484 = arith.addf %464, %483 : vector<9x32xf32>
    %485 = arith.addf %376, %484 : vector<9x32xf32>
    %c3_209 = arith.constant 3 : index
    %c0_210 = arith.constant 0 : index
    %486 = vector.load %arg3[%c3_209, %c0_210] : memref<19x128xf32, #tpu.memory_space<vmem>>, vector<1x32xf32>
    %487 = vector.broadcast %486 : vector<1x32xf32> to vector<9x32xf32>
    %488 = arith.addf %485, %487 : vector<9x32xf32>
    %c4_211 = arith.constant 4 : index
    %c0_212 = arith.constant 0 : index
    %489 = vector.load %arg3[%c4_211, %c0_212] : memref<19x128xf32, #tpu.memory_space<vmem>>, vector<1x32xf32>
    %c5_213 = arith.constant 5 : index
    %c0_214 = arith.constant 0 : index
    %490 = vector.load %arg3[%c5_213, %c0_214] : memref<19x128xf32, #tpu.memory_space<vmem>>, vector<1x32xf32>
    %cst_215 = arith.constant dense<0.000000e+00> : vector<9xf32>
    %491 = vector.multi_reduction <add>, %488, %cst_215 [1] : vector<9x32xf32> to vector<9xf32>
    %492 = vector.shape_cast %491 : vector<9xf32> to vector<9x1xf32>
    %cst_216 = arith.constant 3.200000e+01 : f32
    %493 = vector.broadcast %cst_216 : f32 to vector<9x1xf32>
    %494 = arith.divf %492, %493 : vector<9x1xf32>
    %495 = vector.broadcast %494 : vector<9x1xf32> to vector<9x32xf32>
    %496 = arith.subf %488, %495 : vector<9x32xf32>
    %497 = arith.mulf %496, %496 : vector<9x32xf32>
    %cst_217 = arith.constant dense<0.000000e+00> : vector<9xf32>
    %498 = vector.multi_reduction <add>, %497, %cst_217 [1] : vector<9x32xf32> to vector<9xf32>
    %499 = vector.shape_cast %498 : vector<9xf32> to vector<9x1xf32>
    %cst_218 = arith.constant 3.200000e+01 : f32
    %500 = vector.broadcast %cst_218 : f32 to vector<9x1xf32>
    %501 = arith.divf %499, %500 : vector<9x1xf32>
    %502 = vector.broadcast %494 : vector<9x1xf32> to vector<9x32xf32>
    %503 = arith.subf %488, %502 : vector<9x32xf32>
    %cst_219 = arith.constant 9.99999996E-13 : f32
    %504 = vector.broadcast %cst_219 : f32 to vector<9x1xf32>
    %505 = arith.addf %501, %504 : vector<9x1xf32>
    %506 = math.rsqrt %505 : vector<9x1xf32>
    %507 = vector.broadcast %506 : vector<9x1xf32> to vector<9x32xf32>
    %508 = arith.mulf %503, %507 : vector<9x32xf32>
    %509 = vector.broadcast %489 : vector<1x32xf32> to vector<9x32xf32>
    %510 = arith.mulf %508, %509 : vector<9x32xf32>
    %511 = vector.broadcast %490 : vector<1x32xf32> to vector<9x32xf32>
    %512 = arith.addf %510, %511 : vector<9x32xf32>
    %c0_220 = arith.constant 0 : index
    %c0_221 = arith.constant 0 : index
    %513 = vector.load %arg7[%c0_220, %c0_221] : memref<32x128xf32, #tpu.memory_space<vmem>>, vector<32x128xf32>
    %cst_222 = arith.constant dense<0.000000e+00> : vector<9x128xf32>
    %514 = tpu.matmul %512, %513, %cst_222 {dimension_numbers = #tpu.dot_dimension_numbers<[1], [0], [0], [1], [0, 0, 1, 1], [], []>} : vector<9x32xf32>, vector<32x128xf32>, vector<9x128xf32> -> vector<9x128xf32>
    %c6_223 = arith.constant 6 : index
    %c0_224 = arith.constant 0 : index
    %515 = vector.load %arg3[%c6_223, %c0_224] : memref<19x128xf32, #tpu.memory_space<vmem>>, vector<1x128xf32>
    %516 = vector.broadcast %515 : vector<1x128xf32> to vector<9x128xf32>
    %517 = arith.addf %514, %516 : vector<9x128xf32>
    %cst_225 = arith.constant 5.000000e-01 : f32
    %518 = vector.broadcast %cst_225 : f32 to vector<9x128xf32>
    %519 = arith.mulf %518, %517 : vector<9x128xf32>
    %cst_226 = arith.constant 0.707106769 : f32
    %520 = vector.broadcast %cst_226 : f32 to vector<9x128xf32>
    %521 = arith.mulf %517, %520 : vector<9x128xf32>
    %522 = math.erf %521 : vector<9x128xf32>
    %cst_227 = arith.constant 1.000000e+00 : f32
    %523 = vector.broadcast %cst_227 : f32 to vector<9x128xf32>
    %524 = arith.addf %523, %522 : vector<9x128xf32>
    %525 = arith.mulf %519, %524 : vector<9x128xf32>
    %c0_228 = arith.constant 0 : index
    %c0_229 = arith.constant 0 : index
    %526 = vector.load %arg8[%c0_228, %c0_229] : memref<128x32xf32, #tpu.memory_space<vmem>>, vector<128x32xf32>
    %cst_230 = arith.constant dense<0.000000e+00> : vector<9x32xf32>
    %527 = tpu.matmul %525, %526, %cst_230 {dimension_numbers = #tpu.dot_dimension_numbers<[1], [0], [0], [1], [0, 0, 1, 1], [], []>} : vector<9x128xf32>, vector<128x32xf32>, vector<9x32xf32> -> vector<9x32xf32>
    %528 = arith.addf %488, %527 : vector<9x32xf32>
    %c7_231 = arith.constant 7 : index
    %c0_232 = arith.constant 0 : index
    %529 = vector.load %arg3[%c7_231, %c0_232] : memref<19x128xf32, #tpu.memory_space<vmem>>, vector<1x32xf32>
    %530 = vector.broadcast %529 : vector<1x32xf32> to vector<9x32xf32>
    %531 = arith.addf %528, %530 : vector<9x32xf32>
    %c8_233 = arith.constant 8 : index
    %c0_234 = arith.constant 0 : index
    %532 = vector.load %arg3[%c8_233, %c0_234] : memref<19x128xf32, #tpu.memory_space<vmem>>, vector<1x32xf32>
    %c9_235 = arith.constant 9 : index
    %c0_236 = arith.constant 0 : index
    %533 = vector.load %arg3[%c9_235, %c0_236] : memref<19x128xf32, #tpu.memory_space<vmem>>, vector<1x32xf32>
    %cst_237 = arith.constant dense<0.000000e+00> : vector<9xf32>
    %534 = vector.multi_reduction <add>, %531, %cst_237 [1] : vector<9x32xf32> to vector<9xf32>
    %535 = vector.shape_cast %534 : vector<9xf32> to vector<9x1xf32>
    %cst_238 = arith.constant 3.200000e+01 : f32
    %536 = vector.broadcast %cst_238 : f32 to vector<9x1xf32>
    %537 = arith.divf %535, %536 : vector<9x1xf32>
    %538 = vector.broadcast %537 : vector<9x1xf32> to vector<9x32xf32>
    %539 = arith.subf %531, %538 : vector<9x32xf32>
    %540 = arith.mulf %539, %539 : vector<9x32xf32>
    %cst_239 = arith.constant dense<0.000000e+00> : vector<9xf32>
    %541 = vector.multi_reduction <add>, %540, %cst_239 [1] : vector<9x32xf32> to vector<9xf32>
    %542 = vector.shape_cast %541 : vector<9xf32> to vector<9x1xf32>
    %cst_240 = arith.constant 3.200000e+01 : f32
    %543 = vector.broadcast %cst_240 : f32 to vector<9x1xf32>
    %544 = arith.divf %542, %543 : vector<9x1xf32>
    %545 = vector.broadcast %537 : vector<9x1xf32> to vector<9x32xf32>
    %546 = arith.subf %531, %545 : vector<9x32xf32>
    %cst_241 = arith.constant 9.99999996E-13 : f32
    %547 = vector.broadcast %cst_241 : f32 to vector<9x1xf32>
    %548 = arith.addf %544, %547 : vector<9x1xf32>
    %549 = math.rsqrt %548 : vector<9x1xf32>
    %550 = vector.broadcast %549 : vector<9x1xf32> to vector<9x32xf32>
    %551 = arith.mulf %546, %550 : vector<9x32xf32>
    %552 = vector.broadcast %532 : vector<1x32xf32> to vector<9x32xf32>
    %553 = arith.mulf %551, %552 : vector<9x32xf32>
    %554 = vector.broadcast %533 : vector<1x32xf32> to vector<9x32xf32>
    %555 = arith.addf %553, %554 : vector<9x32xf32>
    %c0_242 = arith.constant 0 : index
    %c0_243 = arith.constant 0 : index
    %556 = vector.load %arg9[%c0_242, %c0_243] : memref<32x96xf32, #tpu.memory_space<vmem>>, vector<32x96xf32>
    %cst_244 = arith.constant dense<0.000000e+00> : vector<9x96xf32>
    %557 = tpu.matmul %555, %556, %cst_244 {dimension_numbers = #tpu.dot_dimension_numbers<[1], [0], [0], [1], [0, 0, 1, 1], [], []>} : vector<9x32xf32>, vector<32x96xf32>, vector<9x96xf32> -> vector<9x96xf32>
    %c10_245 = arith.constant 10 : index
    %c0_246 = arith.constant 0 : index
    %558 = vector.load %arg3[%c10_245, %c0_246] : memref<19x128xf32, #tpu.memory_space<vmem>>, vector<1x96xf32>
    %559 = vector.broadcast %558 : vector<1x96xf32> to vector<9x96xf32>
    %560 = arith.addf %557, %559 : vector<9x96xf32>
    %561 = vector.extract_strided_slice %560 {offsets = [0, 0], sizes = [9, 8], strides = [1, 1]} : vector<9x96xf32> to vector<9x8xf32>
    %562 = vector.extract_strided_slice %560 {offsets = [0, 32], sizes = [9, 8], strides = [1, 1]} : vector<9x96xf32> to vector<9x8xf32>
    %563 = vector.extract_strided_slice %560 {offsets = [0, 64], sizes = [9, 8], strides = [1, 1]} : vector<9x96xf32> to vector<9x8xf32>
    %cst_247 = arith.constant dense<0.000000e+00> : vector<9x9xf32>
    %564 = tpu.matmul %561, %562, %cst_247 {dimension_numbers = #tpu.dot_dimension_numbers<[1], [1], [0], [0], [0, 0, 1, 0], [], []>} : vector<9x8xf32>, vector<9x8xf32>, vector<9x9xf32> -> vector<9x9xf32>
    %cst_248 = arith.constant 0.353553385 : f32
    %565 = vector.broadcast %cst_248 : f32 to vector<9x9xf32>
    %566 = arith.mulf %564, %565 : vector<9x9xf32>
    %cst_249 = arith.constant dense<0xFF800000> : vector<9xf32>
    %567 = vector.multi_reduction <maximumf>, %566, %cst_249 [1] : vector<9x9xf32> to vector<9xf32>
    %568 = vector.shape_cast %567 : vector<9xf32> to vector<9x1xf32>
    %569 = vector.broadcast %568 : vector<9x1xf32> to vector<9x9xf32>
    %570 = arith.subf %566, %569 : vector<9x9xf32>
    %571 = math.exp %570 : vector<9x9xf32>
    %cst_250 = arith.constant dense<0.000000e+00> : vector<9xf32>
    %572 = vector.multi_reduction <add>, %571, %cst_250 [1] : vector<9x9xf32> to vector<9xf32>
    %573 = vector.shape_cast %572 : vector<9xf32> to vector<9x1xf32>
    %574 = tpu.reciprocal %573 {approx = true} : vector<9x1xf32> -> vector<9x1xf32>
    %575 = vector.broadcast %574 : vector<9x1xf32> to vector<9x9xf32>
    %576 = arith.mulf %571, %575 : vector<9x9xf32>
    %cst_251 = arith.constant dense<0.000000e+00> : vector<9x8xf32>
    %577 = tpu.matmul %576, %563, %cst_251 {dimension_numbers = #tpu.dot_dimension_numbers<[1], [0], [0], [1], [0, 0, 1, 1], [], []>} : vector<9x9xf32>, vector<9x8xf32>, vector<9x8xf32> -> vector<9x8xf32>
    %c0_252 = arith.constant 0 : index
    %c0_253 = arith.constant 0 : index
    %578 = vector.load %arg10[%c0_252, %c0_253] : memref<32x32xf32, #tpu.memory_space<vmem>>, vector<8x32xf32>
    %cst_254 = arith.constant dense<0.000000e+00> : vector<9x32xf32>
    %579 = tpu.matmul %577, %578, %cst_254 {dimension_numbers = #tpu.dot_dimension_numbers<[1], [0], [0], [1], [0, 0, 1, 1], [], []>} : vector<9x8xf32>, vector<8x32xf32>, vector<9x32xf32> -> vector<9x32xf32>
    %580 = vector.extract_strided_slice %560 {offsets = [0, 8], sizes = [9, 8], strides = [1, 1]} : vector<9x96xf32> to vector<9x8xf32>
    %581 = vector.extract_strided_slice %560 {offsets = [0, 40], sizes = [9, 8], strides = [1, 1]} : vector<9x96xf32> to vector<9x8xf32>
    %582 = vector.extract_strided_slice %560 {offsets = [0, 72], sizes = [9, 8], strides = [1, 1]} : vector<9x96xf32> to vector<9x8xf32>
    %cst_255 = arith.constant dense<0.000000e+00> : vector<9x9xf32>
    %583 = tpu.matmul %580, %581, %cst_255 {dimension_numbers = #tpu.dot_dimension_numbers<[1], [1], [0], [0], [0, 0, 1, 0], [], []>} : vector<9x8xf32>, vector<9x8xf32>, vector<9x9xf32> -> vector<9x9xf32>
    %cst_256 = arith.constant 0.353553385 : f32
    %584 = vector.broadcast %cst_256 : f32 to vector<9x9xf32>
    %585 = arith.mulf %583, %584 : vector<9x9xf32>
    %cst_257 = arith.constant dense<0xFF800000> : vector<9xf32>
    %586 = vector.multi_reduction <maximumf>, %585, %cst_257 [1] : vector<9x9xf32> to vector<9xf32>
    %587 = vector.shape_cast %586 : vector<9xf32> to vector<9x1xf32>
    %588 = vector.broadcast %587 : vector<9x1xf32> to vector<9x9xf32>
    %589 = arith.subf %585, %588 : vector<9x9xf32>
    %590 = math.exp %589 : vector<9x9xf32>
    %cst_258 = arith.constant dense<0.000000e+00> : vector<9xf32>
    %591 = vector.multi_reduction <add>, %590, %cst_258 [1] : vector<9x9xf32> to vector<9xf32>
    %592 = vector.shape_cast %591 : vector<9xf32> to vector<9x1xf32>
    %593 = tpu.reciprocal %592 {approx = true} : vector<9x1xf32> -> vector<9x1xf32>
    %594 = vector.broadcast %593 : vector<9x1xf32> to vector<9x9xf32>
    %595 = arith.mulf %590, %594 : vector<9x9xf32>
    %cst_259 = arith.constant dense<0.000000e+00> : vector<9x8xf32>
    %596 = tpu.matmul %595, %582, %cst_259 {dimension_numbers = #tpu.dot_dimension_numbers<[1], [0], [0], [1], [0, 0, 1, 1], [], []>} : vector<9x9xf32>, vector<9x8xf32>, vector<9x8xf32> -> vector<9x8xf32>
    %c8_260 = arith.constant 8 : index
    %c0_261 = arith.constant 0 : index
    %597 = vector.load %arg10[%c8_260, %c0_261] : memref<32x32xf32, #tpu.memory_space<vmem>>, vector<8x32xf32>
    %cst_262 = arith.constant dense<0.000000e+00> : vector<9x32xf32>
    %598 = tpu.matmul %596, %597, %cst_262 {dimension_numbers = #tpu.dot_dimension_numbers<[1], [0], [0], [1], [0, 0, 1, 1], [], []>} : vector<9x8xf32>, vector<8x32xf32>, vector<9x32xf32> -> vector<9x32xf32>
    %599 = arith.addf %579, %598 : vector<9x32xf32>
    %600 = vector.extract_strided_slice %560 {offsets = [0, 16], sizes = [9, 8], strides = [1, 1]} : vector<9x96xf32> to vector<9x8xf32>
    %601 = vector.extract_strided_slice %560 {offsets = [0, 48], sizes = [9, 8], strides = [1, 1]} : vector<9x96xf32> to vector<9x8xf32>
    %602 = vector.extract_strided_slice %560 {offsets = [0, 80], sizes = [9, 8], strides = [1, 1]} : vector<9x96xf32> to vector<9x8xf32>
    %cst_263 = arith.constant dense<0.000000e+00> : vector<9x9xf32>
    %603 = tpu.matmul %600, %601, %cst_263 {dimension_numbers = #tpu.dot_dimension_numbers<[1], [1], [0], [0], [0, 0, 1, 0], [], []>} : vector<9x8xf32>, vector<9x8xf32>, vector<9x9xf32> -> vector<9x9xf32>
    %cst_264 = arith.constant 0.353553385 : f32
    %604 = vector.broadcast %cst_264 : f32 to vector<9x9xf32>
    %605 = arith.mulf %603, %604 : vector<9x9xf32>
    %cst_265 = arith.constant dense<0xFF800000> : vector<9xf32>
    %606 = vector.multi_reduction <maximumf>, %605, %cst_265 [1] : vector<9x9xf32> to vector<9xf32>
    %607 = vector.shape_cast %606 : vector<9xf32> to vector<9x1xf32>
    %608 = vector.broadcast %607 : vector<9x1xf32> to vector<9x9xf32>
    %609 = arith.subf %605, %608 : vector<9x9xf32>
    %610 = math.exp %609 : vector<9x9xf32>
    %cst_266 = arith.constant dense<0.000000e+00> : vector<9xf32>
    %611 = vector.multi_reduction <add>, %610, %cst_266 [1] : vector<9x9xf32> to vector<9xf32>
    %612 = vector.shape_cast %611 : vector<9xf32> to vector<9x1xf32>
    %613 = tpu.reciprocal %612 {approx = true} : vector<9x1xf32> -> vector<9x1xf32>
    %614 = vector.broadcast %613 : vector<9x1xf32> to vector<9x9xf32>
    %615 = arith.mulf %610, %614 : vector<9x9xf32>
    %cst_267 = arith.constant dense<0.000000e+00> : vector<9x8xf32>
    %616 = tpu.matmul %615, %602, %cst_267 {dimension_numbers = #tpu.dot_dimension_numbers<[1], [0], [0], [1], [0, 0, 1, 1], [], []>} : vector<9x9xf32>, vector<9x8xf32>, vector<9x8xf32> -> vector<9x8xf32>
    %c16_268 = arith.constant 16 : index
    %c0_269 = arith.constant 0 : index
    %617 = vector.load %arg10[%c16_268, %c0_269] : memref<32x32xf32, #tpu.memory_space<vmem>>, vector<8x32xf32>
    %cst_270 = arith.constant dense<0.000000e+00> : vector<9x32xf32>
    %618 = tpu.matmul %616, %617, %cst_270 {dimension_numbers = #tpu.dot_dimension_numbers<[1], [0], [0], [1], [0, 0, 1, 1], [], []>} : vector<9x8xf32>, vector<8x32xf32>, vector<9x32xf32> -> vector<9x32xf32>
    %619 = arith.addf %599, %618 : vector<9x32xf32>
    %620 = vector.extract_strided_slice %560 {offsets = [0, 24], sizes = [9, 8], strides = [1, 1]} : vector<9x96xf32> to vector<9x8xf32>
    %621 = vector.extract_strided_slice %560 {offsets = [0, 56], sizes = [9, 8], strides = [1, 1]} : vector<9x96xf32> to vector<9x8xf32>
    %622 = vector.extract_strided_slice %560 {offsets = [0, 88], sizes = [9, 8], strides = [1, 1]} : vector<9x96xf32> to vector<9x8xf32>
    %cst_271 = arith.constant dense<0.000000e+00> : vector<9x9xf32>
    %623 = tpu.matmul %620, %621, %cst_271 {dimension_numbers = #tpu.dot_dimension_numbers<[1], [1], [0], [0], [0, 0, 1, 0], [], []>} : vector<9x8xf32>, vector<9x8xf32>, vector<9x9xf32> -> vector<9x9xf32>
    %cst_272 = arith.constant 0.353553385 : f32
    %624 = vector.broadcast %cst_272 : f32 to vector<9x9xf32>
    %625 = arith.mulf %623, %624 : vector<9x9xf32>
    %cst_273 = arith.constant dense<0xFF800000> : vector<9xf32>
    %626 = vector.multi_reduction <maximumf>, %625, %cst_273 [1] : vector<9x9xf32> to vector<9xf32>
    %627 = vector.shape_cast %626 : vector<9xf32> to vector<9x1xf32>
    %628 = vector.broadcast %627 : vector<9x1xf32> to vector<9x9xf32>
    %629 = arith.subf %625, %628 : vector<9x9xf32>
    %630 = math.exp %629 : vector<9x9xf32>
    %cst_274 = arith.constant dense<0.000000e+00> : vector<9xf32>
    %631 = vector.multi_reduction <add>, %630, %cst_274 [1] : vector<9x9xf32> to vector<9xf32>
    %632 = vector.shape_cast %631 : vector<9xf32> to vector<9x1xf32>
    %633 = tpu.reciprocal %632 {approx = true} : vector<9x1xf32> -> vector<9x1xf32>
    %634 = vector.broadcast %633 : vector<9x1xf32> to vector<9x9xf32>
    %635 = arith.mulf %630, %634 : vector<9x9xf32>
    %cst_275 = arith.constant dense<0.000000e+00> : vector<9x8xf32>
    %636 = tpu.matmul %635, %622, %cst_275 {dimension_numbers = #tpu.dot_dimension_numbers<[1], [0], [0], [1], [0, 0, 1, 1], [], []>} : vector<9x9xf32>, vector<9x8xf32>, vector<9x8xf32> -> vector<9x8xf32>
    %c24_276 = arith.constant 24 : index
    %c0_277 = arith.constant 0 : index
    %637 = vector.load %arg10[%c24_276, %c0_277] : memref<32x32xf32, #tpu.memory_space<vmem>>, vector<8x32xf32>
    %cst_278 = arith.constant dense<0.000000e+00> : vector<9x32xf32>
    %638 = tpu.matmul %636, %637, %cst_278 {dimension_numbers = #tpu.dot_dimension_numbers<[1], [0], [0], [1], [0, 0, 1, 1], [], []>} : vector<9x8xf32>, vector<8x32xf32>, vector<9x32xf32> -> vector<9x32xf32>
    %639 = arith.addf %619, %638 : vector<9x32xf32>
    %640 = arith.addf %531, %639 : vector<9x32xf32>
    %c11_279 = arith.constant 11 : index
    %c0_280 = arith.constant 0 : index
    %641 = vector.load %arg3[%c11_279, %c0_280] : memref<19x128xf32, #tpu.memory_space<vmem>>, vector<1x32xf32>
    %642 = vector.broadcast %641 : vector<1x32xf32> to vector<9x32xf32>
    %643 = arith.addf %640, %642 : vector<9x32xf32>
    %c12_281 = arith.constant 12 : index
    %c0_282 = arith.constant 0 : index
    %644 = vector.load %arg3[%c12_281, %c0_282] : memref<19x128xf32, #tpu.memory_space<vmem>>, vector<1x32xf32>
    %c13_283 = arith.constant 13 : index
    %c0_284 = arith.constant 0 : index
    %645 = vector.load %arg3[%c13_283, %c0_284] : memref<19x128xf32, #tpu.memory_space<vmem>>, vector<1x32xf32>
    %cst_285 = arith.constant dense<0.000000e+00> : vector<9xf32>
    %646 = vector.multi_reduction <add>, %643, %cst_285 [1] : vector<9x32xf32> to vector<9xf32>
    %647 = vector.shape_cast %646 : vector<9xf32> to vector<9x1xf32>
    %cst_286 = arith.constant 3.200000e+01 : f32
    %648 = vector.broadcast %cst_286 : f32 to vector<9x1xf32>
    %649 = arith.divf %647, %648 : vector<9x1xf32>
    %650 = vector.broadcast %649 : vector<9x1xf32> to vector<9x32xf32>
    %651 = arith.subf %643, %650 : vector<9x32xf32>
    %652 = arith.mulf %651, %651 : vector<9x32xf32>
    %cst_287 = arith.constant dense<0.000000e+00> : vector<9xf32>
    %653 = vector.multi_reduction <add>, %652, %cst_287 [1] : vector<9x32xf32> to vector<9xf32>
    %654 = vector.shape_cast %653 : vector<9xf32> to vector<9x1xf32>
    %cst_288 = arith.constant 3.200000e+01 : f32
    %655 = vector.broadcast %cst_288 : f32 to vector<9x1xf32>
    %656 = arith.divf %654, %655 : vector<9x1xf32>
    %657 = vector.broadcast %649 : vector<9x1xf32> to vector<9x32xf32>
    %658 = arith.subf %643, %657 : vector<9x32xf32>
    %cst_289 = arith.constant 9.99999996E-13 : f32
    %659 = vector.broadcast %cst_289 : f32 to vector<9x1xf32>
    %660 = arith.addf %656, %659 : vector<9x1xf32>
    %661 = math.rsqrt %660 : vector<9x1xf32>
    %662 = vector.broadcast %661 : vector<9x1xf32> to vector<9x32xf32>
    %663 = arith.mulf %658, %662 : vector<9x32xf32>
    %664 = vector.broadcast %644 : vector<1x32xf32> to vector<9x32xf32>
    %665 = arith.mulf %663, %664 : vector<9x32xf32>
    %666 = vector.broadcast %645 : vector<1x32xf32> to vector<9x32xf32>
    %667 = arith.addf %665, %666 : vector<9x32xf32>
    %c0_290 = arith.constant 0 : index
    %c0_291 = arith.constant 0 : index
    %668 = vector.load %arg11[%c0_290, %c0_291] : memref<32x128xf32, #tpu.memory_space<vmem>>, vector<32x128xf32>
    %cst_292 = arith.constant dense<0.000000e+00> : vector<9x128xf32>
    %669 = tpu.matmul %667, %668, %cst_292 {dimension_numbers = #tpu.dot_dimension_numbers<[1], [0], [0], [1], [0, 0, 1, 1], [], []>} : vector<9x32xf32>, vector<32x128xf32>, vector<9x128xf32> -> vector<9x128xf32>
    %c14_293 = arith.constant 14 : index
    %c0_294 = arith.constant 0 : index
    %670 = vector.load %arg3[%c14_293, %c0_294] : memref<19x128xf32, #tpu.memory_space<vmem>>, vector<1x128xf32>
    %671 = vector.broadcast %670 : vector<1x128xf32> to vector<9x128xf32>
    %672 = arith.addf %669, %671 : vector<9x128xf32>
    %cst_295 = arith.constant 5.000000e-01 : f32
    %673 = vector.broadcast %cst_295 : f32 to vector<9x128xf32>
    %674 = arith.mulf %673, %672 : vector<9x128xf32>
    %cst_296 = arith.constant 0.707106769 : f32
    %675 = vector.broadcast %cst_296 : f32 to vector<9x128xf32>
    %676 = arith.mulf %672, %675 : vector<9x128xf32>
    %677 = math.erf %676 : vector<9x128xf32>
    %cst_297 = arith.constant 1.000000e+00 : f32
    %678 = vector.broadcast %cst_297 : f32 to vector<9x128xf32>
    %679 = arith.addf %678, %677 : vector<9x128xf32>
    %680 = arith.mulf %674, %679 : vector<9x128xf32>
    %c0_298 = arith.constant 0 : index
    %c0_299 = arith.constant 0 : index
    %681 = vector.load %arg12[%c0_298, %c0_299] : memref<128x32xf32, #tpu.memory_space<vmem>>, vector<128x32xf32>
    %cst_300 = arith.constant dense<0.000000e+00> : vector<9x32xf32>
    %682 = tpu.matmul %680, %681, %cst_300 {dimension_numbers = #tpu.dot_dimension_numbers<[1], [0], [0], [1], [0, 0, 1, 1], [], []>} : vector<9x128xf32>, vector<128x32xf32>, vector<9x32xf32> -> vector<9x32xf32>
    %683 = arith.addf %643, %682 : vector<9x32xf32>
    %c15_301 = arith.constant 15 : index
    %c0_302 = arith.constant 0 : index
    %684 = vector.load %arg3[%c15_301, %c0_302] : memref<19x128xf32, #tpu.memory_space<vmem>>, vector<1x32xf32>
    %685 = vector.broadcast %684 : vector<1x32xf32> to vector<9x32xf32>
    %686 = arith.addf %683, %685 : vector<9x32xf32>
    %c16_303 = arith.constant 16 : index
    %c0_304 = arith.constant 0 : index
    %687 = vector.load %arg3[%c16_303, %c0_304] : memref<19x128xf32, #tpu.memory_space<vmem>>, vector<1x32xf32>
    %c17_305 = arith.constant 17 : index
    %c0_306 = arith.constant 0 : index
    %688 = vector.load %arg3[%c17_305, %c0_306] : memref<19x128xf32, #tpu.memory_space<vmem>>, vector<1x32xf32>
    %cst_307 = arith.constant dense<0.000000e+00> : vector<9xf32>
    %689 = vector.multi_reduction <add>, %686, %cst_307 [1] : vector<9x32xf32> to vector<9xf32>
    %690 = vector.shape_cast %689 : vector<9xf32> to vector<9x1xf32>
    %cst_308 = arith.constant 3.200000e+01 : f32
    %691 = vector.broadcast %cst_308 : f32 to vector<9x1xf32>
    %692 = arith.divf %690, %691 : vector<9x1xf32>
    %693 = vector.broadcast %692 : vector<9x1xf32> to vector<9x32xf32>
    %694 = arith.subf %686, %693 : vector<9x32xf32>
    %695 = arith.mulf %694, %694 : vector<9x32xf32>
    %cst_309 = arith.constant dense<0.000000e+00> : vector<9xf32>
    %696 = vector.multi_reduction <add>, %695, %cst_309 [1] : vector<9x32xf32> to vector<9xf32>
    %697 = vector.shape_cast %696 : vector<9xf32> to vector<9x1xf32>
    %cst_310 = arith.constant 3.200000e+01 : f32
    %698 = vector.broadcast %cst_310 : f32 to vector<9x1xf32>
    %699 = arith.divf %697, %698 : vector<9x1xf32>
    %700 = vector.broadcast %692 : vector<9x1xf32> to vector<9x32xf32>
    %701 = arith.subf %686, %700 : vector<9x32xf32>
    %cst_311 = arith.constant 9.99999996E-13 : f32
    %702 = vector.broadcast %cst_311 : f32 to vector<9x1xf32>
    %703 = arith.addf %699, %702 : vector<9x1xf32>
    %704 = math.rsqrt %703 : vector<9x1xf32>
    %705 = vector.broadcast %704 : vector<9x1xf32> to vector<9x32xf32>
    %706 = arith.mulf %701, %705 : vector<9x32xf32>
    %707 = vector.broadcast %687 : vector<1x32xf32> to vector<9x32xf32>
    %708 = arith.mulf %706, %707 : vector<9x32xf32>
    %709 = vector.broadcast %688 : vector<1x32xf32> to vector<9x32xf32>
    %710 = arith.addf %708, %709 : vector<9x32xf32>
    %711 = vector.extract_strided_slice %710 {offsets = [0, 0], sizes = [1, 32], strides = [1, 1]} : vector<9x32xf32> to vector<1x32xf32>
    %cst_312 = arith.constant dense<0.000000e+00> : vector<32xf32>
    %712 = vector.multi_reduction <add>, %710, %cst_312 [0] : vector<9x32xf32> to vector<32xf32>
    %713 = vector.shape_cast %712 : vector<32xf32> to vector<1x32xf32>
    %714 = arith.subf %713, %711 : vector<1x32xf32>
    %cst_313 = arith.constant 1.250000e-01 : f32
    %715 = vector.broadcast %cst_313 : f32 to vector<1x32xf32>
    %716 = arith.mulf %714, %715 : vector<1x32xf32>
    %c0_314 = arith.constant 0 : index
    %c0_315 = arith.constant 0 : index
    %717 = vector.load %arg13[%c0_314, %c0_315] : memref<64x128xf32, #tpu.memory_space<vmem>>, vector<32x128xf32>
    %cst_316 = arith.constant dense<0.000000e+00> : vector<1x128xf32>
    %718 = tpu.matmul %711, %717, %cst_316 {dimension_numbers = #tpu.dot_dimension_numbers<[1], [0], [0], [1], [0, 0, 1, 1], [], []>} : vector<1x32xf32>, vector<32x128xf32>, vector<1x128xf32> -> vector<1x128xf32>
    %c32_317 = arith.constant 32 : index
    %c0_318 = arith.constant 0 : index
    %719 = vector.load %arg13[%c32_317, %c0_318] : memref<64x128xf32, #tpu.memory_space<vmem>>, vector<32x128xf32>
    %cst_319 = arith.constant dense<0.000000e+00> : vector<1x128xf32>
    %720 = tpu.matmul %716, %719, %cst_319 {dimension_numbers = #tpu.dot_dimension_numbers<[1], [0], [0], [1], [0, 0, 1, 1], [], []>} : vector<1x32xf32>, vector<32x128xf32>, vector<1x128xf32> -> vector<1x128xf32>
    %721 = arith.addf %718, %720 : vector<1x128xf32>
    %c18_320 = arith.constant 18 : index
    %c0_321 = arith.constant 0 : index
    %722 = vector.load %arg3[%c18_320, %c0_321] : memref<19x128xf32, #tpu.memory_space<vmem>>, vector<1x128xf32>
    %723 = arith.addf %721, %722 : vector<1x128xf32>
    %cst_322 = arith.constant dense<0xFF800000> : vector<1xf32>
    %724 = vector.multi_reduction <maximumf>, %723, %cst_322 [1] : vector<1x128xf32> to vector<1xf32>
    %725 = vector.shape_cast %724 : vector<1xf32> to vector<1x1xf32>
    %726 = vector.broadcast %725 : vector<1x1xf32> to vector<1x128xf32>
    %727 = arith.subf %723, %726 : vector<1x128xf32>
    %728 = math.exp %727 : vector<1x128xf32>
    %cst_323 = arith.constant dense<0.000000e+00> : vector<1xf32>
    %729 = vector.multi_reduction <add>, %728, %cst_323 [1] : vector<1x128xf32> to vector<1xf32>
    %730 = vector.shape_cast %729 : vector<1xf32> to vector<1x1xf32>
    %731 = tpu.reciprocal %730 {approx = true} : vector<1x1xf32> -> vector<1x1xf32>
    %732 = vector.broadcast %731 : vector<1x1xf32> to vector<1x128xf32>
    %733 = arith.mulf %728, %732 : vector<1x128xf32>
    %c1_324 = arith.constant 1 : index
    %c0_325 = arith.constant 0 : index
    %734 = vector.load %arg14[%c1_324, %c0_325] : memref<2x128xf32, #tpu.memory_space<vmem>>, vector<1x128xf32>
    tpu.vector_store %arg14[%c1_324, %c0_325], %733 {strides = array<i32>} : memref<2x128xf32, #tpu.memory_space<vmem>>, vector<1x128xf32>,
    return
  }
}

</mosaic_0001>

<bundles_post_ra>
// kernel: model_forward.1
= control target key start
LH: loop header
LB: loop body
LE: loop exit
PB: predicated region body
PF: predicated region fallthrough
CT: control target
= control target key end

     0   :  { %vm56_vm0 = vcmask 392192   ;;  %s5603_s0 = inlined_call_operand.vmem [shape: f32[2,9,48], index: 0, kind: input, shape index: {}]   ;;  %s5604_s1 = inlined_call_operand.vmem [shape: f32[2,9,32], index: 1, kind: input, shape index: {}]   ;;  %s5605_s2 = inlined_call_operand.vmem [shape: f32[2,9,32], index: 2, kind: input, shape index: {}]   ;;  %s5606_s3 = inlined_call_operand.vmem [shape: f32[19,128], index: 3, kind: input, shape index: {}]   ;;  %s5607_s4 = inlined_call_operand.vmem [shape: f32[48,32], index: 4, kind: input, shape index: {}]   ;;  %s5608_s5 = inlined_call_operand.vmem [shape: f32[32,96], index: 5, kind: input, shape index: {}]   ;;  %s5609_s6 = inlined_call_operand.vmem [shape: f32[32,32], index: 6, kind: input, shape index: {}]   ;;  %s5610_s7 = inlined_call_operand.vmem [shape: f32[32,128], index: 7, kind: input, shape index: {}]   ;;  %s5611_s8 = inlined_call_operand.vmem [shape: f32[128,32], index: 8, kind: input, shape index: {}]   ;;  %s5612_s9 = inlined_call_operand.vmem [shape: f32[32,96], index: 9, kind: input, shape index: {}]   ;;  %s5613_s10 = inlined_call_operand.vmem [shape: f32[32,32], index: 10, kind: input, shape index: {}]   ;;  %s5614_s11 = inlined_call_operand.vmem [shape: f32[32,128], index: 11, kind: input, shape index: {}]   ;;  %s5615_s12 = inlined_call_operand.vmem [shape: f32[128,32], index: 12, kind: input, shape index: {}]   ;;  %s5616_s13 = inlined_call_operand.vmem [shape: f32[64,128], index: 13, kind: input, shape index: {}]   ;;  %s5617_s14 = inlined_call_operand.hbm [shape: f32[2,128], index: 14, kind: output, shape index: {}]  }
   0x1   :  { %v53_v0 = vld [vmem:[%s5607_s4 + $0x28] sm:$0xff]  ;;  %v52_v1 = vld [vmem:[%s5607_s4 + $0x20] sm:$0xff]  ;;  %v51_v2 = vld [vmem:[%s5607_s4 + $0x18] sm:$0xff] }
   0x2   :  { %73 = vmatpush.msra.mxu0 %v53_v0  ;;  %v50_v3 = vld [vmem:[%s5607_s4 + $0x10] sm:$0xff]  ;;  %v49_v4 = vld [vmem:[%s5607_s4 + $0x8] sm:$0xff]  ;;  %v48_v5 = vld [vmem:[%s5607_s4] sm:$0xff] }
   0x3   :  { %v54_v6 = vld [vmem:[%s5603_s0] sm:$0xff] }
   0x4   :  { %74 = vmatpush.msra.mxu0 %v52_v1 }
   0x6   :  { %75 = vmatpush.msra.mxu0 %v51_v2 }
   0x8   :  { %76 = vmatpush.msra.mxu0 %v50_v3 }
   0xa   :  { %77 = vmatpush.msra.mxu0 %v49_v4 }
   0xc   :  { %78 = vmatpush.msra.mxu0 %v48_v5 }
   0xd   :  { %3751 = vmatmul.msk.f32.vlgmr.msra.gmra.mxu0 %vm56_vm0, %v54_v6 }
   0xe   :  { %19 = vsyncpa [#allocation3], 0  ;;  %v55_v7 = vld [vmem:[%s5603_s0 + $0x8] sm:$0x1]  ;;  %v86_v8 = vld [vmem:[%s5604_s1] sm:$0xff]  ;;  %vm96_vm1 = vcmask 261120  }
   0xf   :  { %v90_v10 = vld [vmem:[%s5605_s2] sm:$0xff]  ;;  %v87_v14 = vld [vmem:[%s5604_s1 + $0x8] sm:$0x1]  ;;  %vm100_vm2 = vcmask 253952   ;;  %v4210_v20 = vmov 32.0   ;;  %v158_v37 = vld [vmem:[%s5608_s5 + $0x18] sm:$0xff] }
  0x10   :  { %v91_v16 = vld [vmem:[%s5605_s2 + $0x8] sm:$0x1]  ;;  %3984 = vrcp.f32 %v4210_v20  ;;  %179 = vmatpush.msra.mxu1 %v158_v37  ;;  %v157_v38 = vld [vmem:[%s5608_s5 + $0x10] sm:$0xff]  ;;  %v155_v40 = vld [vmem:[%s5608_s5] sm:$0xff]  ;;  %s4211_s19 = smov 96   ;;  %vm196_vm10 = vcmask 64512  }
  0x11   :  { %v156_v39 = vld [vmem:[%s5608_s5 + $0x8] sm:$0xff]  ;;  %v3948_v55 = vld [vmem:[%s5606_s3] ss:$0 sm:$0xff]  ;;  %v3949_v59 = vld [vmem:[%s5606_s3 + $0x1] ss:$0 sm:$0xff]  ;;  %vm230_vm11 = vcmask 72704  }
  0x12   :  { %180 = vmatpush.msra.mxu1 %v157_v38  ;;  %v3950_v6 = vld [vmem:[%s5606_s3 + $0x2] ss:$0 sm:$0xff]  ;;  %vm234_vm12 = vcmask 65536   ;;  %s5636_s20 = smov 64   ;;  %s5634_s21 = smov 88   ;;  %vm265_vm13 = vcmask 1040384  }
  0x13   :  { %s5628_s22 = smov 80   ;;  %s5630_s23 = smov 112  }
  0x14   :  { %181 = vmatpush.msra.mxu1 %v156_v39  ;;  %s5626_s24 = smov 104   ;;  %s5632_s25 = smov 120  }
  0x15   :  { %3752 = vmatmul.msk.f32.gmra.mxu0 %vm56_vm0, %v55_v7  ;;  %s5624_s26 = smov 72   ;;  %s5622_s29 = smov 56  }
  0x16   :  { %v3985_v21 = vpop.eup %3984  ;;  %182 = vmatpush.msra.mxu1 %v155_v40  ;;  %v291_v40 = vld [vmem:[%s5609_s6] sm:$0xff]  ;;  %s5620_s30 = smov 48   ;;  %s5618_s15 = smov 40  }
  0x17   :  { %v105_v22 = vmul.f32 32.0, %v3985_v21  ;;  %vm109_vm3 = vweird.f32 %v3985_v21  ;;  %442 = vmatpush.msrb.mxu0 %v291_v40  ;;  %s5638_s28 = smov 104   ;;  %s5639_s16 = smov 72  }
  0x18   :  { %s5644_s27 = smov 88   ;;  %s5645_s17 = smov 120  }
  0x19   :  { %v106_v23 = vsub.f32 1.0, %v105_v22  ;;  %s5646_s18 = smov 112  }
  0x1b   :  { %v107_v24 = vmul.f32 %v3985_v21, %v106_v23 }
  0x1d   :  { %v108_v25 = vadd.f32 %v3985_v21, %v107_v24 }
  0x1f   :  { %v4344_v26 = vsel %vm109_vm3, %v3985_v21, %v108_v25 }
  0x8a   :  { %v80_v9 = vpop.f32.mrf.mxu0 }
  0x8b   :  { %v88_v11 = vmul.f32 %v86_v8, %v80_v9 }
  0x8d   :  { %v4330_v12 = vadd.f32 %v90_v10, %v88_v11 }
  0x8f   :  { %v97_v13 = vsel %vm96_vm1, %v4330_v12, 0.0 }
  0x90   :  { %98 = vadd.xlane.f32.xlu0 %v97_v13 }
  0x92   :  { %v83_v15 = vpop.f32.mrf.mxu0 }
  0x93   :  { %v89_v17 = vmul.f32 %v87_v14, %v83_v15 }
  0x95   :  { %v4340_v18 = vadd.f32 %v91_v16, %v89_v17 }
  0x97   :  { %v101_v19 = vsel %vm100_vm2, %v4340_v18, 0.0 }
  0x98   :  { %102 = vadd.xlane.f32.xlu0 %v101_v19 }
 0x103   :  { %v99_v27 = vpop.xlane.xlu0 %98 }
 0x104   :  { %v111_v28 = vmul.f32 %v4344_v26, %v99_v27 }
 0x106   :  { %v113_v29 = vsub.f32 %v4330_v12, %v111_v28 }
 0x108   :  { %v115_v30 = vmul.f32 %v113_v29, %v113_v29 }
 0x10a   :  { %v117_v31 = vsel %vm96_vm1, %v115_v30, 0.0 }
 0x10b   :  { %118 = vadd.xlane.f32.xlu1 %v117_v31  ;;  %v103_v32 = vpop.xlane.xlu0 %102 }
 0x10c   :  { %v112_v33 = vmul.f32 %v4344_v26, %v103_v32 }
 0x10e   :  { %v114_v34 = vsub.f32 %v4340_v18, %v112_v33 }
 0x110   :  { %v116_v35 = vmul.f32 %v114_v34, %v114_v34 }
 0x112   :  { %v120_v36 = vsel %vm100_vm2, %v116_v35, 0.0 }
 0x113   :  { %121 = vadd.xlane.f32.xlu1 %v120_v36 }
 0x17e   :  { %v119_v41 = vpop.xlane.xlu1 %118 }
 0x17f   :  { %v123_v42 = vmul.f32 %v119_v41, %v4344_v26 }
 0x181   :  { %v125_v43 = vadd.f32 1e-12, %v123_v42 }
 0x183   :  { %3986 = vrsqrt.f32 %v125_v43  ;;  %vm133_vm5 = vweird.f32 %v125_v43 }
 0x186   :  { %v122_v44 = vpop.xlane.xlu1 %121 }
 0x187   :  { %v124_v45 = vmul.f32 %v122_v44, %v4344_v26 }
 0x189   :  { %v3987_v46 = vpop.eup %3986  ;;  %v126_v47 = vadd.f32 1e-12, %v124_v45 }
 0x18a   :  { %v128_v48 = vmul.f32 %v3987_v46, %v125_v43  ;;  %vm134_vm4 = vweird.f32 %v3987_v46 }
 0x18b   :  { %3988 = vrsqrt.f32 %v126_v47  ;;  %vm135_vm6 = vmor %vm133_vm5, %vm134_vm4  ;;  %vm143_vm8 = vweird.f32 %v126_v47 }
 0x18c   :  { %v129_v49 = vmul.f32 %v3987_v46, %v128_v48 }
 0x18e   :  { %v130_v50 = vmul.f32 0.5, %v129_v49 }
 0x190   :  { %v131_v51 = vsub.f32 1.5, %v130_v50 }
 0x191   :  { %v3989_v52 = vpop.eup %3988 }
 0x192   :  { %v132_v53 = vmul.f32 %v3987_v46, %v131_v51  ;;  %v138_v54 = vmul.f32 %v3989_v52, %v126_v47  ;;  %vm144_vm7 = vweird.f32 %v3989_v52 }
 0x193   :  { %vm145_vm9 = vmor %vm143_vm8, %vm144_vm7 }
 0x194   :  { %v139_v56 = vmul.f32 %v3989_v52, %v138_v54  ;;  %v136_v57 = vsel %vm135_vm6, %v3987_v46, %v132_v53 }
 0x195   :  { %v147_v58 = vmul.f32 %v136_v57, %v113_v29 }
 0x196   :  { %v140_v60 = vmul.f32 0.5, %v139_v56 }
 0x197   :  { %v150_v61 = vmul.f32 %v3948_v55, %v147_v58 }
 0x198   :  { %v141_v62 = vsub.f32 1.5, %v140_v60 }
 0x199   :  { %v153_v63 = vadd.f32 %v3949_v59, %v150_v61 }
 0x19a   :  { %v142_v0 = vmul.f32 %v3989_v52, %v141_v62 }
 0x19b   :  { %3753 = vmatmul.msk.f32.vlgmr.msra.gmra.mxu1 %vm96_vm1, %v153_v63 }
 0x19c   :  { %v146_v1 = vsel %vm145_vm9, %v3989_v52, %v142_v0 }
 0x19d   :  { %v148_v2 = vmul.f32 %v146_v1, %v114_v34 }
 0x19f   :  { %v151_v3 = vmul.f32 %v3948_v55, %v148_v2 }
 0x1a1   :  { %v154_v4 = vadd.f32 %v3949_v59, %v151_v3 }
 0x1a3   :  { %3754 = vmatmul.msk.f32.gmra.mxu1 %vm96_vm1, %v154_v4 }
 0x218   :  { %v184_v5 = vpop.f32.mrf.mxu1 }
 0x219   :  { %v4381_v9 = vadd.f32 %v3950_v6, %v184_v5 }
 0x220   :  { %v187_v7 = vpop.f32.mrf.mxu1 }
 0x221   :  { %v4377_v8 = vadd.f32 %v3950_v6, %v187_v7 }
 0x223   :  { %194 = vrot.lane.b32.xlu2 %v4377_v8, %s4211_s19 }
 0x22b   :  { %192 = vrot.lane.b32.xlu2 %v4381_v9, %s4211_s19 }
 0x27d   :  { %v195_v10 = vpop.permute.xlu2 %194 }
 0x27e   :  { %3755 = vmatpush.xpose.msk.msrb.mxu1 %vm196_vm10, %v195_v10 }
 0x285   :  { %v193_v11 = vpop.permute.xlu2 %192 }
 0x286   :  { %3756 = vmatpush.xpose.msk.msrb.mxu1 %vm196_vm10, %v193_v11 }
 0x289   :  { %3757 = vmatmul.msk.f32.vlgmr.msrb.gmra.mxu1 %vm196_vm10, %v4381_v9 }
 0x291   :  { %3758 = vmatmul.msk.f32.gmra.mxu1 %vm196_vm10, %v4377_v8 }
 0x306   :  { %v222_v13 = vpop.f32.mrf.mxu1 }
 0x307   :  { %v228_v14 = vmul.f32 0.35355338, %v222_v13 }
 0x309   :  { %v231_v15 = vsel %vm230_vm11, %v228_v14, -inf }
 0x30a   :  { %232 = vmax.xlane.f32.xlu0 %v231_v15 }
 0x30e   :  { %v225_v16 = vpop.f32.mrf.mxu1 }
 0x30f   :  { %v229_v17 = vmul.f32 0.35355338, %v225_v16 }
 0x311   :  { %v235_v19 = vsel %vm234_vm12, %v229_v17, -inf }
 0x312   :  { %236 = vmax.xlane.f32.xlu1 %v235_v19 }
 0x31e   :  { %256 = vrot.lane.b32.xlu0 %v4377_v8, %s5636_s20 }
 0x326   :  { %298 = vrot.lane.b32.xlu0 %v4377_v8, %s5634_s21 }
 0x32b   :  { %254 = vrot.lane.b32.xlu1 %v4381_v9, %s5636_s20 }
 0x32e   :  { %296 = vrot.lane.b32.xlu0 %v4381_v9, %s5634_s21 }
 0x336   :  { %456 = vrot.lane.b32.xlu0 %v4377_v8, %s5628_s22 }
 0x33e   :  { %450 = vrot.lane.b32.xlu0 %v4381_v9, %s5630_s23 }
 0x346   :  { %452 = vrot.lane.b32.xlu0 %v4377_v8, %s5630_s23 }
 0x34e   :  { %583 = vrot.lane.b32.xlu0 %v4377_v8, %s5626_s24 }
 0x37d   :  { %v233_v20 = vpop.xlane.xlu0 %232 }
 0x37e   :  { %v238_v21 = vsub.f32 %v228_v14, %v233_v20 }
 0x380   :  { %v240_v22 = vmul.f32 1.442695, %v238_v21 }
 0x382   :  { %3990 = vpow2.f32 %v240_v22 }
 0x385   :  { %v237_v23 = vpop.xlane.xlu1 %236 }
 0x386   :  { %v239_v24 = vsub.f32 %v229_v17, %v237_v23 }
 0x388   :  { %v3991_v25 = vpop.eup %3990  ;;  %v242_v27 = vmul.f32 1.442695, %v239_v24 }
 0x389   :  { %v244_v28 = vsel %vm230_vm11, %v3991_v25, 0.0 }
 0x38a   :  { %3992 = vpow2.f32 %v242_v27  ;;  %245 = vadd.xlane.f32.xlu2 %v244_v28 }
 0x390   :  { %v3993_v29 = vpop.eup %3992  ;;  %v257_v30 = vpop.permute.xlu0 %256 }
 0x391   :  { %3759 = vmatpush.msk.msra.mxu3 %vm265_vm13, %v257_v30  ;;  %v247_v31 = vsel %vm234_vm12, %v3993_v29, 0.0 }
 0x392   :  { %248 = vadd.xlane.f32.xlu1 %v247_v31 }
 0x398   :  { %v299_v32 = vpop.permute.xlu0 %298 }
 0x39d   :  { %v255_v33 = vpop.permute.xlu1 %254 }
 0x39e   :  { %283 = vmatpush.msra.mxu3 %v255_v33 }
 0x3a0   :  { %3762 = vmatpush.xpose.msk.msrb.mxu3 %vm196_vm10, %v299_v32  ;;  %v297_v34 = vpop.permute.xlu0 %296 }
 0x3a2   :  { %294 = vrot.lane.b32.xlu2 %v4377_v8, %s5632_s25 }
 0x3a4   :  { %3763 = vmatpush.xpose.msk.msrb.mxu3 %vm196_vm10, %v297_v34 }
 0x3a8   :  { %v457_v39 = vpop.permute.xlu0 %456 }
 0x3aa   :  { %581 = vrot.lane.b32.xlu2 %v4381_v9, %s5626_s24  ;;  %s5641_s24 = smov 48  }
 0x3ab   :  { %292 = vrot.lane.b32.xlu1 %v4381_v9, %s5632_s25 }
 0x3b0   :  { %v451_v46 = vpop.permute.xlu0 %450 }
 0x3b3   :  { %454 = vrot.lane.b32.xlu1 %v4381_v9, %s5628_s22 }
 0x3b8   :  { %v453_v48 = vpop.permute.xlu0 %452 }
 0x3bb   :  { %587 = vrot.lane.b32.xlu1 %v4377_v8, %s5624_s26 }
 0x3c0   :  { %v584_v54 = vpop.permute.xlu0 %583 }
 0x3c3   :  { %585 = vrot.lane.b32.xlu1 %v4381_v9, %s5624_s26  ;;  %s5642_s26 = smov 40  }
 0x3fd   :  { %v246_v35 = vpop.xlane.xlu2 %245 }
 0x3fe   :  { %3994 = vrcp.f32 %v246_v35 }
 0x404   :  { %v3995_v36 = vpop.eup %3994 }
 0x405   :  { %v249_v37 = vpop.xlane.xlu1 %248  ;;  %v252_v38 = vmul.f32 %v3995_v36, %v3991_v25  ;;  %v295_v44 = vpop.permute.xlu2 %294  ;;  %v391_v25 = vld [vmem:[%s5609_s6 + $0x8] sm:$0xff] }
 0x406   :  { %3996 = vrcp.f32 %v249_v37  ;;  %413 = vmatpush.msra.mxu2 %v391_v25  ;;  %v3951_v25 = vld [vmem:[%s5606_s3 + $0x3] ss:$0 sm:$0xff] }
 0x407   :  { %3760 = vmatmul.msk.f32.vlgmr.msra.gmra.mxu3 %vm230_vm11, %v252_v38 }
 0x408   :  { %3773 = vmatpush.xpose.msk.msra.mxu3 %vm196_vm10, %v457_v39 }
 0x40c   :  { %v3997_v41 = vpop.eup %3996 }
 0x40d   :  { %v253_v42 = vmul.f32 %v3997_v41, %v3993_v29  ;;  %v582_v52 = vpop.permute.xlu2 %581 }
 0x40f   :  { %3761 = vmatmul.msk.f32.gmra.mxu3 %vm230_vm11, %v253_v42 }
 0x41d   :  { %v293_v43 = vpop.permute.xlu1 %292 }
 0x41e   :  { %3764 = vmatmul.msk.f32.vlgmr.msrb.gmra.mxu3 %vm196_vm10, %v293_v43 }
 0x425   :  { %v455_v45 = vpop.permute.xlu1 %454 }
 0x426   :  { %3765 = vmatmul.msk.f32.gmra.mxu3 %vm196_vm10, %v295_v44 }
 0x427   :  { %3774 = vmatpush.xpose.msk.msra.mxu3 %vm196_vm10, %v455_v45 }
 0x42d   :  { %v588_v47 = vpop.permute.xlu1 %587 }
 0x42e   :  { %3775 = vmatmul.msk.f32.vlgmr.msra.gmra.mxu3 %vm196_vm10, %v451_v46  ;;  %3782 = vmatpush.xpose.msk.msra.mxu0 %vm196_vm10, %v588_v47 }
 0x435   :  { %v586_v49 = vpop.permute.xlu1 %585 }
 0x436   :  { %3776 = vmatmul.msk.f32.gmra.mxu3 %vm196_vm10, %v453_v48  ;;  %3783 = vmatpush.xpose.msk.msra.mxu0 %vm196_vm10, %v586_v49 }
 0x48a   :  { %v285_v50 = vpop.f32.mrf.mxu3 }
 0x48b   :  { %3771 = vmatmul.msk.f32.vlgmr.msrb.gmra.mxu0 %vm196_vm10, %v285_v50 }
 0x492   :  { %v288_v51 = vpop.f32.mrf.mxu3 }
 0x493   :  { %3772 = vmatmul.msk.f32.gmra.mxu0 %vm196_vm10, %v288_v51 }
 0x49b   :  { %3784 = vmatmul.msk.f32.vlgmr.msra.gmra.mxu0 %vm196_vm10, %v582_v52 }
 0x4a1   :  { %v325_v53 = vpop.f32.mrf.mxu3 }
 0x4a2   :  { %v331_v55 = vmul.f32 0.35355338, %v325_v53 }
 0x4a3   :  { %3785 = vmatmul.msk.f32.gmra.mxu0 %vm196_vm10, %v584_v54 }
 0x4a4   :  { %v333_v56 = vsel %vm230_vm11, %v331_v55, -inf }
 0x4a5   :  { %334 = vmax.xlane.f32.xlu1 %v333_v56 }
 0x4a9   :  { %v328_v57 = vpop.f32.mrf.mxu3 }
 0x4aa   :  { %v332_v58 = vmul.f32 0.35355338, %v328_v57 }
 0x4ac   :  { %v336_v59 = vsel %vm234_vm12, %v332_v58, -inf }
 0x4ad   :  { %337 = vmax.xlane.f32.xlu2 %v336_v59 }
 0x4b1   :  { %v483_v15 = vpop.f32.mrf.mxu3 }
 0x4b2   :  { %v489_v17 = vmul.f32 0.35355338, %v483_v15 }
 0x4b4   :  { %v491_v19 = vsel %vm230_vm11, %v489_v17, -inf }
 0x4b9   :  { %v486_v20 = vpop.f32.mrf.mxu3 }
 0x4ba   :  { %v490_v21 = vmul.f32 0.35355338, %v486_v20 }
 0x4bc   :  { %v494_v22 = vsel %vm234_vm12, %v490_v21, -inf }
 0x4c5   :  { %357 = vrot.lane.b32.xlu2 %v4377_v8, %s5622_s29 }
 0x508   :  { %v4447_v60 = vpop.f32.mrf.mxu0 }
 0x510   :  { %v4449_v61 = vpop.f32.mrf.mxu0 }
 0x518   :  { %v614_v62 = vpop.f32.mrf.mxu0  ;;  %v335_v63 = vpop.xlane.xlu1 %334 }
 0x519   :  { %v339_v0 = vsub.f32 %v331_v55, %v335_v63  ;;  %v620_v23 = vmul.f32 0.35355338, %v614_v62 }
 0x51b   :  { %v341_v1 = vmul.f32 1.442695, %v339_v0  ;;  %v622_v24 = vsel %vm230_vm11, %v620_v23, -inf }
 0x51d   :  { %3998 = vpow2.f32 %v341_v1 }
 0x520   :  { %v338_v2 = vpop.xlane.xlu2 %337  ;;  %v617_v3 = vpop.f32.mrf.mxu0 }
 0x521   :  { %v340_v4 = vsub.f32 %v332_v58, %v338_v2  ;;  %v4451_v5 = vmul.f32 0.35355338, %v617_v3 }
 0x523   :  { %v3999_v6 = vpop.eup %3998  ;;  %v343_v7 = vmul.f32 1.442695, %v340_v4  ;;  %v625_v10 = vsel %vm234_vm12, %v4451_v5, -inf }
 0x524   :  { %626 = vmax.xlane.f32.xlu2 %v625_v10  ;;  %v345_v11 = vsel %vm230_vm11, %v3999_v6, 0.0  ;;  %v549_v10 = vld [vmem:[%s5609_s6 + $0x10] sm:$0xff] }
 0x525   :  { %4000 = vpow2.f32 %v343_v7  ;;  %346 = vadd.xlane.f32.xlu0 %v345_v11 }
 0x528   :  { %v358_v13 = vpop.permute.xlu2 %357 }
 0x529   :  { %3766 = vmatpush.msk.msra.mxu1 %vm265_vm13, %v358_v13 }
 0x52b   :  { %v4001_v14 = vpop.eup %4000 }
 0x52c   :  { %v348_v16 = vsel %vm234_vm12, %v4001_v14, 0.0 }
 0x52d   :  { %349 = vadd.xlane.f32.xlu1 %v348_v16  ;;  %v680_v16 = vld [vmem:[%s5609_s6 + $0x18] sm:$0xff] }
 0x535   :  { %492 = vmax.xlane.f32.xlu1 %v491_v19 }
 0x539   :  { %355 = vrot.lane.b32.xlu0 %v4381_v9, %s5622_s29  ;;  %s5640_s29 = smov 56  }
 0x53c   :  { %513 = vrot.lane.b32.xlu2 %v4381_v9, %s5620_s30 }
 0x53d   :  { %495 = vmax.xlane.f32.xlu1 %v494_v22 }
 0x556   :  { %515 = vrot.lane.b32.xlu1 %v4377_v8, %s5620_s30 }
 0x563   :  { %623 = vmax.xlane.f32.xlu0 %v622_v24 }
 0x577   :  { %646 = vrot.lane.b32.xlu0 %v4377_v8, %s5618_s15 }
 0x57f   :  { %644 = vrot.lane.b32.xlu0 %v4381_v9, %s5618_s15  ;;  %s5643_s15 = smov 64  }
 0x597   :  { %v627_v42 = vpop.xlane.xlu2 %626 }
 0x598   :  { %v347_v27 = vpop.xlane.xlu0 %346  ;;  %v629_v47 = vsub.f32 %v4451_v5, %v627_v42  ;;  %v773_v42 = vld [vmem:[%s5610_s7 + $0x18] sm:$0xff] }
 0x599   :  { %4002 = vrcp.f32 %v347_v27 }
 0x59a   :  { %v632_v49 = vmul.f32 1.442695, %v629_v47 }
 0x59f   :  { %v4003_v29 = vpop.eup %4002  ;;  %v514_v44 = vpop.permute.xlu2 %513 }
 0x5a0   :  { %v350_v28 = vpop.xlane.xlu1 %349  ;;  %v353_v32 = vmul.f32 %v4003_v29, %v3999_v6 }
 0x5a1   :  { %4004 = vrcp.f32 %v350_v28 }
 0x5a7   :  { %v4005_v8 = vpop.eup %4004 }
 0x5a8   :  { %v493_v30 = vpop.xlane.xlu1 %492  ;;  %v354_v38 = vmul.f32 %v4005_v8, %v4001_v14 }
 0x5a9   :  { %v497_v31 = vsub.f32 %v489_v17, %v493_v30 }
 0x5ab   :  { %v499_v33 = vmul.f32 1.442695, %v497_v31  ;;  %v356_v34 = vpop.permute.xlu0 %355 }
 0x5ac   :  { %383 = vmatpush.msra.mxu1 %v356_v34 }
 0x5ad   :  { %4006 = vpow2.f32 %v499_v33  ;;  %3767 = vmatmul.msk.f32.vlgmr.msra.gmra.mxu1 %vm230_vm11, %v353_v32 }
 0x5b0   :  { %v496_v9 = vpop.xlane.xlu1 %495 }
 0x5b1   :  { %v498_v35 = vsub.f32 %v490_v21, %v496_v9 }
 0x5b3   :  { %v4007_v36 = vpop.eup %4006  ;;  %v501_v37 = vmul.f32 1.442695, %v498_v35 }
 0x5b4   :  { %v503_v39 = vsel %vm230_vm11, %v4007_v36, 0.0 }
 0x5b5   :  { %4008 = vpow2.f32 %v501_v37  ;;  %3768 = vmatmul.msk.f32.gmra.mxu1 %vm230_vm11, %v354_v38  ;;  %504 = vadd.xlane.f32.xlu1 %v503_v39 }
 0x5bb   :  { %v4009_v40 = vpop.eup %4008 }
 0x5bc   :  { %v506_v41 = vsel %vm234_vm12, %v4009_v40, 0.0 }
 0x5bd   :  { %507 = vadd.xlane.f32.xlu1 %v506_v41 }
 0x5c8   :  { %v516_v43 = vpop.permute.xlu1 %515 }
 0x5c9   :  { %3777 = vmatpush.msk.msrb.mxu1 %vm265_vm13, %v516_v43  ;;  %3933 = vmatpush.msk.msrb.mxu2 %vm265_vm13, %v516_v43  ;;  %v772_v43 = vld [vmem:[%s5610_s7 + $0x10] sm:$0xff] }
 0x5cb   :  { %541 = vmatpush.msrb.mxu1 %v514_v44  ;;  %3934 = vmatpush.msrb.mxu2 %v514_v44  ;;  %v771_v44 = vld [vmem:[%s5610_s7 + $0x8] sm:$0xff] }
 0x5cd   :  { %702 = vmatpush.msra.mxu1 %v680_v16  ;;  %v907_v16 = vld [vmem:[%s5611_s8 + $0x70] sm:$0xff] }
 0x5d6   :  { %v624_v45 = vpop.xlane.xlu0 %623 }
 0x5d7   :  { %v628_v46 = vsub.f32 %v620_v23, %v624_v45  ;;  %v770_v45 = vld [vmem:[%s5610_s7] sm:$0xff] }
 0x5d9   :  { %v630_v48 = vmul.f32 1.442695, %v628_v46 }
 0x5db   :  { %4010 = vpow2.f32 %v630_v48 }
 0x5dc   :  { %4012 = vpow2.f32 %v632_v49 }
 0x5e1   :  { %v4011_v50 = vpop.eup %4010 }
 0x5e2   :  { %v634_v51 = vsel %vm230_vm11, %v4011_v50, 0.0  ;;  %v4013_v52 = vpop.eup %4012 }
 0x5e3   :  { %635 = vadd.xlane.f32.xlu1 %v634_v51  ;;  %v637_v54 = vsel %vm234_vm12, %v4013_v52, 0.0 }
 0x5e9   :  { %v647_v53 = vpop.permute.xlu0 %646 }
 0x5ea   :  { %3786 = vmatpush.msk.msrb.mxu3 %vm265_vm13, %v647_v53 }
 0x5eb   :  { %638 = vadd.xlane.f32.xlu1 %v637_v54 }
 0x5f1   :  { %v645_v55 = vpop.permute.xlu0 %644 }
 0x5f2   :  { %672 = vmatpush.msrb.mxu3 %v645_v55 }
 0x628   :  { %v505_v56 = vpop.xlane.xlu1 %504 }
 0x629   :  { %4014 = vrcp.f32 %v505_v56 }
 0x62a   :  { %v385_v57 = vpop.f32.mrf.mxu1 }
 0x62b   :  { %3769 = vmatmul.msk.f32.vlgmr.msra.gmra.mxu2 %vm196_vm10, %v385_v57 }
 0x62c   :  { %571 = vmatpush.msra.mxu2 %v549_v10 }
 0x62f   :  { %v4015_v58 = vpop.eup %4014 }
 0x630   :  { %v511_v59 = vmul.f32 %v4015_v58, %v4007_v36  ;;  %v508_v62 = vpop.xlane.xlu1 %507 }
 0x631   :  { %4016 = vrcp.f32 %v508_v62  ;;  %v3952_v62 = vld [vmem:[%s5606_s3 + $0x4] ss:$0 sm:$0xff] }
 0x632   :  { %v388_v63 = vpop.f32.mrf.mxu1  ;;  %3778 = vmatmul.msk.f32.vlgmr.msrb.gmra.mxu1 %vm230_vm11, %v511_v59 }
 0x633   :  { %3770 = vmatmul.msk.f32.gmra.mxu2 %vm196_vm10, %v388_v63 }
 0x637   :  { %v4017_v0 = vpop.eup %4016 }
 0x638   :  { %v512_v1 = vmul.f32 %v4017_v0, %v4009_v40 }
 0x63b   :  { %3779 = vmatmul.msk.f32.vlgmr.msrb.gmra.mxu2 %vm230_vm11, %v512_v1 }
 0x63c   :  { %794 = vmatpush.msrb.mxu2 %v773_v42 }
 0x63e   :  { %795 = vmatpush.msrb.mxu2 %v772_v43  ;;  %v896_v43 = vld [vmem:[%s5611_s8 + $0x18] sm:$0xff] }
 0x640   :  { %796 = vmatpush.msrb.mxu2 %v771_v44 }
 0x642   :  { %797 = vmatpush.msrb.mxu2 %v770_v45 }
 0x656   :  { %v636_v2 = vpop.xlane.xlu1 %635 }
 0x657   :  { %4018 = vrcp.f32 %v636_v2  ;;  %v3953_v2 = vld [vmem:[%s5606_s3 + $0x5] ss:$0 sm:$0xff] }
 0x65d   :  { %v4019_v3 = vpop.eup %4018 }
 0x65e   :  { %v642_v4 = vmul.f32 %v4019_v3, %v4011_v50  ;;  %v639_v5 = vpop.xlane.xlu1 %638 }
 0x65f   :  { %4020 = vrcp.f32 %v639_v5 }
 0x660   :  { %3787 = vmatmul.msk.f32.vlgmr.msrb.gmra.mxu3 %vm230_vm11, %v642_v4 }
 0x665   :  { %v4021_v6 = vpop.eup %4020 }
 0x666   :  { %v643_v7 = vmul.f32 %v4021_v6, %v4013_v52 }
 0x668   :  { %3788 = vmatmul.msk.f32.gmra.mxu3 %vm230_vm11, %v643_v7 }
 0x6ae   :  { %v415_v11 = vpop.f32.mrf.mxu2 }
 0x6af   :  { %v543_v13 = vpop.f32.mrf.mxu1  ;;  %v445_v21 = vadd.f32 %v4447_v60, %v415_v11 }
 0x6b0   :  { %3780 = vmatmul.msk.f32.vlgmr.msra.gmra.mxu2 %vm196_vm10, %v543_v13 }
 0x6b6   :  { %v418_v14 = vpop.f32.mrf.mxu2 }
 0x6b7   :  { %v448_v29 = vadd.f32 %v4449_v61, %v418_v14 }
 0x6be   :  { %v546_v15 = vpop.f32.mrf.mxu2 }
 0x6bf   :  { %3781 = vmatmul.msk.f32.gmra.mxu2 %vm196_vm10, %v546_v15  ;;  %v908_v15 = vld [vmem:[%s5611_s8 + $0x78] sm:$0xff] }
 0x6c0   :  { %909 = vmatpush.msrb.mxu0 %v908_v15 }
 0x6c2   :  { %910 = vmatpush.msrb.mxu0 %v907_v16 }
 0x6e3   :  { %v674_v17 = vpop.f32.mrf.mxu3 }
 0x6e4   :  { %3789 = vmatmul.msk.f32.vlgmr.msra.gmra.mxu1 %vm196_vm10, %v674_v17  ;;  %v906_v17 = vld [vmem:[%s5611_s8 + $0x68] sm:$0xff] }
 0x6e5   :  { %911 = vmatpush.msrb.mxu0 %v906_v17 }
 0x6eb   :  { %v677_v19 = vpop.f32.mrf.mxu3 }
 0x6ec   :  { %3790 = vmatmul.msk.f32.gmra.mxu1 %vm196_vm10, %v677_v19  ;;  %v3954_v19 = vld [vmem:[%s5606_s3 + $0x6] ss:$0 sm:$0xff] }
 0x733   :  { %v573_v20 = vpop.f32.mrf.mxu2 }
 0x734   :  { %v579_v22 = vadd.f32 %v573_v20, %v445_v21  ;;  %v905_v20 = vld [vmem:[%s5611_s8 + $0x60] sm:$0xff]  ;;  %v904_v21 = vld [vmem:[%s5611_s8 + $0x58] sm:$0xff] }
 0x735   :  { %912 = vmatpush.msrb.mxu0 %v905_v20 }
 0x737   :  { %913 = vmatpush.msrb.mxu0 %v904_v21 }
 0x742   :  { %v576_v28 = vpop.f32.mrf.mxu2 }
 0x743   :  { %v580_v31 = vadd.f32 %v576_v28, %v448_v29  ;;  %v901_v29 = vld [vmem:[%s5611_s8 + $0x40] sm:$0xff] }
 0x761   :  { %v704_v23 = vpop.f32.mrf.mxu1 }
 0x762   :  { %v710_v24 = vadd.f32 %v704_v23, %v579_v22 }
 0x764   :  { %v712_v27 = vadd.f32 %v710_v24, %v4330_v12  ;;  %v903_v24 = vld [vmem:[%s5611_s8 + $0x50] sm:$0xff] }
 0x765   :  { %914 = vmatpush.msrb.mxu0 %v903_v24 }
 0x766   :  { %v4506_v30 = vadd.f32 %v3951_v25, %v712_v27  ;;  %v902_v27 = vld [vmem:[%s5611_s8 + $0x48] sm:$0xff] }
 0x767   :  { %915 = vmatpush.msrb.mxu0 %v902_v27 }
 0x768   :  { %v720_v32 = vsel %vm96_vm1, %v4506_v30, 0.0 }
 0x769   :  { %721 = vadd.xlane.f32.xlu2 %v720_v32  ;;  %v707_v60 = vpop.f32.mrf.mxu1  ;;  %916 = vmatpush.msrb.mxu0 %v901_v29  ;;  %v900_v32 = vld [vmem:[%s5611_s8 + $0x38] sm:$0xff] }
 0x76a   :  { %v711_v33 = vadd.f32 %v707_v60, %v580_v31 }
 0x76b   :  { %917 = vmatpush.msrb.mxu0 %v900_v32 }
 0x76c   :  { %v713_v34 = vadd.f32 %v711_v33, %v4340_v18 }
 0x76e   :  { %v4511_v8 = vadd.f32 %v3951_v25, %v713_v34 }
 0x770   :  { %v723_v9 = vsel %vm100_vm2, %v4511_v8, 0.0 }
 0x771   :  { %724 = vadd.xlane.f32.xlu0 %v723_v9 }
 0x7dc   :  { %v722_v12 = vpop.xlane.xlu2 %721 }
 0x7dd   :  { %v726_v61 = vmul.f32 %v722_v12, %v4344_v26  ;;  %v899_v12 = vld [vmem:[%s5611_s8 + $0x30] sm:$0xff] }
 0x7de   :  { %918 = vmatpush.msrb.mxu0 %v899_v12 }
 0x7df   :  { %v728_v35 = vsub.f32 %v4506_v30, %v726_v61 }
 0x7e1   :  { %v730_v36 = vmul.f32 %v728_v35, %v728_v35 }
 0x7e3   :  { %v732_v37 = vsel %vm96_vm1, %v730_v36, 0.0 }
 0x7e4   :  { %733 = vadd.xlane.f32.xlu1 %v732_v37  ;;  %v725_v38 = vpop.xlane.xlu0 %724  ;;  %v898_v37 = vld [vmem:[%s5611_s8 + $0x28] sm:$0xff] }
 0x7e5   :  { %v727_v39 = vmul.f32 %v725_v38, %v4344_v26  ;;  %919 = vmatpush.msrb.mxu0 %v898_v37 }
 0x7e7   :  { %v729_v18 = vsub.f32 %v4511_v8, %v727_v39 }
 0x7e9   :  { %v731_v40 = vmul.f32 %v729_v18, %v729_v18 }
 0x7eb   :  { %v735_v41 = vsel %vm100_vm2, %v731_v40, 0.0  ;;  %v897_v40 = vld [vmem:[%s5611_s8 + $0x20] sm:$0xff] }
 0x7ec   :  { %736 = vadd.xlane.f32.xlu1 %v735_v41  ;;  %920 = vmatpush.msrb.mxu0 %v897_v40 }
 0x7ee   :  { %921 = vmatpush.msrb.mxu0 %v896_v43 }
 0x857   :  { %v734_v46 = vpop.xlane.xlu1 %733 }
 0x858   :  { %v738_v47 = vmul.f32 %v734_v46, %v4344_v26 }
 0x85a   :  { %v740_v48 = vadd.f32 1e-12, %v738_v47  ;;  %v895_v47 = vld [vmem:[%s5611_s8 + $0x10] sm:$0xff] }
 0x85b   :  { %922 = vmatpush.msrb.mxu0 %v895_v47 }
 0x85c   :  { %4022 = vrsqrt.f32 %v740_v48  ;;  %vm748_vm15 = vweird.f32 %v740_v48 }
 0x85f   :  { %v737_v49 = vpop.xlane.xlu1 %736 }
 0x860   :  { %v739_v50 = vmul.f32 %v737_v49, %v4344_v26 }
 0x862   :  { %v4023_v51 = vpop.eup %4022  ;;  %v741_v52 = vadd.f32 1e-12, %v739_v50 }
 0x863   :  { %v743_v53 = vmul.f32 %v4023_v51, %v740_v48  ;;  %vm749_vm14 = vweird.f32 %v4023_v51 }
 0x864   :  { %4024 = vrsqrt.f32 %v741_v52  ;;  %vm750_vm3 = vmor %vm748_vm15, %vm749_vm14  ;;  %vm758_vm5 = vweird.f32 %v741_v52 }
 0x865   :  { %v744_v54 = vmul.f32 %v4023_v51, %v743_v53  ;;  %v893_v53 = vld [vmem:[%s5611_s8] sm:$0xff] }
 0x867   :  { %v745_v55 = vmul.f32 0.5, %v744_v54 }
 0x869   :  { %v746_v56 = vsub.f32 1.5, %v745_v55 }
 0x86a   :  { %v4025_v57 = vpop.eup %4024 }
 0x86b   :  { %v747_v58 = vmul.f32 %v4023_v51, %v746_v56  ;;  %v753_v59 = vmul.f32 %v4025_v57, %v741_v52  ;;  %vm759_vm4 = vweird.f32 %v4025_v57  ;;  %v894_v52 = vld [vmem:[%s5611_s8 + $0x8] sm:$0xff] }
 0x86c   :  { %vm760_vm6 = vmor %vm758_vm5, %vm759_vm4  ;;  %923 = vmatpush.msrb.mxu0 %v894_v52 }
 0x86d   :  { %v751_v63 = vsel %vm750_vm3, %v4023_v51, %v747_v58  ;;  %v754_v0 = vmul.f32 %v4025_v57, %v753_v59 }
 0x86e   :  { %v762_v1 = vmul.f32 %v751_v63, %v728_v35  ;;  %924 = vmatpush.msrb.mxu0 %v893_v53 }
 0x86f   :  { %v755_v3 = vmul.f32 0.5, %v754_v0 }
 0x870   :  { %v765_v4 = vmul.f32 %v3952_v62, %v762_v1 }
 0x871   :  { %v756_v5 = vsub.f32 1.5, %v755_v3 }
 0x872   :  { %v768_v6 = vadd.f32 %v3953_v2, %v765_v4 }
 0x873   :  { %v757_v7 = vmul.f32 %v4025_v57, %v756_v5 }
 0x874   :  { %3791 = vmatmul.msk.f32.vlgmr.msrb.gmra.mxu2 %vm96_vm1, %v768_v6 }
 0x875   :  { %v761_v10 = vsel %vm760_vm6, %v4025_v57, %v757_v7 }
 0x876   :  { %v763_v11 = vmul.f32 %v761_v10, %v729_v18 }
 0x878   :  { %v766_v13 = vmul.f32 %v3952_v62, %v763_v11 }
 0x87a   :  { %v769_v14 = vadd.f32 %v3953_v2, %v766_v13 }
 0x87c   :  { %3792 = vmatmul.msk.f32.gmra.mxu2 %vm96_vm1, %v769_v14 }
 0x8f7   :  { %v799_v22 = vpop.f32.mrf.mxu2 }
 0x8f8   :  { %v4561_v23 = vadd.f32 %v3954_v19, %v799_v22 }
 0x8fa   :  { %v4567_v25 = vmul.f32 0.70710677, %v4561_v23  ;;  %v805_v43 = vmul.f32 0.5, %v4561_v23  ;;  %v3955_v23 = vld [vmem:[%s5606_s3 + $0x7] ss:$0 sm:$0xff] }
 0x8fc   :  { %v809_v28 = vmul.f32 %v4567_v25, %v4567_v25 }
 0x8fe   :  { %v810_v31 = vmin.f32 %v809_v28, 16.0 }
 0x8ff   :  { %v802_v60 = vpop.f32.mrf.mxu2 }
 0x900   :  { %v811_v33 = vmul.f32 2.1237322e-06, %v810_v31  ;;  %v822_v34 = vmul.f32 3.8918573e-05, %v810_v31  ;;  %v4580_v9 = vadd.f32 %v3954_v19, %v802_v60 }
 0x902   :  { %v812_v61 = vadd.f32 0.00028619796, %v811_v33  ;;  %v823_v35 = vadd.f32 0.001143296, %v822_v34  ;;  %v4586_v36 = vmul.f32 0.70710677, %v4580_v9 }
 0x904   :  { %v813_v38 = vmul.f32 %v812_v61, %v810_v31  ;;  %v824_v39 = vmul.f32 %v823_v35, %v810_v31  ;;  %v849_v18 = vmul.f32 %v4586_v36, %v4586_v36 }
 0x906   :  { %v825_v41 = vadd.f32 0.014752088, %v824_v39  ;;  %v850_v42 = vmin.f32 %v849_v18, 16.0  ;;  %v814_v44 = vadd.f32 0.0036580483, %v813_v38 }
 0x908   :  { %v826_v45 = vmul.f32 %v825_v41, %v810_v31  ;;  %v851_v46 = vmul.f32 2.1237322e-06, %v850_v42  ;;  %v862_v48 = vmul.f32 3.8918573e-05, %v850_v42  ;;  %v815_v51 = vmul.f32 %v814_v44, %v810_v31 }
 0x90a   :  { %v827_v49 = vadd.f32 0.112945676, %v826_v45  ;;  %v852_v50 = vadd.f32 0.00028619796, %v851_v46  ;;  %v863_v54 = vadd.f32 0.001143296, %v862_v48 }
 0x90b   :  { %v816_v59 = vadd.f32 0.05243302, %v815_v51  ;;  %v806_v51 = vmul.f32 0.5, %v4580_v9 }
 0x90c   :  { %v828_v55 = vmul.f32 %v827_v49, %v810_v31  ;;  %v853_v56 = vmul.f32 %v852_v50, %v850_v42  ;;  %v864_v57 = vmul.f32 %v863_v54, %v850_v42 }
 0x90d   :  { %v817_v3 = vmul.f32 %v816_v59, %v810_v31 }
 0x90e   :  { %v829_v58 = vadd.f32 0.4994258, %v828_v55  ;;  %v865_v62 = vadd.f32 0.014752088, %v864_v57  ;;  %v854_v0 = vadd.f32 0.0036580483, %v853_v56 }
 0x90f   :  { %v818_v7 = vadd.f32 0.18741608, %v817_v3 }
 0x910   :  { %v830_v63 = vmul.f32 %v829_v58, %v810_v31  ;;  %v866_v1 = vmul.f32 %v865_v62, %v850_v42  ;;  %v855_v5 = vmul.f32 %v854_v0, %v850_v42 }
 0x911   :  { %v819_v15 = vmul.f32 %v818_v7, %v810_v31  ;;  %v992_v7 = vld [vmem:[%s5612_s9 + $0x10] sm:$0xff] }
 0x912   :  { %v831_v2 = vadd.f32 1.0, %v830_v63  ;;  %v867_v4 = vadd.f32 0.112945676, %v866_v1  ;;  %v856_v11 = vadd.f32 0.05243302, %v855_v5 }
 0x913   :  { %v820_v22 = vadd.f32 1.1283791, %v819_v15 }
 0x914   :  { %4026 = vrcp.f32 %v831_v2  ;;  %v868_v6 = vmul.f32 %v867_v4, %v850_v42  ;;  %v857_v19 = vmul.f32 %v856_v11, %v850_v42  ;;  %v843_v21 = vand.u32 2147483648, %v831_v2  ;;  %v990_v11 = vld [vmem:[%s5612_s9] sm:$0xff] }
 0x915   :  { %v841_v27 = vand.u32 2147483647, %v831_v2  ;;  %vm837_vm8 = vweird.f32 %v831_v2  ;;  %v821_v33 = vmul.f32 %v820_v22, %v4567_v25 }
 0x916   :  { %v869_v10 = vadd.f32 0.4994258, %v868_v6  ;;  %v858_v28 = vadd.f32 0.18741608, %v857_v19  ;;  %v844_v32 = vor.u32 1.1754944e-38, %v843_v21  ;;  %v993_v6 = vld [vmem:[%s5612_s9 + $0x18] sm:$0xff] }
 0x917   :  { %vm842_vm14 = vcmp.eq.f32.partialorder %v841_v27, 8.507059e+37  ;;  %1014 = vmatpush.msra.mxu3 %v993_v6 }
 0x918   :  { %v870_v13 = vmul.f32 %v869_v10, %v850_v42  ;;  %v859_v12 = vmul.f32 %v858_v28, %v850_v42  ;;  %v991_v10 = vld [vmem:[%s5612_s9 + $0x8] sm:$0xff] }
 0x919   :  { %1015 = vmatpush.msra.mxu3 %v992_v7 }
 0x91a   :  { %v4027_v14 = vpop.eup %4026  ;;  %v871_v17 = vadd.f32 1.0, %v870_v13  ;;  %v860_v18 = vadd.f32 1.1283791, %v859_v12  ;;  %v3957_v12 = vld [vmem:[%s5606_s3 + $0x9] ss:$0 sm:$0xff] }
 0x91b   :  { %v833_v16 = vmul.f32 %v4027_v14, %v831_v2  ;;  %vm838_vm7 = vweird.f32 %v4027_v14  ;;  %1016 = vmatpush.msra.mxu3 %v991_v10  ;;  %v1122_v10 = vld [vmem:[%s5613_s10] sm:$0xff] }
 0x91c   :  { %4028 = vrcp.f32 %v871_v17  ;;  %vm839_vm9 = vmor %vm837_vm8, %vm838_vm7  ;;  %v883_v39 = vand.u32 2147483648, %v871_v17  ;;  %v881_v41 = vand.u32 2147483647, %v871_v17  ;;  %vm877_vm3 = vweird.f32 %v871_v17  ;;  %1273 = vmatpush.msra.mxu0 %v1122_v10 }
 0x91d   :  { %v834_v20 = vsub.f32 1.0, %v833_v16  ;;  %v861_v47 = vmul.f32 %v860_v18, %v4586_v36  ;;  %1017 = vmatpush.msra.mxu3 %v990_v11 }
 0x91e   :  { %v884_v25 = vor.u32 1.1754944e-38, %v883_v39  ;;  %vm882_vm5 = vcmp.eq.f32.partialorder %v881_v41, 8.507059e+37 }
 0x91f   :  { %v835_v24 = vmul.f32 %v4027_v14, %v834_v20 }
 0x921   :  { %v836_v29 = vadd.f32 %v4027_v14, %v835_v24 }
 0x922   :  { %v4029_v60 = vpop.eup %4028 }
 0x923   :  { %v840_v34 = vsel %vm839_vm9, %v4027_v14, %v836_v29  ;;  %v873_v61 = vmul.f32 %v4029_v60, %v871_v17  ;;  %vm878_vm15 = vweird.f32 %v4029_v60 }
 0x924   :  { %v845_v31 = vsel %vm842_vm14, %v844_v32, %v840_v34  ;;  %vm879_vm4 = vmor %vm877_vm3, %vm878_vm15  ;;  %v3956_v32 = vld [vmem:[%s5606_s3 + $0x8] ss:$0 sm:$0xff] }
 0x925   :  { %v846_v35 = vmul.f32 %v845_v31, %v821_v33  ;;  %v874_v37 = vsub.f32 1.0, %v873_v61 }
 0x927   :  { %v3793_v38 = vclamps-f32 %v846_v35, 1.0  ;;  %v875_v40 = vmul.f32 %v4029_v60, %v874_v37 }
 0x929   :  { %v889_v44 = vadd.f32 1.0, %v3793_v38  ;;  %v876_v45 = vadd.f32 %v4029_v60, %v875_v40 }
 0x92b   :  { %v891_v46 = vmul.f32 %v889_v44, %v805_v43  ;;  %v880_v42 = vsel %vm879_vm4, %v4029_v60, %v876_v45  ;;  %v3958_v44 = vld [vmem:[%s5606_s3 + $0xa] ss:$0 sm:$0xff] }
 0x92c   :  { %v885_v48 = vsel %vm882_vm5, %v884_v25, %v880_v42 }
 0x92d   :  { %925 = vmatmul.f32.vlgmr.msrb.gmra.mxu0 %v891_v46  ;;  %v886_v49 = vmul.f32 %v885_v48, %v861_v47 }
 0x92f   :  { %v3794_v50 = vclamps-f32 %v886_v49, 1.0 }
 0x931   :  { %v890_v52 = vadd.f32 1.0, %v3794_v50 }
 0x933   :  { %v892_v53 = vmul.f32 %v890_v52, %v806_v51 }
 0x935   :  { %928 = vmatmul.f32.gmra.mxu0 %v892_v53 }
 0x9aa   :  { %v926_v54 = vpop.f32.mrf.mxu0 }
 0x9ab   :  { %v932_v55 = vadd.f32 %v926_v54, %v4506_v30 }
 0x9ad   :  { %v4616_v56 = vadd.f32 %v3955_v23, %v932_v55 }
 0x9af   :  { %v940_v36 = vsel %vm96_vm1, %v4616_v56, 0.0 }
 0x9b0   :  { %941 = vadd.xlane.f32.xlu2 %v940_v36 }
 0x9b2   :  { %v929_v57 = vpop.f32.mrf.mxu0 }
 0x9b3   :  { %v933_v58 = vadd.f32 %v929_v57, %v4511_v8 }
 0x9b5   :  { %v4621_v9 = vadd.f32 %v3955_v23, %v933_v58 }
 0x9b7   :  { %v943_v59 = vsel %vm100_vm2, %v4621_v9, 0.0 }
 0x9b8   :  { %944 = vadd.xlane.f32.xlu1 %v943_v59 }
 0xa23   :  { %v942_v62 = vpop.xlane.xlu2 %941 }
 0xa24   :  { %v946_v63 = vmul.f32 %v942_v62, %v4344_v26 }
 0xa26   :  { %v948_v30 = vsub.f32 %v4616_v56, %v946_v63 }
 0xa28   :  { %v950_v0 = vmul.f32 %v948_v30, %v948_v30 }
 0xa2a   :  { %v952_v1 = vsel %vm96_vm1, %v950_v0, 0.0 }
 0xa2b   :  { %953 = vadd.xlane.f32.xlu0 %v952_v1  ;;  %v945_v2 = vpop.xlane.xlu1 %944 }
 0xa2c   :  { %v947_v3 = vmul.f32 %v945_v2, %v4344_v26 }
 0xa2e   :  { %v949_v8 = vsub.f32 %v4621_v9, %v947_v3 }
 0xa30   :  { %v951_v4 = vmul.f32 %v949_v8, %v949_v8 }
 0xa32   :  { %v955_v5 = vsel %vm100_vm2, %v951_v4, 0.0 }
 0xa33   :  { %956 = vadd.xlane.f32.xlu2 %v955_v5 }
 0xa9e   :  { %v954_v13 = vpop.xlane.xlu0 %953 }
 0xa9f   :  { %v958_v14 = vmul.f32 %v954_v13, %v4344_v26 }
 0xaa1   :  { %v960_v15 = vadd.f32 1e-12, %v958_v14 }
 0xaa3   :  { %4030 = vrsqrt.f32 %v960_v15  ;;  %vm968_vm7 = vweird.f32 %v960_v15 }
 0xaa6   :  { %v957_v16 = vpop.xlane.xlu2 %956 }
 0xaa7   :  { %v959_v17 = vmul.f32 %v957_v16, %v4344_v26 }
 0xaa9   :  { %v4031_v19 = vpop.eup %4030  ;;  %v961_v21 = vadd.f32 1e-12, %v959_v17 }
 0xaaa   :  { %v963_v20 = vmul.f32 %v4031_v19, %v960_v15  ;;  %vm969_vm6 = vweird.f32 %v4031_v19 }
 0xaab   :  { %4032 = vrsqrt.f32 %v961_v21  ;;  %vm970_vm8 = vmor %vm968_vm7, %vm969_vm6  ;;  %vm978_vm14 = vweird.f32 %v961_v21 }
 0xaac   :  { %v964_v22 = vmul.f32 %v4031_v19, %v963_v20 }
 0xaae   :  { %v965_v24 = vmul.f32 0.5, %v964_v22 }
 0xab0   :  { %v966_v27 = vsub.f32 1.5, %v965_v24 }
 0xab1   :  { %v4033_v28 = vpop.eup %4032 }
 0xab2   :  { %v967_v29 = vmul.f32 %v4031_v19, %v966_v27  ;;  %v973_v60 = vmul.f32 %v4033_v28, %v961_v21  ;;  %vm979_vm9 = vweird.f32 %v4033_v28 }
 0xab3   :  { %vm980_vm15 = vmor %vm978_vm14, %vm979_vm9 }
 0xab4   :  { %v971_v33 = vsel %vm970_vm8, %v4031_v19, %v967_v29  ;;  %v974_v31 = vmul.f32 %v4033_v28, %v973_v60 }
 0xab5   :  { %v982_v34 = vmul.f32 %v971_v33, %v948_v30 }
 0xab6   :  { %v975_v35 = vmul.f32 0.5, %v974_v31 }
 0xab7   :  { %v985_v61 = vmul.f32 %v3956_v32, %v982_v34 }
 0xab8   :  { %v976_v37 = vsub.f32 1.5, %v975_v35 }
 0xab9   :  { %v988_v38 = vadd.f32 %v3957_v12, %v985_v61 }
 0xaba   :  { %v977_v39 = vmul.f32 %v4033_v28, %v976_v37 }
 0xabb   :  { %3795 = vmatmul.msk.f32.vlgmr.msra.gmra.mxu3 %vm96_vm1, %v988_v38 }
 0xabc   :  { %v981_v18 = vsel %vm980_vm15, %v4033_v28, %v977_v39 }
 0xabd   :  { %v983_v40 = vmul.f32 %v981_v18, %v949_v8 }
 0xabf   :  { %v986_v41 = vmul.f32 %v3956_v32, %v983_v40 }
 0xac1   :  { %v989_v43 = vadd.f32 %v3957_v12, %v986_v41 }
 0xac3   :  { %3796 = vmatmul.msk.f32.gmra.mxu3 %vm96_vm1, %v989_v43 }
 0xb3e   :  { %v1019_v45 = vpop.f32.mrf.mxu3 }
 0xb3f   :  { %v4656_v46 = vadd.f32 %v3958_v44, %v1019_v45 }
 0xb41   :  { %1027 = vrot.lane.b32.xlu0 %v4656_v46, %s4211_s19 }
 0xb46   :  { %v1022_v25 = vpop.f32.mrf.mxu3 }
 0xb47   :  { %v4660_v47 = vadd.f32 %v3958_v44, %v1022_v25 }
 0xb49   :  { %1088 = vrot.lane.b32.xlu0 %v4660_v47, %s5636_s20  ;;  %1029 = vrot.lane.b32.xlu1 %v4660_v47, %s4211_s19 }
 0xb51   :  { %1129 = vrot.lane.b32.xlu0 %v4660_v47, %s5634_s21 }
 0xb59   :  { %1127 = vrot.lane.b32.xlu0 %v4656_v46, %s5634_s21 }
 0xb61   :  { %1123 = vrot.lane.b32.xlu0 %v4656_v46, %s5632_s25 }
 0xb69   :  { %1287 = vrot.lane.b32.xlu0 %v4660_v47, %s5628_s22 }
 0xb71   :  { %1281 = vrot.lane.b32.xlu0 %v4656_v46, %s5630_s23 }
 0xb79   :  { %1283 = vrot.lane.b32.xlu0 %v4660_v47, %s5630_s23 }
 0xb81   :  { %1414 = vrot.lane.b32.xlu0 %v4660_v47, %s5638_s28 }
 0xbb3   :  { %v1028_v42 = vpop.permute.xlu0 %1027 }
 0xbbb   :  { %v1089_v48 = vpop.permute.xlu0 %1088  ;;  %v1030_v49 = vpop.permute.xlu1 %1029 }
 0xbbc   :  { %3797 = vmatpush.xpose.msk.msrb.mxu1 %vm196_vm10, %v1030_v49  ;;  %3801 = vmatpush.msk.msra.mxu2 %vm265_vm13, %v1089_v48 }
 0xbc0   :  { %3798 = vmatpush.xpose.msk.msrb.mxu1 %vm196_vm10, %v1028_v42 }
 0xbc3   :  { %v1130_v50 = vpop.permute.xlu0 %1129  ;;  %3799 = vmatmul.msk.f32.vlgmr.msrb.gmra.mxu1 %vm196_vm10, %v4656_v46 }
 0xbc4   :  { %3804 = vmatpush.xpose.msk.msrb.mxu3 %vm196_vm10, %v1130_v50 }
 0xbcb   :  { %v1128_v51 = vpop.permute.xlu0 %1127  ;;  %3800 = vmatmul.msk.f32.gmra.mxu1 %vm196_vm10, %v4660_v47 }
 0xbcc   :  { %3805 = vmatpush.xpose.msk.msrb.mxu3 %vm196_vm10, %v1128_v51 }
 0xbd3   :  { %v1124_v52 = vpop.permute.xlu0 %1123 }
 0xbd4   :  { %3806 = vmatmul.msk.f32.vlgmr.msrb.gmra.mxu3 %vm196_vm10, %v1124_v52 }
 0xbdb   :  { %v1288_v53 = vpop.permute.xlu0 %1287 }
 0xbdc   :  { %3815 = vmatpush.xpose.msk.msra.mxu3 %vm196_vm10, %v1288_v53 }
 0xbe3   :  { %v1282_v22 = vpop.permute.xlu0 %1281 }
 0xbeb   :  { %v1284_v27 = vpop.permute.xlu0 %1283 }
 0xbf3   :  { %v1415_v41 = vpop.permute.xlu0 %1414 }
 0xc40   :  { %v1056_v23 = vpop.f32.mrf.mxu1 }
 0xc41   :  { %v1062_v54 = vmul.f32 0.35355338, %v1056_v23 }
 0xc43   :  { %v1064_v55 = vsel %vm230_vm11, %v1062_v54, -inf }
 0xc44   :  { %1065 = vmax.xlane.f32.xlu2 %v1064_v55 }
 0xc48   :  { %v1059_v36 = vpop.f32.mrf.mxu1 }
 0xc49   :  { %v1063_v57 = vmul.f32 0.35355338, %v1059_v36 }
 0xc4b   :  { %v1067_v58 = vsel %vm234_vm12, %v1063_v57, -inf }
 0xc4c   :  { %1068 = vmax.xlane.f32.xlu2 %v1067_v58 }
 0xc57   :  { %v1156_v5 = vpop.f32.mrf.mxu3 }
 0xc58   :  { %v1162_v6 = vmul.f32 0.35355338, %v1156_v5 }
 0xc5a   :  { %v1164_v7 = vsel %vm230_vm11, %v1162_v6, -inf }
 0xcb7   :  { %v1066_v59 = vpop.xlane.xlu2 %1065 }
 0xcb8   :  { %v1070_v62 = vsub.f32 %v1062_v54, %v1066_v59 }
 0xcba   :  { %v1072_v63 = vmul.f32 1.442695, %v1070_v62 }
 0xcbc   :  { %4034 = vpow2.f32 %v1072_v63 }
 0xcbf   :  { %v1069_v30 = vpop.xlane.xlu2 %1068 }
 0xcc0   :  { %v1071_v0 = vsub.f32 %v1063_v57, %v1069_v30 }
 0xcc2   :  { %v4035_v1 = vpop.eup %4034  ;;  %v1074_v2 = vmul.f32 1.442695, %v1071_v0 }
 0xcc3   :  { %v1076_v3 = vsel %vm230_vm11, %v4035_v1, 0.0 }
 0xcc4   :  { %4036 = vpow2.f32 %v1074_v2  ;;  %1077 = vadd.xlane.f32.xlu2 %v1076_v3 }
 0xcca   :  { %v4037_v8 = vpop.eup %4036 }
 0xccb   :  { %v1079_v4 = vsel %vm234_vm12, %v4037_v8, 0.0 }
 0xccc   :  { %1080 = vadd.xlane.f32.xlu1 %v1079_v4 }
 0xcdc   :  { %1086 = vrot.lane.b32.xlu2 %v4656_v46, %s5636_s20 }
 0xce4   :  { %1125 = vrot.lane.b32.xlu2 %v4660_v47, %s5632_s25 }
 0xce5   :  { %1418 = vrot.lane.b32.xlu1 %v4660_v47, %s5639_s16 }
 0xcec   :  { %1285 = vrot.lane.b32.xlu2 %v4656_v46, %s5628_s22  ;;  %s5647_s22 = smov 80  }
 0xcf4   :  { %1416 = vrot.lane.b32.xlu2 %v4656_v46, %s5639_s16 }
 0xcfc   :  { %1412 = vrot.lane.b32.xlu2 %v4656_v46, %s5638_s28 }
 0xd25   :  { %1165 = vmax.xlane.f32.xlu2 %v1164_v7 }
 0xd37   :  { %v1078_v11 = vpop.xlane.xlu2 %1077 }
 0xd38   :  { %4038 = vrcp.f32 %v1078_v11 }
 0xd3e   :  { %v4039_v13 = vpop.eup %4038 }
 0xd3f   :  { %v1084_v14 = vmul.f32 %v4039_v13, %v4035_v1  ;;  %v1081_v15 = vpop.xlane.xlu1 %1080  ;;  %v1087_v16 = vpop.permute.xlu2 %1086 }
 0xd40   :  { %4040 = vrcp.f32 %v1081_v15  ;;  %1114 = vmatpush.msra.mxu2 %v1087_v16 }
 0xd41   :  { %3802 = vmatmul.msk.f32.vlgmr.msra.gmra.mxu2 %vm230_vm11, %v1084_v14 }
 0xd46   :  { %v4041_v17 = vpop.eup %4040 }
 0xd47   :  { %v1126_v19 = vpop.permute.xlu2 %1125  ;;  %v1085_v20 = vmul.f32 %v4041_v17, %v4037_v8 }
 0xd48   :  { %3807 = vmatmul.msk.f32.gmra.mxu3 %vm196_vm10, %v1126_v19 }
 0xd49   :  { %3803 = vmatmul.msk.f32.gmra.mxu2 %vm230_vm11, %v1085_v20 }
 0xd4f   :  { %v1286_v21 = vpop.permute.xlu2 %1285 }
 0xd50   :  { %3816 = vmatpush.xpose.msk.msra.mxu3 %vm196_vm10, %v1286_v21 }
 0xd53   :  { %3817 = vmatmul.msk.f32.vlgmr.msra.gmra.mxu3 %vm196_vm10, %v1282_v22 }
 0xd57   :  { %v1419_v24 = vpop.permute.xlu1 %1418  ;;  %v1417_v28 = vpop.permute.xlu2 %1416 }
 0xd58   :  { %3824 = vmatpush.xpose.msk.msrb.mxu0 %vm196_vm10, %v1419_v24 }
 0xd5b   :  { %3818 = vmatmul.msk.f32.gmra.mxu3 %vm196_vm10, %v1284_v27 }
 0xd5c   :  { %3825 = vmatpush.xpose.msk.msrb.mxu0 %vm196_vm10, %v1417_v28 }
 0xd5f   :  { %v1413_v29 = vpop.permute.xlu2 %1412 }
 0xd98   :  { %v1166_v32 = vpop.xlane.xlu2 %1165 }
 0xd99   :  { %v1170_v60 = vsub.f32 %v1162_v6, %v1166_v32 }
 0xd9b   :  { %v1172_v33 = vmul.f32 1.442695, %v1170_v60 }
 0xd9d   :  { %4042 = vpow2.f32 %v1172_v33 }
 0xda3   :  { %v4719_v34 = vpop.eup %4042 }
 0xda4   :  { %v1176_v31 = vsel %vm230_vm11, %v4719_v34, 0.0 }
 0xda5   :  { %1177 = vadd.xlane.f32.xlu2 %v1176_v31 }
 0xdc4   :  { %v1116_v12 = vpop.f32.mrf.mxu2 }
 0xdc5   :  { %3813 = vmatmul.msk.f32.vlgmr.msra.gmra.mxu0 %vm196_vm10, %v1116_v12 }
 0xdcb   :  { %v1159_v61 = vpop.f32.mrf.mxu3 }
 0xdcc   :  { %v1163_v35 = vmul.f32 0.35355338, %v1159_v61  ;;  %v1119_v37 = vpop.f32.mrf.mxu2  ;;  %v1222_v61 = vld [vmem:[%s5613_s10 + $0x8] sm:$0xff] }
 0xdcd   :  { %3814 = vmatmul.msk.f32.gmra.mxu0 %vm196_vm10, %v1119_v37  ;;  %1244 = vmatpush.msrb.mxu2 %v1222_v61 }
 0xdce   :  { %v1167_v38 = vsel %vm234_vm12, %v1163_v35, -inf }
 0xdcf   :  { %1168 = vmax.xlane.f32.xlu0 %v1167_v38 }
 0xdd5   :  { %3826 = vmatmul.msk.f32.vlgmr.msrb.gmra.mxu0 %vm196_vm10, %v1413_v29 }
 0xdd6   :  { %v1314_v39 = vpop.f32.mrf.mxu3 }
 0xdd7   :  { %v1320_v18 = vmul.f32 0.35355338, %v1314_v39 }
 0xdd9   :  { %v1322_v40 = vsel %vm230_vm11, %v1320_v18, -inf }
 0xdda   :  { %1323 = vmax.xlane.f32.xlu1 %v1322_v40 }
 0xddd   :  { %3827 = vmatmul.msk.f32.gmra.mxu0 %vm196_vm10, %v1415_v41 }
 0xdde   :  { %v1317_v43 = vpop.f32.mrf.mxu3 }
 0xddf   :  { %v1321_v44 = vmul.f32 0.35355338, %v1317_v43 }
 0xde1   :  { %v1325_v45 = vsel %vm234_vm12, %v1321_v44, -inf }
 0xde2   :  { %1326 = vmax.xlane.f32.xlu0 %v1325_v45 }
 0xdf6   :  { %1188 = vrot.lane.b32.xlu0 %v4660_v47, %s5640_s29 }
 0xe18   :  { %v1178_v5 = vpop.xlane.xlu2 %1177 }
 0xe42   :  { %v4732_v25 = vpop.f32.mrf.mxu0  ;;  %v1169_v42 = vpop.xlane.xlu0 %1168 }
 0xe43   :  { %v1171_v48 = vsub.f32 %v1163_v35, %v1169_v42  ;;  %v1380_v35 = vld [vmem:[%s5613_s10 + $0x10] sm:$0xff] }
 0xe44   :  { %1402 = vmatpush.msra.mxu2 %v1380_v35  ;;  %v3960_v35 = vld [vmem:[%s5606_s3 + $0xc] ss:$0 sm:$0xff] }
 0xe45   :  { %v1174_v49 = vmul.f32 1.442695, %v1171_v48 }
 0xe47   :  { %4044 = vpow2.f32 %v1174_v49  ;;  %v1511_v49 = vld [vmem:[%s5613_s10 + $0x18] sm:$0xff] }
 0xe4a   :  { %v4734_v50 = vpop.f32.mrf.mxu0 }
 0xe4d   :  { %v4045_v51 = vpop.eup %4044  ;;  %v1324_v52 = vpop.xlane.xlu1 %1323 }
 0xe4e   :  { %v1328_v53 = vsub.f32 %v1320_v18, %v1324_v52  ;;  %v1179_v23 = vsel %vm234_vm12, %v4045_v51, 0.0 }
 0xe4f   :  { %1180 = vadd.xlane.f32.xlu1 %v1179_v23 }
 0xe50   :  { %v1330_v54 = vmul.f32 1.442695, %v1328_v53 }
 0xe52   :  { %4046 = vpow2.f32 %v1330_v54  ;;  %v1445_v55 = vpop.f32.mrf.mxu0 }
 0xe53   :  { %v1451_v36 = vmul.f32 0.35355338, %v1445_v55 }
 0xe55   :  { %v1453_v57 = vsel %vm230_vm11, %v1451_v36, -inf  ;;  %v1327_v62 = vpop.xlane.xlu0 %1326 }
 0xe56   :  { %1454 = vmax.xlane.f32.xlu2 %v1453_v57  ;;  %v1329_v30 = vsub.f32 %v1321_v44, %v1327_v62 }
 0xe58   :  { %v4047_v58 = vpop.eup %4046  ;;  %v1332_v0 = vmul.f32 1.442695, %v1329_v30 }
 0xe59   :  { %v1334_v59 = vsel %vm230_vm11, %v4047_v58, 0.0 }
 0xe5a   :  { %1335 = vadd.xlane.f32.xlu1 %v1334_v59  ;;  %4048 = vpow2.f32 %v1332_v0  ;;  %v1448_v3 = vpop.f32.mrf.mxu0  ;;  %v3959_v59 = vld [vmem:[%s5606_s3 + $0xb] ss:$0 sm:$0xff] }
 0xe5b   :  { %v1452_v8 = vmul.f32 0.35355338, %v1448_v3  ;;  %4050 = vrcp.f32 %v1178_v5 }
 0xe5d   :  { %v1456_v4 = vsel %vm234_vm12, %v1452_v8, -inf }
 0xe60   :  { %v4049_v1 = vpop.eup %4048 }
 0xe61   :  { %v1337_v2 = vsel %vm234_vm12, %v4049_v1, 0.0  ;;  %v4051_v13 = vpop.eup %4050 }
 0xe62   :  { %v1184_v14 = vmul.f32 %v4051_v13, %v4719_v34 }
 0xe68   :  { %v1189_v63 = vpop.permute.xlu0 %1188 }
 0xe69   :  { %3808 = vmatpush.msk.msra.mxu1 %vm265_vm13, %v1189_v63 }
 0xe6e   :  { %1186 = vrot.lane.b32.xlu2 %v4656_v46, %s5640_s29 }
 0xe73   :  { %1346 = vrot.lane.b32.xlu1 %v4660_v47, %s5641_s24 }
 0xe7b   :  { %1344 = vrot.lane.b32.xlu1 %v4656_v46, %s5641_s24 }
 0xe97   :  { %1338 = vadd.xlane.f32.xlu2 %v1337_v2 }
 0xea5   :  { %1457 = vmax.xlane.f32.xlu1 %v1456_v4 }
 0xebe   :  { %1477 = vrot.lane.b32.xlu1 %v4660_v47, %s5642_s26 }
 0xec2   :  { %v1181_v11 = vpop.xlane.xlu1 %1180 }
 0xec9   :  { %v1455_v6 = vpop.xlane.xlu2 %1454 }
 0xeca   :  { %v1459_v7 = vsub.f32 %v1451_v36, %v1455_v6 }
 0xecc   :  { %v1461_v10 = vmul.f32 1.442695, %v1459_v7 }
 0xecd   :  { %v1336_v20 = vpop.xlane.xlu1 %1335 }
 0xece   :  { %4052 = vpow2.f32 %v1461_v10 }
 0xecf   :  { %4054 = vrcp.f32 %v1181_v11 }
 0xed0   :  { %4056 = vrcp.f32 %v1336_v20  ;;  %v4178_v20 = vld [vmem:[%s5607_s4 + $0x28] sm:$0xff] }
 0xed1   :  { %v1187_v15 = vpop.permute.xlu2 %1186 }
 0xed2   :  { %1214 = vmatpush.msra.mxu1 %v1187_v15 }
 0xed3   :  { %3809 = vmatmul.msk.f32.vlgmr.msra.gmra.mxu1 %vm230_vm11, %v1184_v14 }
 0xed4   :  { %v4053_v16 = vpop.eup %4052 }
 0xed5   :  { %v1465_v17 = vsel %vm230_vm11, %v4053_v16, 0.0  ;;  %v4055_v19 = vpop.eup %4054 }
 0xed6   :  { %1466 = vadd.xlane.f32.xlu0 %v1465_v17  ;;  %v1185_v47 = vmul.f32 %v4055_v19, %v4045_v51  ;;  %v4057_v22 = vpop.eup %4056  ;;  %v1603_v17 = vld [vmem:[%s5614_s11 + $0x10] sm:$0xff]  ;;  %v1602_v19 = vld [vmem:[%s5614_s11 + $0x8] sm:$0xff] }
 0xed7   :  { %v1342_v24 = vmul.f32 %v4057_v22, %v4047_v58  ;;  %v4179_v22 = vld [vmem:[%s5607_s4 + $0x20] sm:$0xff] }
 0xedb   :  { %3810 = vmatmul.msk.f32.gmra.mxu1 %vm230_vm11, %v1185_v47  ;;  %v1601_v47 = vld [vmem:[%s5614_s11] sm:$0xff] }
 0xee5   :  { %v1347_v21 = vpop.permute.xlu1 %1346 }
 0xee6   :  { %3819 = vmatpush.msk.msrb.mxu1 %vm265_vm13, %v1347_v21 }
 0xeea   :  { %1475 = vrot.lane.b32.xlu0 %v4656_v46, %s5642_s26 }
 0xeed   :  { %v1345_v27 = vpop.permute.xlu1 %1344 }
 0xeee   :  { %1372 = vmatpush.msrb.mxu1 %v1345_v27  ;;  %v4180_v27 = vld [vmem:[%s5607_s4 + $0x18] sm:$0xff] }
 0xeef   :  { %3820 = vmatmul.msk.f32.vlgmr.msrb.gmra.mxu1 %vm230_vm11, %v1342_v24 }
 0xef0   :  { %1533 = vmatpush.msra.mxu1 %v1511_v49 }
 0xf0a   :  { %v1339_v28 = vpop.xlane.xlu2 %1338 }
 0xf0b   :  { %4058 = vrcp.f32 %v1339_v28 }
 0xf11   :  { %v4059_v29 = vpop.eup %4058 }
 0xf12   :  { %v1343_v32 = vmul.f32 %v4059_v29, %v4049_v1  ;;  %v4181_v29 = vld [vmem:[%s5607_s4 + $0x10] sm:$0xff] }
 0xf14   :  { %3821 = vmatmul.msk.f32.gmra.mxu1 %vm230_vm11, %v1343_v32  ;;  %v4182_v32 = vld [vmem:[%s5607_s4 + $0x8] sm:$0xff] }
 0xf18   :  { %v1458_v60 = vpop.xlane.xlu1 %1457 }
 0xf19   :  { %v1460_v33 = vsub.f32 %v1452_v8, %v1458_v60  ;;  %v4183_v60 = vld [vmem:[%s5607_s4] sm:$0xff] }
 0xf1b   :  { %v1463_v34 = vmul.f32 1.442695, %v1460_v33 }
 0xf1d   :  { %4060 = vpow2.f32 %v1463_v34 }
 0xf23   :  { %v4061_v31 = vpop.eup %4060 }
 0xf24   :  { %v1468_v12 = vsel %vm234_vm12, %v4061_v31, 0.0 }
 0xf25   :  { %1469 = vadd.xlane.f32.xlu1 %v1468_v12 }
 0xf30   :  { %v1478_v46 = vpop.permute.xlu1 %1477 }
 0xf31   :  { %3828 = vmatpush.msk.msrb.mxu3 %vm265_vm13, %v1478_v46 }
 0xf49   :  { %v1467_v37 = vpop.xlane.xlu0 %1466 }
 0xf4a   :  { %4062 = vrcp.f32 %v1467_v37 }
 0xf50   :  { %v1216_v38 = vpop.f32.mrf.mxu1  ;;  %v4063_v18 = vpop.eup %4062 }
 0xf51   :  { %3811 = vmatmul.msk.f32.vlgmr.msrb.gmra.mxu2 %vm196_vm10, %v1216_v38  ;;  %v1473_v40 = vmul.f32 %v4063_v18, %v4053_v16  ;;  %v1604_v16 = vld [vmem:[%s5614_s11 + $0x18] sm:$0xff] }
 0xf52   :  { %1625 = vmatpush.msrb.mxu2 %v1604_v16 }
 0xf54   :  { %1626 = vmatpush.msrb.mxu2 %v1603_v17  ;;  %v1728_v17 = vld [vmem:[%s5615_s12 + $0x20] sm:$0xff] }
 0xf56   :  { %1627 = vmatpush.msrb.mxu2 %v1602_v19 }
 0xf58   :  { %v1219_v39 = vpop.f32.mrf.mxu1  ;;  %1628 = vmatpush.msrb.mxu2 %v1601_v47  ;;  %v1727_v47 = vld [vmem:[%s5615_s12 + $0x18] sm:$0xff] }
 0xf59   :  { %3812 = vmatmul.msk.f32.gmra.mxu2 %vm196_vm10, %v1219_v39  ;;  %v3961_v39 = vld [vmem:[%s5606_s3 + $0xd] ss:$0 sm:$0xff] }
 0xf5c   :  { %v1476_v41 = vpop.permute.xlu0 %1475 }
 0xf5d   :  { %1503 = vmatpush.msrb.mxu3 %v1476_v41 }
 0xf5e   :  { %3829 = vmatmul.msk.f32.vlgmr.msrb.gmra.mxu3 %vm230_vm11, %v1473_v40 }
 0xf6c   :  { %v1374_v43 = vpop.f32.mrf.mxu1 }
 0xf6d   :  { %3822 = vmatmul.msk.f32.vlgmr.msra.gmra.mxu2 %vm196_vm10, %v1374_v43 }
 0xf6e   :  { %1919 = vmatpush.msra.mxu2 %v4178_v20 }
 0xf70   :  { %1920 = vmatpush.msra.mxu2 %v4179_v22  ;;  %v1726_v22 = vld [vmem:[%s5615_s12 + $0x10] sm:$0xff] }
 0xf72   :  { %1921 = vmatpush.msra.mxu2 %v4180_v27  ;;  %v1725_v27 = vld [vmem:[%s5615_s12 + $0x8] sm:$0xff] }
 0xf74   :  { %1922 = vmatpush.msra.mxu2 %v4181_v29  ;;  %v1724_v29 = vld [vmem:[%s5615_s12] sm:$0xff] }
 0xf76   :  { %1923 = vmatpush.msra.mxu2 %v4182_v32 }
 0xf78   :  { %1924 = vmatpush.msra.mxu2 %v4183_v60 }
 0xf91   :  { %v1377_v44 = vpop.f32.mrf.mxu1 }
 0xf92   :  { %3823 = vmatmul.msk.f32.gmra.mxu2 %vm196_vm10, %v1377_v44 }
 0xf98   :  { %v1470_v45 = vpop.xlane.xlu1 %1469 }
 0xf99   :  { %4064 = vrcp.f32 %v1470_v45 }
 0xf9f   :  { %v4065_v42 = vpop.eup %4064 }
 0xfa0   :  { %v1474_v48 = vmul.f32 %v4065_v42, %v4061_v31 }
 0xfa2   :  { %3830 = vmatmul.msk.f32.gmra.mxu3 %vm230_vm11, %v1474_v48 }
 0xfd4   :  { %v1246_v53 = vpop.f32.mrf.mxu2 }
 0xfd5   :  { %v1276_v55 = vadd.f32 %v4732_v25, %v1246_v53 }
 0xfdc   :  { %v1249_v23 = vpop.f32.mrf.mxu2 }
 0xfdd   :  { %v1279_v1 = vadd.f32 %v4734_v50, %v1249_v23 }
 0xfe1   :  { %v1505_v51 = vpop.f32.mrf.mxu3 }
 0xfe2   :  { %3831 = vmatmul.msk.f32.vlgmr.msra.gmra.mxu1 %vm196_vm10, %v1505_v51 }
 0xff0   :  { %v1404_v54 = vpop.f32.mrf.mxu2 }
 0xff1   :  { %v1410_v36 = vadd.f32 %v1404_v54, %v1276_v55 }
0x1015   :  { %v1407_v0 = vpop.f32.mrf.mxu2 }
0x1016   :  { %v1411_v2 = vadd.f32 %v1407_v0, %v1279_v1  ;;  %v1735_v0 = vld [vmem:[%s5615_s12 + $0x58] sm:$0xff] }
0x1025   :  { %v1508_v52 = vpop.f32.mrf.mxu3 }
0x1026   :  { %3832 = vmatmul.msk.f32.gmra.mxu1 %vm196_vm10, %v1508_v52 }
0x105f   :  { %v1535_v57 = vpop.f32.mrf.mxu1 }
0x1060   :  { %v1541_v58 = vadd.f32 %v1535_v57, %v1410_v36  ;;  %v1739_v36 = vld [vmem:[%s5615_s12 + $0x78] sm:$0xff]  ;;  %v3839_v57 = vld [vmem:[%s5603_s0 + $0x10] sm:$0xff] }
0x1061   :  { %1740 = vmatpush.msra.mxu0 %v1739_v36 }
0x1062   :  { %v1543_v62 = vadd.f32 %v1541_v58, %v4616_v56  ;;  %v1738_v58 = vld [vmem:[%s5615_s12 + $0x70] sm:$0xff] }
0x1063   :  { %1741 = vmatpush.msra.mxu0 %v1738_v58 }
0x1064   :  { %v4783_v63 = vadd.f32 %v3959_v59, %v1543_v62  ;;  %v4855_v62 = vld [vmem:[%s5606_s3 + $0xe] ss:$0 sm:$0xff] }
0x1066   :  { %v1551_v30 = vsel %vm96_vm1, %v4783_v63, 0.0 }
0x1067   :  { %1552 = vadd.xlane.f32.xlu2 %v1551_v30  ;;  %v1736_v30 = vld [vmem:[%s5615_s12 + $0x60] sm:$0xff] }
0x10a3   :  { %v1538_v25 = vpop.f32.mrf.mxu1 }
0x10a4   :  { %v1542_v3 = vadd.f32 %v1538_v25, %v1411_v2  ;;  %v1734_v25 = vld [vmem:[%s5615_s12 + $0x50] sm:$0xff] }
0x10a6   :  { %v1544_v8 = vadd.f32 %v1542_v3, %v4621_v9 }
0x10a8   :  { %v4789_v4 = vadd.f32 %v3959_v59, %v1544_v8  ;;  %v1737_v59 = vld [vmem:[%s5615_s12 + $0x68] sm:$0xff] }
0x10a9   :  { %1742 = vmatpush.msra.mxu0 %v1737_v59  ;;  %v1733_v8 = vld [vmem:[%s5615_s12 + $0x48] sm:$0xff] }
0x10aa   :  { %v1554_v5 = vsel %vm100_vm2, %v4789_v4, 0.0 }
0x10ab   :  { %1555 = vadd.xlane.f32.xlu2 %v1554_v5  ;;  %1743 = vmatpush.msra.mxu0 %v1736_v30 }
0x10ad   :  { %1744 = vmatpush.msra.mxu0 %v1735_v0 }
0x10af   :  { %1745 = vmatpush.msra.mxu0 %v1734_v25 }
0x10b1   :  { %1746 = vmatpush.msra.mxu0 %v1733_v8 }
0x10da   :  { %v1553_v56 = vpop.xlane.xlu2 %1552 }
0x10db   :  { %v1557_v6 = vmul.f32 %v1553_v56, %v4344_v26  ;;  %v1732_v56 = vld [vmem:[%s5615_s12 + $0x40] sm:$0xff] }
0x10dc   :  { %1747 = vmatpush.msra.mxu0 %v1732_v56 }
0x10dd   :  { %v1559_v7 = vsub.f32 %v4783_v63, %v1557_v6 }
0x10df   :  { %v1561_v10 = vmul.f32 %v1559_v7, %v1559_v7 }
0x10e1   :  { %v1563_v11 = vsel %vm96_vm1, %v1561_v10, 0.0 }
0x10e2   :  { %1564 = vadd.xlane.f32.xlu0 %v1563_v11 }
0x111e   :  { %v1556_v50 = vpop.xlane.xlu2 %1555 }
0x111f   :  { %v1558_v13 = vmul.f32 %v1556_v50, %v4344_v26  ;;  %v1730_v50 = vld [vmem:[%s5615_s12 + $0x30] sm:$0xff] }
0x1121   :  { %v1560_v9 = vsub.f32 %v4789_v4, %v1558_v13 }
0x1123   :  { %v1562_v14 = vmul.f32 %v1560_v9, %v1560_v9 }
0x1125   :  { %v1566_v15 = vsel %vm100_vm2, %v1562_v14, 0.0  ;;  %v1729_v14 = vld [vmem:[%s5615_s12 + $0x28] sm:$0xff] }
0x1126   :  { %1567 = vadd.xlane.f32.xlu2 %v1566_v15 }
0x1155   :  { %v1565_v21 = vpop.xlane.xlu0 %1564 }
0x1156   :  { %v1569_v24 = vmul.f32 %v1565_v21, %v4344_v26 }
0x1158   :  { %v1571_v28 = vadd.f32 1e-12, %v1569_v24 }
0x115a   :  { %4066 = vrsqrt.f32 %v1571_v28  ;;  %vm1579_vm4 = vweird.f32 %v1571_v28 }
0x1160   :  { %v4067_v33 = vpop.eup %4066 }
0x1161   :  { %v1574_v34 = vmul.f32 %v4067_v33, %v1571_v28  ;;  %vm1580_vm3 = vweird.f32 %v4067_v33 }
0x1162   :  { %vm1581_vm5 = vmor %vm1579_vm4, %vm1580_vm3 }
0x1163   :  { %v1575_v31 = vmul.f32 %v4067_v33, %v1574_v34 }
0x1165   :  { %v1576_v12 = vmul.f32 0.5, %v1575_v31 }
0x1167   :  { %v1577_v46 = vsub.f32 1.5, %v1576_v12 }
0x1169   :  { %v1578_v61 = vmul.f32 %v4067_v33, %v1577_v46 }
0x116b   :  { %v1582_v37 = vsel %vm1581_vm5, %v4067_v33, %v1578_v61 }
0x116c   :  { %v1593_v38 = vmul.f32 %v1582_v37, %v1559_v7  ;;  %v1731_v7 = vld [vmem:[%s5615_s12 + $0x38] sm:$0xff] }
0x116d   :  { %1748 = vmatpush.msra.mxu0 %v1731_v7 }
0x116e   :  { %v1596_v18 = vmul.f32 %v3960_v35, %v1593_v38 }
0x116f   :  { %1749 = vmatpush.msra.mxu0 %v1730_v50 }
0x1170   :  { %v1599_v40 = vadd.f32 %v3961_v39, %v1596_v18 }
0x1171   :  { %1750 = vmatpush.msra.mxu0 %v1729_v14 }
0x1172   :  { %3833 = vmatmul.msk.f32.vlgmr.msrb.gmra.mxu2 %vm96_vm1, %v1599_v40 }
0x1173   :  { %1751 = vmatpush.msra.mxu0 %v1728_v17 }
0x1175   :  { %1752 = vmatpush.msra.mxu0 %v1727_v47 }
0x1177   :  { %1753 = vmatpush.msra.mxu0 %v1726_v22 }
0x1179   :  { %1754 = vmatpush.msra.mxu0 %v1725_v27 }
0x117b   :  { %1755 = vmatpush.msra.mxu0 %v1724_v29 }
0x1199   :  { %v1568_v41 = vpop.xlane.xlu2 %1567 }
0x119a   :  { %v1570_v43 = vmul.f32 %v1568_v41, %v4344_v26 }
0x119c   :  { %v1572_v44 = vadd.f32 1e-12, %v1570_v43 }
0x119e   :  { %4068 = vrsqrt.f32 %v1572_v44  ;;  %vm1589_vm7 = vweird.f32 %v1572_v44 }
0x11a4   :  { %v4069_v45 = vpop.eup %4068 }
0x11a5   :  { %v1584_v42 = vmul.f32 %v4069_v45, %v1572_v44  ;;  %vm1590_vm6 = vweird.f32 %v4069_v45 }
0x11a6   :  { %vm1591_vm8 = vmor %vm1589_vm7, %vm1590_vm6 }
0x11a7   :  { %v1585_v48 = vmul.f32 %v4069_v45, %v1584_v42 }
0x11a9   :  { %v1586_v49 = vmul.f32 0.5, %v1585_v48 }
0x11ab   :  { %v1587_v51 = vsub.f32 1.5, %v1586_v49 }
0x11ad   :  { %v1588_v52 = vmul.f32 %v4069_v45, %v1587_v51 }
0x11af   :  { %v1592_v53 = vsel %vm1591_vm8, %v4069_v45, %v1588_v52 }
0x11b0   :  { %v1594_v23 = vmul.f32 %v1592_v53, %v1560_v9 }
0x11b2   :  { %v1597_v54 = vmul.f32 %v3960_v35, %v1594_v23 }
0x11b4   :  { %v1600_v55 = vadd.f32 %v3961_v39, %v1597_v54 }
0x11b6   :  { %3834 = vmatmul.msk.f32.gmra.mxu2 %vm96_vm1, %v1600_v55 }
0x11be   :  { %3841 = vmatmul.msk.f32.vlgmr.msra.gmra.mxu2 %vm56_vm0, %v3839_v57 }
0x11f5   :  { %v1630_v1 = vpop.f32.mrf.mxu2 }
0x11f6   :  { %v4864_v2 = vadd.f32 %v4855_v62, %v1630_v1 }
0x11f8   :  { %v1638_v3 = vmul.f32 0.70710677, %v4864_v2  ;;  %v1636_v52 = vmul.f32 0.5, %v4864_v2 }
0x11fa   :  { %v1640_v5 = vmul.f32 %v1638_v3, %v1638_v3 }
0x11fc   :  { %v1641_v6 = vmin.f32 %v1640_v5, 16.0 }
0x11fe   :  { %v1642_v10 = vmul.f32 2.1237322e-06, %v1641_v6  ;;  %v1653_v11 = vmul.f32 3.8918573e-05, %v1641_v6 }
0x1200   :  { %v1643_v13 = vadd.f32 0.00028619796, %v1642_v10  ;;  %v1654_v9 = vadd.f32 0.001143296, %v1653_v11  ;;  %v3840_v10 = vld [vmem:[%s5603_s0 + $0x18] sm:$0x1] }
0x1201   :  { %3842 = vmatmul.msk.f32.gmra.mxu2 %vm56_vm0, %v3840_v10 }
0x1202   :  { %v1644_v15 = vmul.f32 %v1643_v13, %v1641_v6  ;;  %v1655_v16 = vmul.f32 %v1654_v9, %v1641_v6 }
0x1204   :  { %v1656_v19 = vadd.f32 0.014752088, %v1655_v16  ;;  %v1645_v20 = vadd.f32 0.0036580483, %v1644_v15 }
0x1206   :  { %v1657_v21 = vmul.f32 %v1656_v19, %v1641_v6  ;;  %v1646_v28 = vmul.f32 %v1645_v20, %v1641_v6 }
0x1208   :  { %v1658_v24 = vadd.f32 0.112945676, %v1657_v21  ;;  %v1647_v33 = vadd.f32 0.05243302, %v1646_v28 }
0x120a   :  { %v1659_v32 = vmul.f32 %v1658_v24, %v1641_v6  ;;  %v1648_v12 = vmul.f32 %v1647_v33, %v1641_v6 }
0x120c   :  { %v1660_v60 = vadd.f32 0.4994258, %v1659_v32  ;;  %v1649_v46 = vadd.f32 0.18741608, %v1648_v12 }
0x120e   :  { %v1661_v34 = vmul.f32 %v1660_v60, %v1641_v6  ;;  %v1650_v35 = vmul.f32 %v1649_v46, %v1641_v6  ;;  %v3843_v46 = vld [vmem:[%s5604_s1 + $0x10] sm:$0xff] }
0x1210   :  { %v1662_v31 = vadd.f32 1.0, %v1661_v34  ;;  %v1651_v18 = vadd.f32 1.1283791, %v1650_v35  ;;  %v3845_v35 = vld [vmem:[%s5605_s2 + $0x10] sm:$0xff] }
0x1212   :  { %4070 = vrcp.f32 %v1662_v31  ;;  %v1674_v39 = vand.u32 2147483648, %v1662_v31  ;;  %v1672_v41 = vand.u32 2147483647, %v1662_v31  ;;  %vm1668_vm14 = vweird.f32 %v1662_v31 }
0x1213   :  { %v1652_v45 = vmul.f32 %v1651_v18, %v1638_v3  ;;  %v3963_v18 = vld [vmem:[%s5606_s3 + $0xf] ss:$0 sm:$0xff] }
0x1214   :  { %v1675_v44 = vor.u32 1.1754944e-38, %v1674_v39  ;;  %vm1673_vm3 = vcmp.eq.f32.partialorder %v1672_v41, 8.507059e+37 }
0x1218   :  { %v4071_v61 = vpop.eup %4070 }
0x1219   :  { %v1664_v37 = vmul.f32 %v4071_v61, %v1662_v31  ;;  %vm1669_vm9 = vweird.f32 %v4071_v61 }
0x121a   :  { %vm1670_vm15 = vmor %vm1668_vm14, %vm1669_vm9 }
0x121b   :  { %v1665_v38 = vsub.f32 1.0, %v1664_v37 }
0x121d   :  { %v1666_v40 = vmul.f32 %v4071_v61, %v1665_v38 }
0x121f   :  { %v1667_v43 = vadd.f32 %v4071_v61, %v1666_v40 }
0x1221   :  { %v1671_v42 = vsel %vm1670_vm15, %v4071_v61, %v1667_v43 }
0x1222   :  { %v1676_v48 = vsel %vm1673_vm3, %v1675_v44, %v1671_v42 }
0x1223   :  { %v1677_v49 = vmul.f32 %v1676_v48, %v1652_v45  ;;  %v3844_v48 = vld [vmem:[%s5604_s1 + $0x18] sm:$0x1] }
0x1225   :  { %v3835_v51 = vclamps-f32 %v1677_v49, 1.0 }
0x1227   :  { %v1720_v53 = vadd.f32 1.0, %v3835_v51 }
0x1229   :  { %v1722_v23 = vmul.f32 %v1720_v53, %v1636_v52  ;;  %v3846_v53 = vld [vmem:[%s5605_s2 + $0x18] sm:$0x1] }
0x122b   :  { %1756 = vmatmul.f32.vlgmr.msra.gmra.mxu0 %v1722_v23 }
0x1239   :  { %v1633_v54 = vpop.f32.mrf.mxu2 }
0x123a   :  { %v1634_v55 = vadd.f32 %v4855_v62, %v1633_v54 }
0x123c   :  { %v1639_v36 = vmul.f32 0.70710677, %v1634_v55  ;;  %v1637_v34 = vmul.f32 0.5, %v1634_v55 }
0x123e   :  { %v1680_v57 = vmul.f32 %v1639_v36, %v1639_v36 }
0x1240   :  { %v1681_v58 = vmin.f32 %v1680_v57, 16.0 }
0x1241   :  { %v1926_v61 = vpop.f32.mrf.mxu2 }
0x1242   :  { %v1682_v59 = vmul.f32 2.1237322e-06, %v1681_v58  ;;  %v1693_v30 = vmul.f32 3.8918573e-05, %v1681_v58  ;;  %v1935_v37 = vmul.f32 %v3843_v46, %v1926_v61  ;;  %v1837_v61 = vld [vmem:[%s5616_s13 + $0x28] sm:$0xff] }
0x1244   :  { %v1683_v0 = vadd.f32 0.00028619796, %v1682_v59  ;;  %v1694_v1 = vadd.f32 0.001143296, %v1693_v30  ;;  %v4912_v38 = vadd.f32 %v3845_v35, %v1935_v37 }
0x1246   :  { %v1684_v25 = vmul.f32 %v1683_v0, %v1681_v58  ;;  %v1695_v3 = vmul.f32 %v1694_v1, %v1681_v58  ;;  %v1944_v39 = vsel %vm96_vm1, %v4912_v38, 0.0 }
0x1247   :  { %1945 = vadd.xlane.f32.xlu1 %v1944_v39  ;;  %v1836_v39 = vld [vmem:[%s5616_s13 + $0x20] sm:$0xff] }
0x1248   :  { %v1696_v8 = vadd.f32 0.014752088, %v1695_v3  ;;  %v1685_v5 = vadd.f32 0.0036580483, %v1684_v25 }
0x124a   :  { %v1697_v56 = vmul.f32 %v1696_v8, %v1681_v58  ;;  %v1686_v2 = vmul.f32 %v1685_v5, %v1681_v58 }
0x124c   :  { %v1698_v6 = vadd.f32 0.112945676, %v1697_v56  ;;  %v1687_v11 = vadd.f32 0.05243302, %v1686_v2 }
0x124e   :  { %v1699_v7 = vmul.f32 %v1698_v6, %v1681_v58  ;;  %v1688_v9 = vmul.f32 %v1687_v11, %v1681_v58 }
0x1250   :  { %v1700_v62 = vadd.f32 0.4994258, %v1699_v7  ;;  %v1689_v14 = vadd.f32 0.18741608, %v1688_v9  ;;  %v1833_v9 = vld [vmem:[%s5616_s13 + $0x8] sm:$0xff] }
0x1252   :  { %v1701_v50 = vmul.f32 %v1700_v62, %v1681_v58  ;;  %v1690_v16 = vmul.f32 %v1689_v14, %v1681_v58  ;;  %v1832_v14 = vld [vmem:[%s5616_s13] sm:$0xff] }
0x1254   :  { %v1702_v13 = vadd.f32 1.0, %v1701_v50  ;;  %v1691_v20 = vadd.f32 1.1283791, %v1690_v16  ;;  %v1835_v50 = vld [vmem:[%s5616_s13 + $0x18] sm:$0xff] }
0x1255   :  { %1878 = vmatpush.msrb.mxu1 %v1835_v50 }
0x1256   :  { %4072 = vrcp.f32 %v1702_v13  ;;  %v1714_v47 = vand.u32 2147483648, %v1702_v13  ;;  %v1712_v22 = vand.u32 2147483647, %v1702_v13  ;;  %vm1708_vm5 = vweird.f32 %v1702_v13 }
0x1257   :  { %v1692_v28 = vmul.f32 %v1691_v20, %v1639_v36 }
0x1258   :  { %v1715_v27 = vor.u32 1.1754944e-38, %v1714_v47  ;;  %vm1713_vm0 = vcmp.eq.f32.partialorder %v1712_v22, 8.507059e+37 }
0x125c   :  { %v4073_v15 = vpop.eup %4072 }
0x125d   :  { %v1704_v17 = vmul.f32 %v4073_v15, %v1702_v13  ;;  %vm1709_vm4 = vweird.f32 %v4073_v15  ;;  %v1834_v13 = vld [vmem:[%s5616_s13 + $0x10] sm:$0xff] }
0x125e   :  { %vm1710_vm6 = vmor %vm1708_vm5, %vm1709_vm4  ;;  %1879 = vmatpush.msrb.mxu1 %v1834_v13 }
0x125f   :  { %v1705_v19 = vsub.f32 1.0, %v1704_v17 }
0x1260   :  { %1880 = vmatpush.msrb.mxu1 %v1833_v9 }
0x1261   :  { %v1706_v21 = vmul.f32 %v4073_v15, %v1705_v19 }
0x1262   :  { %1881 = vmatpush.msrb.mxu1 %v1832_v14 }
0x1263   :  { %v1707_v24 = vadd.f32 %v4073_v15, %v1706_v21 }
0x1265   :  { %v1711_v29 = vsel %vm1710_vm6, %v4073_v15, %v1707_v24 }
0x1266   :  { %v1716_v32 = vsel %vm1713_vm0, %v1715_v27, %v1711_v29  ;;  %v3964_v27 = vld [vmem:[%s5606_s3 + $0x10] ss:$0 sm:$0xff] }
0x1267   :  { %v1717_v60 = vmul.f32 %v1716_v32, %v1692_v28  ;;  %v3966_v32 = vld [vmem:[%s5606_s3 + $0x11] ss:$0 sm:$0xff] }
0x1269   :  { %v3836_v33 = vclamps-f32 %v1717_v60, 1.0 }
0x126b   :  { %v1721_v31 = vadd.f32 1.0, %v3836_v33 }
0x126d   :  { %v1723_v12 = vmul.f32 %v1721_v31, %v1637_v34  ;;  %v1839_v31 = vld [vmem:[%s5616_s13 + $0x38] sm:$0xff] }
0x126e   :  { %1855 = vmatpush.msra.mxu3 %v1839_v31  ;;  %v3968_v31 = vld [vmem:[%s5606_s3 + $0x2] ss:$0 sm:$0xff] }
0x126f   :  { %1759 = vmatmul.f32.gmra.mxu0 %v1723_v12  ;;  %v1838_v12 = vld [vmem:[%s5616_s13 + $0x30] sm:$0xff] }
0x1270   :  { %1856 = vmatpush.msra.mxu3 %v1838_v12 }
0x1272   :  { %1857 = vmatpush.msra.mxu3 %v1837_v61 }
0x1274   :  { %1858 = vmatpush.msra.mxu3 %v1836_v39 }
0x1284   :  { %v1929_v42 = vpop.f32.mrf.mxu2 }
0x1285   :  { %v1936_v52 = vmul.f32 %v3844_v48, %v1929_v42 }
0x1287   :  { %v4929_v23 = vadd.f32 %v3846_v53, %v1936_v52 }
0x1289   :  { %v1947_v54 = vsel %vm100_vm2, %v4929_v23, 0.0 }
0x12a8   :  { %v1757_v40 = vpop.f32.mrf.mxu0 }
0x12a9   :  { %v1763_v41 = vadd.f32 %v1757_v40, %v4783_v63 }
0x12ab   :  { %v1767_v43 = vadd.f32 %v3963_v18, %v1763_v41 }
0x12ad   :  { %v1771_v44 = vsel %vm96_vm1, %v1767_v43, 0.0 }
0x12ae   :  { %1772 = vadd.xlane.f32.xlu2 %v1771_v44 }
0x12ba   :  { %v1946_v55 = vpop.xlane.xlu1 %1945 }
0x12ec   :  { %v1760_v45 = vpop.f32.mrf.mxu0 }
0x12ed   :  { %v1764_v49 = vadd.f32 %v1760_v45, %v4789_v4  ;;  %v1950_v4 = vmul.f32 %v1946_v55, %v4344_v26 }
0x12ef   :  { %v1768_v51 = vadd.f32 %v3963_v18, %v1764_v49  ;;  %v4936_v30 = vsub.f32 %v4912_v38, %v1950_v4  ;;  %v1997_v49 = vld [vmem:[%s5608_s5 + $0x18] sm:$0xff] }
0x12f0   :  { %2018 = vmatpush.msrb.mxu3 %v1997_v49 }
0x12f1   :  { %v1774_v63 = vsel %vm100_vm2, %v1768_v51, 0.0  ;;  %v1954_v1 = vmul.f32 %v4936_v30, %v4936_v30 }
0x12f2   :  { %1775 = vadd.xlane.f32.xlu2 %v1774_v63  ;;  %v1995_v63 = vld [vmem:[%s5608_s5 + $0x8] sm:$0xff] }
0x12f3   :  { %v1956_v25 = vsel %vm96_vm1, %v1954_v1, 0.0 }
0x12fa   :  { %1948 = vadd.xlane.f32.xlu2 %v1947_v54 }
0x1321   :  { %v1773_v36 = vpop.xlane.xlu2 %1772 }
0x1322   :  { %v1777_v57 = vmul.f32 %v1773_v36, %v4344_v26  ;;  %v1994_v36 = vld [vmem:[%s5608_s5] sm:$0xff] }
0x1324   :  { %v1779_v58 = vsub.f32 %v1767_v43, %v1777_v57 }
0x1326   :  { %v1781_v59 = vmul.f32 %v1779_v58, %v1779_v58 }
0x1328   :  { %v1783_v0 = vsel %vm96_vm1, %v1781_v59, 0.0 }
0x1329   :  { %1784 = vadd.xlane.f32.xlu1 %v1783_v0 }
0x1331   :  { %1957 = vadd.xlane.f32.xlu1 %v1956_v25 }
0x1365   :  { %v1776_v3 = vpop.xlane.xlu2 %1775 }
0x1366   :  { %v1778_v8 = vmul.f32 %v1776_v3, %v4344_v26 }
0x1368   :  { %v4943_v5 = vsub.f32 %v1768_v51, %v1778_v8  ;;  %v1996_v51 = vld [vmem:[%s5608_s5 + $0x10] sm:$0xff] }
0x1369   :  { %2019 = vmatpush.msrb.mxu3 %v1996_v51 }
0x136a   :  { %v1782_v56 = vmul.f32 %v4943_v5, %v4943_v5 }
0x136b   :  { %2020 = vmatpush.msrb.mxu3 %v1995_v63 }
0x136c   :  { %v1786_v6 = vsel %vm100_vm2, %v1782_v56, 0.0 }
0x136d   :  { %1787 = vadd.xlane.f32.xlu2 %v1786_v6  ;;  %v1949_v2 = vpop.xlane.xlu2 %1948  ;;  %2021 = vmatpush.msrb.mxu3 %v1994_v36 }
0x136e   :  { %v1951_v7 = vmul.f32 %v1949_v2, %v4344_v26 }
0x1370   :  { %v4950_v10 = vsub.f32 %v4929_v23, %v1951_v7 }
0x1372   :  { %v1955_v62 = vmul.f32 %v4950_v10, %v4950_v10 }
0x1374   :  { %v1959_v11 = vsel %vm100_vm2, %v1955_v62, 0.0 }
0x1375   :  { %1960 = vadd.xlane.f32.xlu0 %v1959_v11 }
0x139c   :  { %v1785_v15 = vpop.xlane.xlu1 %1784 }
0x139d   :  { %v1789_v16 = vmul.f32 %v1785_v15, %v4344_v26 }
0x139f   :  { %v1791_v17 = vadd.f32 1e-12, %v1789_v16 }
0x13a1   :  { %4074 = vrsqrt.f32 %v1791_v17  ;;  %vm1799_vm8 = vweird.f32 %v1791_v17 }
0x13a4   :  { %v1958_v35 = vpop.xlane.xlu1 %1957 }
0x13a5   :  { %v1962_v18 = vmul.f32 %v1958_v35, %v4344_v26 }
0x13a7   :  { %v4075_v19 = vpop.eup %4074  ;;  %v1964_v40 = vadd.f32 1e-12, %v1962_v18 }
0x13a8   :  { %v1794_v47 = vmul.f32 %v4075_v19, %v1791_v17  ;;  %vm1800_vm7 = vweird.f32 %v4075_v19 }
0x13a9   :  { %vm1801_vm9 = vmor %vm1799_vm8, %vm1800_vm7  ;;  %vm1972_vm5 = vweird.f32 %v1964_v40 }
0x13aa   :  { %v1795_v20 = vmul.f32 %v4075_v19, %v1794_v47 }
0x13ac   :  { %v1796_v21 = vmul.f32 0.5, %v1795_v20  ;;  %v3965_v20 = vld [vmem:[%s5606_s3] ss:$0 sm:$0xff] }
0x13ae   :  { %v1797_v22 = vsub.f32 1.5, %v1796_v21 }
0x13b0   :  { %v1798_v24 = vmul.f32 %v4075_v19, %v1797_v22 }
0x13b2   :  { %v1802_v28 = vsel %vm1801_vm9, %v4075_v19, %v1798_v24 }
0x13b3   :  { %v1813_v29 = vmul.f32 %v1802_v28, %v1779_v58  ;;  %v3967_v28 = vld [vmem:[%s5606_s3 + $0x1] ss:$0 sm:$0xff] }
0x13b5   :  { %v1816_v60 = vmul.f32 %v3964_v27, %v1813_v29 }
0x13b7   :  { %v4974_v33 = vadd.f32 %v3966_v32, %v1816_v60 }
0x13b9   :  { %3838 = vmatmul.msk.f32.vlgmr.msrb.gmra.mxu1 %vm96_vm1, %v4974_v33  ;;  %v1821_v3 = vsel %vm96_vm1, %v4974_v33, 0.0 }
0x13e0   :  { %v1788_v34 = vpop.xlane.xlu2 %1787 }
0x13e1   :  { %v1790_v46 = vmul.f32 %v1788_v34, %v4344_v26 }
0x13e3   :  { %v1792_v37 = vadd.f32 1e-12, %v1790_v46 }
0x13e5   :  { %4076 = vrsqrt.f32 %v1792_v37  ;;  %vm1809_vm15 = vweird.f32 %v1792_v37 }
0x13e6   :  { %4078 = vrsqrt.f32 %v1964_v40 }
0x13e8   :  { %v1961_v43 = vpop.xlane.xlu0 %1960 }
0x13e9   :  { %v1963_v42 = vmul.f32 %v1961_v43, %v4344_v26 }
0x13eb   :  { %v4077_v41 = vpop.eup %4076  ;;  %v1965_v53 = vadd.f32 1e-12, %v1963_v42 }
0x13ec   :  { %v1804_v44 = vmul.f32 %v4077_v41, %v1792_v37  ;;  %vm1810_vm14 = vweird.f32 %v4077_v41  ;;  %v4079_v54 = vpop.eup %4078 }
0x13ed   :  { %vm1811_vm3 = vmor %vm1809_vm15, %vm1810_vm14  ;;  %4080 = vrsqrt.f32 %v1965_v53  ;;  %v1967_v4 = vmul.f32 %v4079_v54, %v1964_v40  ;;  %vm1973_vm4 = vweird.f32 %v4079_v54  ;;  %vm1982_vm7 = vweird.f32 %v1965_v53 }
0x13ee   :  { %v1805_v45 = vmul.f32 %v4077_v41, %v1804_v44  ;;  %vm1974_vm6 = vmor %vm1972_vm5, %vm1973_vm4 }
0x13ef   :  { %v1968_v0 = vmul.f32 %v4079_v54, %v1967_v4 }
0x13f0   :  { %v1806_v48 = vmul.f32 0.5, %v1805_v45 }
0x13f1   :  { %v1969_v6 = vmul.f32 0.5, %v1968_v0 }
0x13f2   :  { %v1807_v52 = vsub.f32 1.5, %v1806_v48 }
0x13f3   :  { %v4081_v25 = vpop.eup %4080  ;;  %v1970_v11 = vsub.f32 1.5, %v1969_v6 }
0x13f4   :  { %v1808_v55 = vmul.f32 %v4077_v41, %v1807_v52  ;;  %v1977_v2 = vmul.f32 %v4081_v25, %v1965_v53  ;;  %vm1983_vm0 = vweird.f32 %v4081_v25 }
0x13f5   :  { %vm1984_vm8 = vmor %vm1982_vm7, %vm1983_vm0 }
0x13f6   :  { %v1812_v57 = vsel %vm1811_vm3, %v4077_v41, %v1808_v55  ;;  %v1978_v50 = vmul.f32 %v4081_v25, %v1977_v2 }
0x13f7   :  { %v1814_v58 = vmul.f32 %v1812_v57, %v4943_v5  ;;  %v1971_v5 = vmul.f32 %v4079_v54, %v1970_v11 }
0x13f8   :  { %v1979_v14 = vmul.f32 0.5, %v1978_v50 }
0x13f9   :  { %v1817_v59 = vmul.f32 %v3964_v27, %v1814_v58  ;;  %v1975_v17 = vsel %vm1974_vm6, %v4079_v54, %v1971_v5 }
0x13fa   :  { %v1980_v19 = vsub.f32 1.5, %v1979_v14  ;;  %v1986_v21 = vmul.f32 %v1975_v17, %v4936_v30 }
0x13fb   :  { %v1820_v1 = vadd.f32 %v3966_v32, %v1817_v59 }
0x13fc   :  { %v1981_v24 = vmul.f32 %v4081_v25, %v1980_v19  ;;  %v1989_v27 = vmul.f32 %v3965_v20, %v1986_v21 }
0x13fd   :  { %v1822_v8 = vsel %vm100_vm2, %v1820_v1, 0.0 }
0x13fe   :  { %v1823_v56 = vadd.f32 %v1822_v8, %v1821_v3  ;;  %v1985_v29 = vsel %vm1984_vm8, %v4081_v25, %v1981_v24  ;;  %v1992_v32 = vadd.f32 %v3967_v28, %v1989_v27 }
0x13ff   :  { %v1987_v60 = vmul.f32 %v1985_v29, %v4950_v10 }
0x1400   :  { %v1824_v7 = vrot.slane %v1823_v56, 4 }
0x1402   :  { %v1825_v62 = vadd.f32 %v1824_v7, %v1823_v56 }
0x1404   :  { %v1826_v13 = vrot.slane %v1825_v62, 2 }
0x1406   :  { %v1827_v9 = vadd.f32 %v1826_v13, %v1825_v62  ;;  %v2126_v13 = vld [vmem:[%s5609_s6] sm:$0xff] }
0x1408   :  { %v1828_v15 = vrot.slane %v1827_v9, 1 }
0x140a   :  { %v1829_v16 = vadd.f32 %v1828_v15, %v1827_v9 }
0x140c   :  { %v1830_v47 = vsub.f32 %v1829_v16, %v4974_v33  ;;  %v1990_v33 = vmul.f32 %v3965_v20, %v1987_v60 }
0x140e   :  { %v1831_v22 = vmul.f32 0.125, %v1830_v47  ;;  %v1993_v30 = vadd.f32 %v3967_v28, %v1990_v33 }
0x1410   :  { %3837 = vmatmul.msk.f32.vlgmr.msra.gmra.mxu3 %vm96_vm1, %v1831_v22 }
0x1418   :  { %3847 = vmatmul.msk.f32.vlgmr.msrb.gmra.mxu3 %vm96_vm1, %v1992_v32 }
0x1420   :  { %3848 = vmatmul.msk.f32.gmra.mxu3 %vm96_vm1, %v1993_v30 }
0x1436   :  { %v5061_v44 = vpop.f32.mrf.mxu1 }
0x1493   :  { %v5021_v34 = vpop.f32.mrf.mxu3 }
0x149b   :  { %v2023_v12 = vpop.f32.mrf.mxu3 }
0x149c   :  { %v5026_v46 = vadd.f32 %v3968_v31, %v2023_v12 }
0x149e   :  { %2031 = vrot.lane.b32.xlu1 %v5026_v46, %s4211_s19 }
0x14a3   :  { %v2026_v61 = vpop.f32.mrf.mxu3 }
0x14a4   :  { %v5030_v10 = vadd.f32 %v3968_v31, %v2026_v61 }
0x14a6   :  { %2033 = vrot.lane.b32.xlu2 %v5030_v10, %s4211_s19 }
0x14ae   :  { %2092 = vrot.lane.b32.xlu2 %v5030_v10, %s5643_s15 }
0x14b6   :  { %2133 = vrot.lane.b32.xlu2 %v5030_v10, %s5644_s27 }
0x14be   :  { %2131 = vrot.lane.b32.xlu2 %v5026_v46, %s5644_s27 }
0x14c6   :  { %2127 = vrot.lane.b32.xlu2 %v5026_v46, %s5645_s17 }
0x14ce   :  { %2129 = vrot.lane.b32.xlu2 %v5030_v10, %s5645_s17 }
0x14d6   :  { %2420 = vrot.lane.b32.xlu2 %v5026_v46, %s5639_s16 }
0x14de   :  { %2285 = vrot.lane.b32.xlu2 %v5026_v46, %s5646_s18 }
0x14e6   :  { %2287 = vrot.lane.b32.xlu2 %v5030_v10, %s5646_s18 }
0x1500   :  { %v2034_v35 = vpop.permute.xlu2 %2033 }
0x1501   :  { %3849 = vmatpush.xpose.msk.msra.mxu1 %vm196_vm10, %v2034_v35 }
0x1508   :  { %v2093_v37 = vpop.permute.xlu2 %2092 }
0x1509   :  { %3853 = vmatpush.msk.msrb.mxu2 %vm265_vm13, %v2093_v37 }
0x1510   :  { %v2134_v39 = vpop.permute.xlu2 %2133  ;;  %v2032_v18 = vpop.permute.xlu1 %2031 }
0x1511   :  { %3850 = vmatpush.xpose.msk.msra.mxu1 %vm196_vm10, %v2032_v18  ;;  %3856 = vmatpush.xpose.msk.msrb.mxu0 %vm196_vm10, %v2134_v39 }
0x1514   :  { %3851 = vmatmul.msk.f32.vlgmr.msra.gmra.mxu1 %vm196_vm10, %v5026_v46 }
0x1518   :  { %v2132_v40 = vpop.permute.xlu2 %2131 }
0x1519   :  { %3857 = vmatpush.xpose.msk.msrb.mxu0 %vm196_vm10, %v2132_v40 }
0x151c   :  { %3852 = vmatmul.msk.f32.gmra.mxu1 %vm196_vm10, %v5030_v10 }
0x1520   :  { %v2128_v41 = vpop.permute.xlu2 %2127 }
0x1521   :  { %3858 = vmatmul.msk.f32.vlgmr.msrb.gmra.mxu0 %vm196_vm10, %v2128_v41 }
0x1528   :  { %v2130_v43 = vpop.permute.xlu2 %2129 }
0x1529   :  { %3859 = vmatmul.msk.f32.gmra.mxu0 %vm196_vm10, %v2130_v43 }
0x1530   :  { %v2421_v15 = vpop.permute.xlu2 %2420 }
0x1538   :  { %v2286_v19 = vpop.permute.xlu2 %2285 }
0x1540   :  { %v2288_v47 = vpop.permute.xlu2 %2287 }
0x1591   :  { %v2060_v45 = vpop.f32.mrf.mxu1 }
0x1592   :  { %v2066_v42 = vmul.f32 0.35355338, %v2060_v45 }
0x1594   :  { %v2068_v48 = vsel %vm230_vm11, %v2066_v42, -inf }
0x1595   :  { %2069 = vmax.xlane.f32.xlu0 %v2068_v48 }
0x1599   :  { %v2063_v49 = vpop.f32.mrf.mxu1 }
0x159a   :  { %v2067_v51 = vmul.f32 0.35355338, %v2063_v49 }
0x159c   :  { %v2071_v52 = vsel %vm234_vm12, %v2067_v51, -inf }
0x159d   :  { %2072 = vmax.xlane.f32.xlu0 %v2071_v52 }
0x159e   :  { %v2160_v53 = vpop.f32.mrf.mxu0 }
0x159f   :  { %v2166_v56 = vmul.f32 0.35355338, %v2160_v53 }
0x15a1   :  { %v2168_v6 = vsel %vm230_vm11, %v2166_v56, -inf }
0x15a6   :  { %v2163_v63 = vpop.f32.mrf.mxu0 }
0x15a7   :  { %v5065_v54 = vmul.f32 0.35355338, %v2163_v63 }
0x15a9   :  { %v2171_v55 = vsel %vm234_vm12, %v5065_v54, -inf }
0x15aa   :  { %2172 = vmax.xlane.f32.xlu2 %v2171_v55 }
0x1608   :  { %v2070_v36 = vpop.xlane.xlu0 %2069 }
0x1609   :  { %v2074_v57 = vsub.f32 %v2066_v42, %v2070_v36 }
0x160b   :  { %v2076_v4 = vmul.f32 1.442695, %v2074_v57 }
0x160d   :  { %4082 = vpow2.f32 %v2076_v4 }
0x1610   :  { %v2073_v58 = vpop.xlane.xlu0 %2072 }
0x1611   :  { %v2075_v59 = vsub.f32 %v2067_v51, %v2073_v58 }
0x1613   :  { %v4083_v0 = vpop.eup %4082  ;;  %v2078_v1 = vmul.f32 1.442695, %v2075_v59 }
0x1614   :  { %v2080_v25 = vsel %vm230_vm11, %v4083_v0, 0.0 }
0x1615   :  { %4084 = vpow2.f32 %v2078_v1  ;;  %2081 = vadd.xlane.f32.xlu0 %v2080_v25 }
0x161b   :  { %v4085_v3 = vpop.eup %4084 }
0x161c   :  { %v2083_v8 = vsel %vm234_vm12, %v4085_v3, 0.0 }
0x161d   :  { %2084 = vadd.xlane.f32.xlu1 %v2083_v8  ;;  %v2173_v39 = vpop.xlane.xlu2 %2172 }
0x161e   :  { %v2175_v42 = vsub.f32 %v5065_v54, %v2173_v39 }
0x1629   :  { %2090 = vrot.lane.b32.xlu0 %v5026_v46, %s5643_s15 }
0x1631   :  { %2422 = vrot.lane.b32.xlu0 %v5030_v10, %s5639_s16 }
0x1636   :  { %2289 = vrot.lane.b32.xlu1 %v5026_v46, %s5647_s22 }
0x1639   :  { %2291 = vrot.lane.b32.xlu0 %v5030_v10, %s5647_s22 }
0x1641   :  { %2416 = vrot.lane.b32.xlu0 %v5026_v46, %s5638_s28 }
0x1649   :  { %2418 = vrot.lane.b32.xlu0 %v5030_v10, %s5638_s28 }
0x1673   :  { %2169 = vmax.xlane.f32.xlu0 %v2168_v6 }
0x1688   :  { %v2082_v2 = vpop.xlane.xlu0 %2081 }
0x1689   :  { %4086 = vrcp.f32 %v2082_v2 }
0x168f   :  { %v4087_v62 = vpop.eup %4086 }
0x1690   :  { %v2085_v7 = vpop.xlane.xlu1 %2084  ;;  %v2088_v11 = vmul.f32 %v4087_v62, %v4083_v0 }
0x1691   :  { %4088 = vrcp.f32 %v2085_v7 }
0x1697   :  { %v4089_v9 = vpop.eup %4088 }
0x1698   :  { %v2089_v14 = vmul.f32 %v4089_v9, %v4085_v3 }
0x169b   :  { %v2091_v50 = vpop.permute.xlu0 %2090 }
0x169c   :  { %2118 = vmatpush.msrb.mxu2 %v2091_v50  ;;  %v2226_v50 = vld [vmem:[%s5609_s6 + $0x8] sm:$0xff] }
0x169d   :  { %3854 = vmatmul.msk.f32.vlgmr.msrb.gmra.mxu2 %vm230_vm11, %v2088_v11  ;;  %2248 = vmatpush.msrb.mxu1 %v2226_v50  ;;  %v2608_v50 = vld [vmem:[%s5610_s7 + $0x18] sm:$0xff] }
0x169e   :  { %2277 = vmatpush.msra.mxu2 %v2126_v13 }
0x16a3   :  { %v2423_v5 = vpop.permute.xlu0 %2422 }
0x16a4   :  { %3876 = vmatpush.xpose.msk.msrb.mxu2 %vm196_vm10, %v2423_v5 }
0x16a5   :  { %3855 = vmatmul.msk.f32.gmra.mxu2 %vm230_vm11, %v2089_v14 }
0x16a8   :  { %3877 = vmatpush.xpose.msk.msrb.mxu2 %vm196_vm10, %v2421_v15  ;;  %v2290_v17 = vpop.permute.xlu1 %2289 }
0x16ab   :  { %v2292_v16 = vpop.permute.xlu0 %2291 }
0x16ac   :  { %3867 = vmatpush.xpose.msk.msra.mxu0 %vm196_vm10, %v2292_v16 }
0x16b0   :  { %3868 = vmatpush.xpose.msk.msra.mxu0 %vm196_vm10, %v2290_v17 }
0x16b3   :  { %3869 = vmatmul.msk.f32.vlgmr.msra.gmra.mxu0 %vm196_vm10, %v2286_v19  ;;  %v2417_v20 = vpop.permute.xlu0 %2416 }
0x16bb   :  { %3870 = vmatmul.msk.f32.gmra.mxu0 %vm196_vm10, %v2288_v47  ;;  %v2419_v21 = vpop.permute.xlu0 %2418 }
0x16e6   :  { %v2170_v24 = vpop.xlane.xlu0 %2169 }
0x16e7   :  { %v2174_v28 = vsub.f32 %v2166_v56, %v2170_v24 }
0x16e9   :  { %v2176_v29 = vmul.f32 1.442695, %v2174_v28 }
0x16eb   :  { %4090 = vpow2.f32 %v2176_v29 }
0x16f1   :  { %v4091_v30 = vpop.eup %4090 }
0x16f2   :  { %v2180_v35 = vsel %vm230_vm11, %v4091_v30, 0.0 }
0x1720   :  { %v2120_v22 = vpop.f32.mrf.mxu2 }
0x1721   :  { %3865 = vmatmul.msk.f32.vlgmr.msra.gmra.mxu2 %vm196_vm10, %v2120_v22 }
0x1728   :  { %v2123_v27 = vpop.f32.mrf.mxu2 }
0x1729   :  { %3866 = vmatmul.msk.f32.gmra.mxu2 %vm196_vm10, %v2123_v27 }
0x1730   :  { %v2318_v32 = vpop.f32.mrf.mxu0 }
0x1731   :  { %v2324_v60 = vmul.f32 0.35355338, %v2318_v32  ;;  %3878 = vmatmul.msk.f32.vlgmr.msrb.gmra.mxu2 %vm196_vm10, %v2417_v20 }
0x1733   :  { %v2326_v33 = vsel %vm230_vm11, %v2324_v60, -inf }
0x1734   :  { %2327 = vmax.xlane.f32.xlu1 %v2326_v33 }
0x1738   :  { %v2321_v31 = vpop.f32.mrf.mxu0 }
0x1739   :  { %v2325_v12 = vmul.f32 0.35355338, %v2321_v31  ;;  %3879 = vmatmul.msk.f32.gmra.mxu2 %vm196_vm10, %v2419_v21 }
0x173b   :  { %v2329_v61 = vsel %vm234_vm12, %v2325_v12, -inf }
0x173c   :  { %2330 = vmax.xlane.f32.xlu2 %v2329_v61  ;;  %2181 = vadd.xlane.f32.xlu1 %v2180_v35  ;;  %v2515_v35 = vld [vmem:[%s5609_s6 + $0x18] sm:$0xff] }
0x1754   :  { %2192 = vrot.lane.b32.xlu2 %v5030_v10, %s5640_s29 }
0x1755   :  { %2190 = vrot.lane.b32.xlu1 %v5026_v46, %s5640_s29 }
0x175c   :  { %2350 = vrot.lane.b32.xlu2 %v5030_v10, %s5641_s24 }
0x175d   :  { %2348 = vrot.lane.b32.xlu1 %v5026_v46, %s5641_s24 }
0x1764   :  { %2481 = vrot.lane.b32.xlu2 %v5030_v10, %s5642_s26  ;;  %v2178_v10 = vmul.f32 1.442695, %v2175_v42 }
0x1765   :  { %2479 = vrot.lane.b32.xlu1 %v5026_v46, %s5642_s26 }
0x1766   :  { %4092 = vpow2.f32 %v2178_v10 }
0x176c   :  { %v4093_v57 = vpop.eup %4092 }
0x176d   :  { %v2183_v0 = vsel %vm234_vm12, %v4093_v57, 0.0 }
0x17a4   :  { %v5114_v37 = vpop.f32.mrf.mxu2 }
0x17a7   :  { %v2328_v41 = vpop.xlane.xlu1 %2327 }
0x17a8   :  { %v2332_v53 = vsub.f32 %v2324_v60, %v2328_v41 }
0x17aa   :  { %v2334_v36 = vmul.f32 1.442695, %v2332_v53 }
0x17ac   :  { %v5116_v18 = vpop.f32.mrf.mxu2 }
0x17af   :  { %v2331_v40 = vpop.xlane.xlu2 %2330  ;;  %v2182_v51 = vpop.xlane.xlu1 %2181 }
0x17b0   :  { %4094 = vrcp.f32 %v2182_v51  ;;  %v2333_v4 = vsub.f32 %v2325_v12, %v2331_v40 }
0x17b1   :  { %4096 = vpow2.f32 %v2334_v36 }
0x17b2   :  { %v2336_v25 = vmul.f32 1.442695, %v2333_v4 }
0x17b4   :  { %v2449_v43 = vpop.f32.mrf.mxu2  ;;  %4098 = vpow2.f32 %v2336_v25 }
0x17b5   :  { %v2455_v45 = vmul.f32 0.35355338, %v2449_v43 }
0x17b6   :  { %v4095_v54 = vpop.eup %4094 }
0x17b7   :  { %v2193_v48 = vpop.permute.xlu2 %2192  ;;  %v2457_v49 = vsel %vm230_vm11, %v2455_v45, -inf  ;;  %v2188_v1 = vmul.f32 %v4095_v54, %v4091_v30  ;;  %v4097_v3 = vpop.eup %4096  ;;  %v2384_v30 = vld [vmem:[%s5609_s6 + $0x10] sm:$0xff]  ;;  %s4222_s6 = smov [#allocation2]  }
0x17b8   :  { %3860 = vmatpush.msk.msra.mxu3 %vm265_vm13, %v2193_v48  ;;  %2458 = vmax.xlane.f32.xlu0 %v2457_v49  ;;  %v2338_v56 = vsel %vm230_vm11, %v4097_v3, 0.0 }
0x17b9   :  { %2406 = vmatpush.msra.mxu1 %v2384_v30 }
0x17ba   :  { %v4099_v6 = vpop.eup %4098 }
0x17bb   :  { %v2341_v7 = vsel %vm234_vm12, %v4099_v6, 0.0 }
0x17bc   :  { %v2452_v46 = vpop.f32.mrf.mxu2 }
0x17bd   :  { %v2456_v52 = vmul.f32 0.35355338, %v2452_v46 }
0x17bf   :  { %v2351_v63 = vpop.permute.xlu2 %2350  ;;  %v2460_v55 = vsel %vm234_vm12, %v2456_v52, -inf }
0x17c0   :  { %2461 = vmax.xlane.f32.xlu0 %v2460_v55  ;;  %v3969_v55 = vld [vmem:[%s5606_s3 + $0x3] ss:$0 sm:$0xff] }
0x17c7   :  { %v2482_v58 = vpop.permute.xlu2 %2481  ;;  %v2191_v59 = vpop.permute.xlu1 %2190 }
0x17c8   :  { %3880 = vmatpush.msk.msrb.mxu0 %vm265_vm13, %v2482_v58  ;;  %2184 = vadd.xlane.f32.xlu0 %v2183_v0 }
0x17c9   :  { %2218 = vmatpush.msra.mxu3 %v2191_v59 }
0x17ca   :  { %3861 = vmatmul.msk.f32.vlgmr.msra.gmra.mxu3 %vm230_vm11, %v2188_v1 }
0x17cb   :  { %3871 = vmatpush.msk.msrb.mxu3 %vm265_vm13, %v2351_v63 }
0x17cf   :  { %v2349_v8 = vpop.permute.xlu1 %2348 }
0x17d0   :  { %2339 = vadd.xlane.f32.xlu0 %v2338_v56  ;;  %2376 = vmatpush.msrb.mxu3 %v2349_v8 }
0x17d2   :  { %2537 = vmatpush.msra.mxu3 %v2515_v35 }
0x17d7   :  { %v2480_v2 = vpop.permute.xlu1 %2479 }
0x17d8   :  { %2342 = vadd.xlane.f32.xlu0 %v2341_v7  ;;  %2507 = vmatpush.msrb.mxu0 %v2480_v2 }
0x182b   :  { %v2459_v62 = vpop.xlane.xlu0 %2458 }
0x182c   :  { %v2463_v11 = vsub.f32 %v2455_v45, %v2459_v62 }
0x182e   :  { %v2465_v13 = vmul.f32 1.442695, %v2463_v11 }
0x1830   :  { %4100 = vpow2.f32 %v2465_v13  ;;  %v2607_v13 = vld [vmem:[%s5610_s7 + $0x10] sm:$0xff] }
0x1833   :  { %v2462_v9 = vpop.xlane.xlu0 %2461 }
0x1834   :  { %v2464_v5 = vsub.f32 %v2456_v52, %v2462_v9  ;;  %v2606_v9 = vld [vmem:[%s5610_s7 + $0x8] sm:$0xff] }
0x1836   :  { %v4101_v14 = vpop.eup %4100  ;;  %v2467_v15 = vmul.f32 1.442695, %v2464_v5  ;;  %v2605_v5 = vld [vmem:[%s5610_s7] sm:$0xff] }
0x1837   :  { %v2469_v16 = vsel %vm230_vm11, %v4101_v14, 0.0 }
0x1838   :  { %4102 = vpow2.f32 %v2467_v15  ;;  %2470 = vadd.xlane.f32.xlu0 %v2469_v16 }
0x183b   :  { %v2185_v17 = vpop.xlane.xlu0 %2184 }
0x183c   :  { %4104 = vrcp.f32 %v2185_v17 }
0x183e   :  { %v4103_v19 = vpop.eup %4102 }
0x183f   :  { %v2472_v47 = vsel %vm234_vm12, %v4103_v19, 0.0 }
0x1840   :  { %2473 = vadd.xlane.f32.xlu0 %v2472_v47 }
0x1842   :  { %v4105_v20 = vpop.eup %4104 }
0x1843   :  { %v2340_v21 = vpop.xlane.xlu0 %2339  ;;  %v2189_v22 = vmul.f32 %v4105_v20, %v4093_v57 }
0x1844   :  { %4106 = vrcp.f32 %v2340_v21 }
0x1845   :  { %3862 = vmatmul.msk.f32.gmra.mxu3 %vm230_vm11, %v2189_v22 }
0x184a   :  { %v4107_v24 = vpop.eup %4106 }
0x184b   :  { %v2346_v27 = vmul.f32 %v4107_v24, %v4097_v3  ;;  %v2343_v28 = vpop.xlane.xlu0 %2342 }
0x184c   :  { %4108 = vrcp.f32 %v2343_v28 }
0x184d   :  { %v2220_v29 = vpop.f32.mrf.mxu3  ;;  %3872 = vmatmul.msk.f32.vlgmr.msrb.gmra.mxu3 %vm230_vm11, %v2346_v27 }
0x184e   :  { %3863 = vmatmul.msk.f32.vlgmr.msrb.gmra.mxu1 %vm196_vm10, %v2220_v29 }
0x184f   :  { %2629 = vmatpush.msrb.mxu1 %v2608_v50  ;;  %v2732_v50 = vld [vmem:[%s5611_s8 + $0x20] sm:$0xff] }
0x1851   :  { %2630 = vmatpush.msrb.mxu1 %v2607_v13 }
0x1852   :  { %v4109_v32 = vpop.eup %4108 }
0x1853   :  { %v2347_v60 = vmul.f32 %v4109_v32, %v4099_v6  ;;  %2631 = vmatpush.msrb.mxu1 %v2606_v9 }
0x1855   :  { %3873 = vmatmul.msk.f32.gmra.mxu3 %vm230_vm11, %v2347_v60  ;;  %2632 = vmatpush.msrb.mxu1 %v2605_v5  ;;  %v3970_v60 = vld [vmem:[%s5606_s3 + $0x4] ss:$0 sm:$0xff] }
0x18ab   :  { %v2471_v33 = vpop.xlane.xlu0 %2470 }
0x18ac   :  { %4110 = vrcp.f32 %v2471_v33 }
0x18b2   :  { %v4111_v31 = vpop.eup %4110 }
0x18b3   :  { %v2477_v12 = vmul.f32 %v4111_v31, %v4101_v14  ;;  %v2474_v61 = vpop.xlane.xlu0 %2473  ;;  %v3971_v31 = vld [vmem:[%s5606_s3 + $0x5] ss:$0 sm:$0xff] }
0x18b4   :  { %4112 = vrcp.f32 %v2474_v61 }
0x18b5   :  { %3881 = vmatmul.msk.f32.vlgmr.msrb.gmra.mxu0 %vm230_vm11, %v2477_v12 }
0x18ba   :  { %v4113_v39 = vpop.eup %4112 }
0x18bb   :  { %v2478_v40 = vmul.f32 %v4113_v39, %v4103_v19 }
0x18bd   :  { %3882 = vmatmul.msk.f32.gmra.mxu0 %vm230_vm11, %v2478_v40 }
0x18c8   :  { %v2223_v41 = vpop.f32.mrf.mxu3 }
0x18c9   :  { %3864 = vmatmul.msk.f32.gmra.mxu1 %vm196_vm10, %v2223_v41 }
0x18cb   :  { %v2250_v49 = vpop.f32.mrf.mxu1 }
0x18cc   :  { %v2280_v46 = vadd.f32 %v5114_v37, %v2250_v49  ;;  %v2743_v49 = vld [vmem:[%s5611_s8 + $0x78] sm:$0xff] }
0x18cd   :  { %2744 = vmatpush.msra.mxu2 %v2743_v49 }
0x18d0   :  { %v2378_v43 = vpop.f32.mrf.mxu3 }
0x18d1   :  { %3874 = vmatmul.msk.f32.vlgmr.msra.gmra.mxu1 %vm196_vm10, %v2378_v43 }
0x18d8   :  { %v2381_v45 = vpop.f32.mrf.mxu3 }
0x18d9   :  { %3875 = vmatmul.msk.f32.gmra.mxu1 %vm196_vm10, %v2381_v45 }
0x1932   :  { %v2509_v42 = vpop.f32.mrf.mxu0 }
0x1933   :  { %3883 = vmatmul.msk.f32.vlgmr.msra.gmra.mxu3 %vm196_vm10, %v2509_v42 }
0x193a   :  { %v2512_v48 = vpop.f32.mrf.mxu0 }
0x193b   :  { %3884 = vmatmul.msk.f32.gmra.mxu3 %vm196_vm10, %v2512_v48 }
0x1946   :  { %v2253_v10 = vpop.f32.mrf.mxu1 }
0x1947   :  { %v2283_v54 = vadd.f32 %v5116_v18, %v2253_v10  ;;  %v2742_v10 = vld [vmem:[%s5611_s8 + $0x70] sm:$0xff] }
0x1948   :  { %2745 = vmatpush.msra.mxu2 %v2742_v10 }
0x194e   :  { %v2408_v51 = vpop.f32.mrf.mxu1 }
0x194f   :  { %v2414_v52 = vadd.f32 %v2408_v51, %v2280_v46  ;;  %v2741_v51 = vld [vmem:[%s5611_s8 + $0x68] sm:$0xff]  ;;  %v3972_v46 = vld [vmem:[%s5606_s3 + $0x6] ss:$0 sm:$0xff] }
0x1950   :  { %2746 = vmatpush.msra.mxu2 %v2741_v51 }
0x1956   :  { %v2411_v57 = vpop.f32.mrf.mxu1 }
0x1957   :  { %v2415_v58 = vadd.f32 %v2411_v57, %v2283_v54  ;;  %v2737_v54 = vld [vmem:[%s5611_s8 + $0x48] sm:$0xff] }
0x19b6   :  { %v2539_v53 = vpop.f32.mrf.mxu3 }
0x19b7   :  { %v2545_v63 = vadd.f32 %v2539_v53, %v2414_v52  ;;  %v2740_v52 = vld [vmem:[%s5611_s8 + $0x60] sm:$0xff] }
0x19b8   :  { %2747 = vmatpush.msra.mxu2 %v2740_v52 }
0x19b9   :  { %v2547_v36 = vadd.f32 %v2545_v63, %v4912_v38  ;;  %v2739_v63 = vld [vmem:[%s5611_s8 + $0x58] sm:$0xff] }
0x19ba   :  { %2748 = vmatpush.msra.mxu2 %v2739_v63 }
0x19bb   :  { %v5156_v4 = vadd.f32 %v3969_v55, %v2547_v36  ;;  %v2738_v36 = vld [vmem:[%s5611_s8 + $0x50] sm:$0xff] }
0x19bc   :  { %2749 = vmatpush.msra.mxu2 %v2738_v36 }
0x19bd   :  { %v2555_v59 = vsel %vm96_vm1, %v5156_v4, 0.0 }
0x19be   :  { %2556 = vadd.xlane.f32.xlu2 %v2555_v59  ;;  %v2542_v37 = vpop.f32.mrf.mxu3  ;;  %2750 = vmatpush.msra.mxu2 %v2737_v54  ;;  %v2736_v59 = vld [vmem:[%s5611_s8 + $0x40] sm:$0xff] }
0x19bf   :  { %v2546_v0 = vadd.f32 %v2542_v37, %v2415_v58 }
0x19c0   :  { %2751 = vmatpush.msra.mxu2 %v2736_v59 }
0x19c1   :  { %v2548_v1 = vadd.f32 %v2546_v0, %v4929_v23 }
0x19c3   :  { %v5161_v25 = vadd.f32 %v3969_v55, %v2548_v1  ;;  %v2735_v1 = vld [vmem:[%s5611_s8 + $0x38] sm:$0xff] }
0x19c4   :  { %2752 = vmatpush.msra.mxu2 %v2735_v1 }
0x19c5   :  { %v2558_v3 = vsel %vm100_vm2, %v5161_v25, 0.0 }
0x19c6   :  { %2559 = vadd.xlane.f32.xlu0 %v2558_v3 }
0x1a31   :  { %v2557_v38 = vpop.xlane.xlu2 %2556 }
0x1a32   :  { %v2561_v18 = vmul.f32 %v2557_v38, %v4344_v26 }
0x1a34   :  { %v2563_v8 = vsub.f32 %v5156_v4, %v2561_v18 }
0x1a36   :  { %v2565_v56 = vmul.f32 %v2563_v8, %v2563_v8 }
0x1a38   :  { %v2567_v6 = vsel %vm96_vm1, %v2565_v56, 0.0 }
0x1a39   :  { %2568 = vadd.xlane.f32.xlu1 %v2567_v6  ;;  %v2560_v2 = vpop.xlane.xlu0 %2559 }
0x1a3a   :  { %v2562_v7 = vmul.f32 %v2560_v2, %v4344_v26 }
0x1a3c   :  { %v2564_v23 = vsub.f32 %v5161_v25, %v2562_v7  ;;  %v2733_v7 = vld [vmem:[%s5611_s8 + $0x28] sm:$0xff] }
0x1a3e   :  { %v2566_v62 = vmul.f32 %v2564_v23, %v2564_v23 }
0x1a40   :  { %v2570_v11 = vsel %vm100_vm2, %v2566_v62, 0.0 }
0x1a41   :  { %2571 = vadd.xlane.f32.xlu0 %v2570_v11 }
0x1aac   :  { %v2569_v14 = vpop.xlane.xlu1 %2568 }
0x1aad   :  { %v2573_v15 = vmul.f32 %v2569_v14, %v4344_v26  ;;  %v2731_v14 = vld [vmem:[%s5611_s8 + $0x18] sm:$0xff] }
0x1aaf   :  { %v2575_v16 = vadd.f32 1e-12, %v2573_v15 }
0x1ab1   :  { %4114 = vrsqrt.f32 %v2575_v16  ;;  %vm2583_vm14 = vweird.f32 %v2575_v16 }
0x1ab4   :  { %v2572_v17 = vpop.xlane.xlu0 %2571 }
0x1ab5   :  { %v2574_v19 = vmul.f32 %v2572_v17, %v4344_v26 }
0x1ab7   :  { %v4115_v47 = vpop.eup %4114  ;;  %v2576_v20 = vadd.f32 1e-12, %v2574_v19  ;;  %v2730_v19 = vld [vmem:[%s5611_s8 + $0x10] sm:$0xff] }
0x1ab8   :  { %v2578_v21 = vmul.f32 %v4115_v47, %v2575_v16  ;;  %vm2584_vm9 = vweird.f32 %v4115_v47 }
0x1ab9   :  { %4116 = vrsqrt.f32 %v2576_v20  ;;  %vm2585_vm15 = vmor %vm2583_vm14, %vm2584_vm9  ;;  %vm2593_vm4 = vweird.f32 %v2576_v20 }
0x1aba   :  { %v2579_v22 = vmul.f32 %v4115_v47, %v2578_v21 }
0x1abc   :  { %v2580_v24 = vmul.f32 0.5, %v2579_v22 }
0x1abe   :  { %v2581_v27 = vsub.f32 1.5, %v2580_v24  ;;  %v2729_v24 = vld [vmem:[%s5611_s8 + $0x8] sm:$0xff] }
0x1abf   :  { %v4117_v28 = vpop.eup %4116 }
0x1ac0   :  { %v2582_v29 = vmul.f32 %v4115_v47, %v2581_v27  ;;  %v2588_v32 = vmul.f32 %v4117_v28, %v2576_v20  ;;  %vm2594_vm3 = vweird.f32 %v4117_v28 }
0x1ac1   :  { %vm2595_vm5 = vmor %vm2593_vm4, %vm2594_vm3 }
0x1ac2   :  { %v2586_v33 = vsel %vm2585_vm15, %v4115_v47, %v2582_v29  ;;  %v2589_v30 = vmul.f32 %v4117_v28, %v2588_v32  ;;  %v2728_v32 = vld [vmem:[%s5611_s8] sm:$0xff] }
0x1ac3   :  { %v2597_v12 = vmul.f32 %v2586_v33, %v2563_v8  ;;  %v2734_v8 = vld [vmem:[%s5611_s8 + $0x30] sm:$0xff] }
0x1ac4   :  { %v2590_v61 = vmul.f32 0.5, %v2589_v30  ;;  %2753 = vmatpush.msra.mxu2 %v2734_v8 }
0x1ac5   :  { %v2600_v35 = vmul.f32 %v3970_v60, %v2597_v12 }
0x1ac6   :  { %v2591_v39 = vsub.f32 1.5, %v2590_v61  ;;  %2754 = vmatpush.msra.mxu2 %v2733_v7 }
0x1ac7   :  { %v2603_v40 = vadd.f32 %v3971_v31, %v2600_v35 }
0x1ac8   :  { %v2592_v41 = vmul.f32 %v4117_v28, %v2591_v39  ;;  %2755 = vmatpush.msra.mxu2 %v2732_v50 }
0x1ac9   :  { %3885 = vmatmul.msk.f32.vlgmr.msrb.gmra.mxu1 %vm96_vm1, %v2603_v40 }
0x1aca   :  { %v2596_v43 = vsel %vm2595_vm5, %v4117_v28, %v2592_v41  ;;  %2756 = vmatpush.msra.mxu2 %v2731_v14 }
0x1acb   :  { %v2598_v45 = vmul.f32 %v2596_v43, %v2564_v23 }
0x1acc   :  { %2757 = vmatpush.msra.mxu2 %v2730_v19 }
0x1acd   :  { %v2601_v42 = vmul.f32 %v3970_v60, %v2598_v45 }
0x1ace   :  { %2758 = vmatpush.msra.mxu2 %v2729_v24 }
0x1acf   :  { %v2604_v48 = vadd.f32 %v3971_v31, %v2601_v42 }
0x1ad0   :  { %2759 = vmatpush.msra.mxu2 %v2728_v32 }
0x1ad1   :  { %3886 = vmatmul.msk.f32.gmra.mxu1 %vm96_vm1, %v2604_v48 }
0x1b46   :  { %v2634_v53 = vpop.f32.mrf.mxu1 }
0x1b47   :  { %v5211_v55 = vadd.f32 %v3972_v46, %v2634_v53 }
0x1b49   :  { %v5217_v57 = vmul.f32 0.70710677, %v5211_v55 }
0x1b4b   :  { %v2644_v58 = vmul.f32 %v5217_v57, %v5217_v57 }
0x1b4d   :  { %v2645_v37 = vmin.f32 %v2644_v58, 16.0 }
0x1b4e   :  { %v2637_v0 = vpop.f32.mrf.mxu1 }
0x1b4f   :  { %v2646_v3 = vmul.f32 2.1237322e-06, %v2645_v37  ;;  %v2657_v38 = vmul.f32 3.8918573e-05, %v2645_v37  ;;  %v5230_v18 = vadd.f32 %v3972_v46, %v2637_v0 }
0x1b51   :  { %v2647_v56 = vadd.f32 0.00028619796, %v2646_v3  ;;  %v2658_v6 = vadd.f32 0.001143296, %v2657_v38  ;;  %v5236_v2 = vmul.f32 0.70710677, %v5230_v18 }
0x1b52   :  { %v2641_v24 = vmul.f32 0.5, %v5230_v18 }
0x1b53   :  { %v2648_v23 = vmul.f32 %v2647_v56, %v2645_v37  ;;  %v2659_v62 = vmul.f32 %v2658_v6, %v2645_v37  ;;  %v2684_v11 = vmul.f32 %v5236_v2, %v5236_v2 }
0x1b55   :  { %v2660_v13 = vadd.f32 0.014752088, %v2659_v62  ;;  %v2649_v9 = vadd.f32 0.0036580483, %v2648_v23  ;;  %v2685_v5 = vmin.f32 %v2684_v11, 16.0 }
0x1b57   :  { %v2661_v15 = vmul.f32 %v2660_v13, %v2645_v37  ;;  %v2686_v16 = vmul.f32 2.1237322e-06, %v2685_v5  ;;  %v2697_v17 = vmul.f32 3.8918573e-05, %v2685_v5  ;;  %v2650_v20 = vmul.f32 %v2649_v9, %v2645_v37 }
0x1b59   :  { %v2662_v47 = vadd.f32 0.112945676, %v2661_v15  ;;  %v2687_v21 = vadd.f32 0.00028619796, %v2686_v16  ;;  %v2698_v22 = vadd.f32 0.001143296, %v2697_v17 }
0x1b5a   :  { %v2651_v33 = vadd.f32 0.05243302, %v2650_v20  ;;  %v2640_v15 = vmul.f32 0.5, %v5211_v55  ;;  %v3973_v55 = vld [vmem:[%s5606_s3 + $0x7] ss:$0 sm:$0xff] }
0x1b5b   :  { %v2663_v27 = vmul.f32 %v2662_v47, %v2645_v37  ;;  %v2688_v28 = vmul.f32 %v2687_v21, %v2685_v5  ;;  %v2699_v29 = vmul.f32 %v2698_v22, %v2685_v5 }
0x1b5c   :  { %v2652_v39 = vmul.f32 %v2651_v33, %v2645_v37 }
0x1b5d   :  { %v2664_v60 = vadd.f32 0.4994258, %v2663_v27  ;;  %v2700_v30 = vadd.f32 0.014752088, %v2699_v29  ;;  %v2689_v12 = vadd.f32 0.0036580483, %v2688_v28 }
0x1b5e   :  { %v2653_v45 = vadd.f32 0.18741608, %v2652_v39 }
0x1b5f   :  { %v2665_v31 = vmul.f32 %v2664_v60, %v2645_v37  ;;  %v2701_v61 = vmul.f32 %v2700_v30, %v2685_v5  ;;  %v2690_v41 = vmul.f32 %v2689_v12, %v2685_v5 }
0x1b60   :  { %v2654_v51 = vmul.f32 %v2653_v45, %v2645_v37 }
0x1b61   :  { %v2666_v35 = vadd.f32 1.0, %v2665_v31  ;;  %v2702_v40 = vadd.f32 0.112945676, %v2701_v61  ;;  %v2691_v48 = vadd.f32 0.05243302, %v2690_v41 }
0x1b62   :  { %v2655_v54 = vadd.f32 1.1283791, %v2654_v51 }
0x1b63   :  { %4118 = vrcp.f32 %v2666_v35  ;;  %v2703_v43 = vmul.f32 %v2702_v40, %v2685_v5  ;;  %v2692_v53 = vmul.f32 %v2691_v48, %v2685_v5  ;;  %v2678_v36 = vand.u32 2147483648, %v2666_v35  ;;  %v2827_v48 = vld [vmem:[%s5612_s9 + $0x10] sm:$0xff] }
0x1b64   :  { %v2676_v59 = vand.u32 2147483647, %v2666_v35  ;;  %vm2672_vm0 = vweird.f32 %v2666_v35  ;;  %v2656_v8 = vmul.f32 %v2655_v54, %v5217_v57 }
0x1b65   :  { %v2704_v42 = vadd.f32 0.4994258, %v2703_v43  ;;  %v2693_v0 = vadd.f32 0.18741608, %v2692_v53  ;;  %v2679_v3 = vor.u32 1.1754944e-38, %v2678_v36 }
0x1b66   :  { %vm2677_vm8 = vcmp.eq.f32.partialorder %v2676_v59, 8.507059e+37 }
0x1b67   :  { %v2705_v49 = vmul.f32 %v2704_v42, %v2685_v5  ;;  %v2694_v6 = vmul.f32 %v2693_v0, %v2685_v5  ;;  %v2828_v42 = vld [vmem:[%s5612_s9 + $0x18] sm:$0xff] }
0x1b68   :  { %2849 = vmatpush.msra.mxu0 %v2828_v42 }
0x1b69   :  { %v4119_v10 = vpop.eup %4118  ;;  %v2706_v52 = vadd.f32 1.0, %v2705_v49  ;;  %v2695_v13 = vadd.f32 1.1283791, %v2694_v6  ;;  %v2826_v49 = vld [vmem:[%s5612_s9 + $0x8] sm:$0xff] }
0x1b6a   :  { %v2668_v46 = vmul.f32 %v4119_v10, %v2666_v35  ;;  %vm2673_vm6 = vweird.f32 %v4119_v10  ;;  %2850 = vmatpush.msra.mxu0 %v2827_v48 }
0x1b6b   :  { %4120 = vrcp.f32 %v2706_v52  ;;  %vm2674_vm7 = vmor %vm2672_vm0, %vm2673_vm6  ;;  %v2718_v50 = vand.u32 2147483648, %v2706_v52  ;;  %v2716_v14 = vand.u32 2147483647, %v2706_v52  ;;  %vm2712_vm14 = vweird.f32 %v2706_v52 }
0x1b6c   :  { %v2669_v63 = vsub.f32 1.0, %v2668_v46  ;;  %v2696_v47 = vmul.f32 %v2695_v13, %v5236_v2  ;;  %2851 = vmatpush.msra.mxu0 %v2826_v49 }
0x1b6d   :  { %v2719_v57 = vor.u32 1.1754944e-38, %v2718_v50  ;;  %vm2717_vm3 = vcmp.eq.f32.partialorder %v2716_v14, 8.507059e+37 }
0x1b6e   :  { %v2670_v58 = vmul.f32 %v4119_v10, %v2669_v63 }
0x1b70   :  { %v2671_v1 = vadd.f32 %v4119_v10, %v2670_v58 }
0x1b71   :  { %v4121_v38 = vpop.eup %4120 }
0x1b72   :  { %v2675_v56 = vsel %vm2674_vm7, %v4119_v10, %v2671_v1  ;;  %v2708_v7 = vmul.f32 %v4121_v38, %v2706_v52  ;;  %vm2713_vm9 = vweird.f32 %v4121_v38  ;;  %v2825_v10 = vld [vmem:[%s5612_s9] sm:$0xff] }
0x1b73   :  { %v2680_v37 = vsel %vm2677_vm8, %v2679_v3, %v2675_v56  ;;  %vm2714_vm15 = vmor %vm2712_vm14, %vm2713_vm9  ;;  %2852 = vmatpush.msra.mxu0 %v2825_v10 }
0x1b74   :  { %v2681_v23 = vmul.f32 %v2680_v37, %v2656_v8  ;;  %v2709_v62 = vsub.f32 1.0, %v2708_v7  ;;  %v3974_v8 = vld [vmem:[%s5606_s3 + $0x8] ss:$0 sm:$0xff] }
0x1b76   :  { %v3887_v11 = vclamps-f32 %v2681_v23, 1.0  ;;  %v2710_v9 = vmul.f32 %v4121_v38, %v2709_v62  ;;  %v3975_v23 = vld [vmem:[%s5606_s3 + $0x9] ss:$0 sm:$0xff] }
0x1b78   :  { %v2724_v16 = vadd.f32 1.0, %v3887_v11  ;;  %v2711_v17 = vadd.f32 %v4121_v38, %v2710_v9 }
0x1b7a   :  { %v2726_v19 = vmul.f32 %v2724_v16, %v2640_v15  ;;  %v2715_v5 = vsel %vm2714_vm15, %v4121_v38, %v2711_v17 }
0x1b7b   :  { %v2720_v20 = vsel %vm2717_vm3, %v2719_v57, %v2715_v5 }
0x1b7c   :  { %2760 = vmatmul.f32.vlgmr.msra.gmra.mxu2 %v2726_v19  ;;  %v2721_v21 = vmul.f32 %v2720_v20, %v2696_v47  ;;  %v3976_v19 = vld [vmem:[%s5606_s3 + $0xa] ss:$0 sm:$0xff] }
0x1b7e   :  { %v3888_v22 = vclamps-f32 %v2721_v21, 1.0 }
0x1b80   :  { %v2725_v27 = vadd.f32 1.0, %v3888_v22 }
0x1b82   :  { %v2727_v28 = vmul.f32 %v2725_v27, %v2641_v24 }
0x1b84   :  { %2763 = vmatmul.f32.gmra.mxu2 %v2727_v28 }
0x1bff   :  { %v2761_v29 = vpop.f32.mrf.mxu2 }
0x1c00   :  { %v2767_v32 = vadd.f32 %v2761_v29, %v5156_v4 }
0x1c02   :  { %v5266_v60 = vadd.f32 %v3973_v55, %v2767_v32 }
0x1c04   :  { %v2775_v2 = vsel %vm96_vm1, %v5266_v60, 0.0 }
0x1c05   :  { %2776 = vadd.xlane.f32.xlu0 %v2775_v2 }
0x1c07   :  { %v2764_v33 = vpop.f32.mrf.mxu2 }
0x1c08   :  { %v2768_v30 = vadd.f32 %v2764_v33, %v5161_v25 }
0x1c0a   :  { %v5271_v18 = vadd.f32 %v3973_v55, %v2768_v30 }
0x1c0c   :  { %v2778_v31 = vsel %vm100_vm2, %v5271_v18, 0.0 }
0x1c0d   :  { %2779 = vadd.xlane.f32.xlu0 %v2778_v31 }
0x1c78   :  { %v2777_v12 = vpop.xlane.xlu0 %2776 }
0x1c79   :  { %v2781_v61 = vmul.f32 %v2777_v12, %v4344_v26 }
0x1c7b   :  { %v2783_v4 = vsub.f32 %v5266_v60, %v2781_v61 }
0x1c7d   :  { %v2785_v35 = vmul.f32 %v2783_v4, %v2783_v4 }
0x1c7f   :  { %v2787_v39 = vsel %vm96_vm1, %v2785_v35, 0.0 }
0x1c80   :  { %2788 = vadd.xlane.f32.xlu0 %v2787_v39  ;;  %v2780_v40 = vpop.xlane.xlu0 %2779  ;;  %v2957_v39 = vld [vmem:[%s5613_s10] sm:$0xff] }
0x1c81   :  { %v2782_v41 = vmul.f32 %v2780_v40, %v4344_v26  ;;  %3108 = vmatpush.msrb.mxu2 %v2957_v39 }
0x1c83   :  { %v2784_v25 = vsub.f32 %v5271_v18, %v2782_v41 }
0x1c85   :  { %v2786_v43 = vmul.f32 %v2784_v25, %v2784_v25 }
0x1c87   :  { %v2790_v45 = vsel %vm100_vm2, %v2786_v43, 0.0 }
0x1c88   :  { %2791 = vadd.xlane.f32.xlu2 %v2790_v45 }
0x1cf3   :  { %v2789_v51 = vpop.xlane.xlu0 %2788 }
0x1cf4   :  { %v2793_v46 = vmul.f32 %v2789_v51, %v4344_v26 }
0x1cf6   :  { %v2795_v52 = vadd.f32 1e-12, %v2793_v46 }
0x1cf8   :  { %4122 = vrsqrt.f32 %v2795_v52  ;;  %vm2803_vm5 = vweird.f32 %v2795_v52 }
0x1cfb   :  { %v2792_v53 = vpop.xlane.xlu2 %2791 }
0x1cfc   :  { %v2794_v63 = vmul.f32 %v2792_v53, %v4344_v26 }
0x1cfe   :  { %v4123_v36 = vpop.eup %4122  ;;  %v2796_v58 = vadd.f32 1e-12, %v2794_v63 }
0x1cff   :  { %v2798_v54 = vmul.f32 %v4123_v36, %v2795_v52  ;;  %vm2804_vm4 = vweird.f32 %v4123_v36 }
0x1d00   :  { %4124 = vrsqrt.f32 %v2796_v58  ;;  %vm2805_vm6 = vmor %vm2803_vm5, %vm2804_vm4  ;;  %vm2813_vm7 = vweird.f32 %v2796_v58 }
0x1d01   :  { %v2799_v59 = vmul.f32 %v4123_v36, %v2798_v54 }
0x1d03   :  { %v2800_v0 = vmul.f32 0.5, %v2799_v59 }
0x1d05   :  { %v2801_v1 = vsub.f32 1.5, %v2800_v0 }
0x1d06   :  { %v4125_v3 = vpop.eup %4124 }
0x1d07   :  { %v2802_v38 = vmul.f32 %v4123_v36, %v2801_v1  ;;  %v2808_v56 = vmul.f32 %v4125_v3, %v2796_v58  ;;  %vm2814_vm0 = vweird.f32 %v4125_v3 }
0x1d08   :  { %vm2815_vm8 = vmor %vm2813_vm7, %vm2814_vm0 }
0x1d09   :  { %v2806_v37 = vsel %vm2805_vm6, %v4123_v36, %v2802_v38  ;;  %v2809_v7 = vmul.f32 %v4125_v3, %v2808_v56 }
0x1d0a   :  { %v2817_v6 = vmul.f32 %v2806_v37, %v2783_v4 }
0x1d0b   :  { %v2810_v11 = vmul.f32 0.5, %v2809_v7 }
0x1d0c   :  { %v2820_v62 = vmul.f32 %v3974_v8, %v2817_v6 }
0x1d0d   :  { %v2811_v50 = vsub.f32 1.5, %v2810_v11 }
0x1d0e   :  { %v2823_v13 = vadd.f32 %v3975_v23, %v2820_v62 }
0x1d0f   :  { %v2812_v9 = vmul.f32 %v4125_v3, %v2811_v50 }
0x1d10   :  { %3889 = vmatmul.msk.f32.vlgmr.msra.gmra.mxu0 %vm96_vm1, %v2823_v13 }
0x1d11   :  { %v2816_v14 = vsel %vm2815_vm8, %v4125_v3, %v2812_v9 }
0x1d12   :  { %v2818_v15 = vmul.f32 %v2816_v14, %v2784_v25 }
0x1d14   :  { %v2821_v16 = vmul.f32 %v3974_v8, %v2818_v15 }
0x1d16   :  { %v2824_v17 = vadd.f32 %v3975_v23, %v2821_v16 }
0x1d18   :  { %3890 = vmatmul.msk.f32.gmra.mxu0 %vm96_vm1, %v2824_v17 }
0x1d8d   :  { %v2854_v57 = vpop.f32.mrf.mxu0 }
0x1d8e   :  { %v5306_v47 = vadd.f32 %v3976_v19, %v2854_v57 }
0x1d90   :  { %2862 = vrot.lane.b32.xlu1 %v5306_v47, %s4211_s19 }
0x1d95   :  { %v2857_v5 = vpop.f32.mrf.mxu0 }
0x1d96   :  { %v5310_v20 = vadd.f32 %v3976_v19, %v2857_v5 }
0x1d98   :  { %2864 = vrot.lane.b32.xlu0 %v5310_v20, %s4211_s19  ;;  %s3740_s19 = sshll.u32 %s4222_s6, 4  ;;  %s3741_s19 = int_to_ptr.vmem [resolvable:$true] %s3740_s19 }
0x1e02   :  { %v2863_v22 = vpop.permute.xlu1 %2862 }
0x1e0a   :  { %v2865_v21 = vpop.permute.xlu0 %2864 }
0x1e0b   :  { %3891 = vmatpush.xpose.msk.msrb.mxu3 %vm196_vm10, %v2865_v21 }
0x1e0f   :  { %3892 = vmatpush.xpose.msk.msrb.mxu3 %vm196_vm10, %v2863_v22 }
0x1e12   :  { %3893 = vmatmul.msk.f32.vlgmr.msrb.gmra.mxu3 %vm196_vm10, %v5306_v47 }
0x1e1a   :  { %3894 = vmatmul.msk.f32.gmra.mxu3 %vm196_vm10, %v5310_v20 }
0x1e95   :  { %v2891_v24 = vpop.f32.mrf.mxu3 }
0x1e96   :  { %v2897_v27 = vmul.f32 0.35355338, %v2891_v24 }
0x1e98   :  { %v2899_v28 = vsel %vm230_vm11, %v2897_v27, -inf }
0x1e99   :  { %2900 = vmax.xlane.f32.xlu2 %v2899_v28 }
0x1e9d   :  { %v2894_v55 = vpop.f32.mrf.mxu3 }
0x1e9e   :  { %v2898_v29 = vmul.f32 0.35355338, %v2894_v55 }
0x1ea0   :  { %v2902_v32 = vsel %vm234_vm12, %v2898_v29, -inf }
0x1ea1   :  { %2903 = vmax.xlane.f32.xlu2 %v2902_v32 }
0x1eb9   :  { %2923 = vrot.lane.b32.xlu2 %v5310_v20, %s5643_s15 }
0x1ec1   :  { %2921 = vrot.lane.b32.xlu2 %v5306_v47, %s5643_s15 }
0x1ec9   :  { %2964 = vrot.lane.b32.xlu2 %v5310_v20, %s5644_s27 }
0x1ed1   :  { %2958 = vrot.lane.b32.xlu2 %v5306_v47, %s5645_s17 }
0x1ed9   :  { %3253 = vrot.lane.b32.xlu2 %v5310_v20, %s5639_s16 }
0x1ee1   :  { %3122 = vrot.lane.b32.xlu2 %v5310_v20, %s5647_s22 }
0x1ee9   :  { %3247 = vrot.lane.b32.xlu2 %v5306_v47, %s5638_s28 }
0x1ef1   :  { %3116 = vrot.lane.b32.xlu2 %v5306_v47, %s5646_s18 }
0x1f0c   :  { %v2901_v2 = vpop.xlane.xlu2 %2900 }
0x1f0d   :  { %v2905_v33 = vsub.f32 %v2897_v27, %v2901_v2 }
0x1f0f   :  { %v2907_v30 = vmul.f32 1.442695, %v2905_v33 }
0x1f11   :  { %4126 = vpow2.f32 %v2907_v30 }
0x1f14   :  { %v2904_v31 = vpop.xlane.xlu2 %2903 }
0x1f15   :  { %v2906_v12 = vsub.f32 %v2898_v29, %v2904_v31 }
0x1f17   :  { %v4127_v61 = vpop.eup %4126  ;;  %v2909_v4 = vmul.f32 1.442695, %v2906_v12 }
0x1f18   :  { %v2911_v35 = vsel %vm230_vm11, %v4127_v61, 0.0 }
0x1f19   :  { %4128 = vpow2.f32 %v2909_v4  ;;  %2912 = vadd.xlane.f32.xlu0 %v2911_v35 }
0x1f1c   :  { %v2924_v40 = vpop.permute.xlu2 %2923 }
0x1f1d   :  { %3895 = vmatpush.msk.msra.mxu1 %vm265_vm13, %v2924_v40 }
0x1f1f   :  { %v4129_v41 = vpop.eup %4128 }
0x1f20   :  { %v2914_v25 = vsel %vm234_vm12, %v4129_v41, 0.0 }
0x1f21   :  { %2915 = vadd.xlane.f32.xlu1 %v2914_v25 }
0x1f24   :  { %v2922_v43 = vpop.permute.xlu2 %2921 }
0x1f25   :  { %2949 = vmatpush.msra.mxu1 %v2922_v43 }
0x1f2c   :  { %v2965_v45 = vpop.permute.xlu2 %2964 }
0x1f2d   :  { %2962 = vrot.lane.b32.xlu0 %v5306_v47, %s5644_s27  ;;  %3898 = vmatpush.xpose.msk.msrb.mxu0 %vm196_vm10, %v2965_v45 }
0x1f34   :  { %v2959_v42 = vpop.permute.xlu2 %2958 }
0x1f35   :  { %3251 = vrot.lane.b32.xlu0 %v5306_v47, %s5639_s16 }
0x1f3a   :  { %2960 = vrot.lane.b32.xlu1 %v5310_v20, %s5645_s17 }
0x1f3c   :  { %v3254_v48 = vpop.permute.xlu2 %3253 }
0x1f3d   :  { %3120 = vrot.lane.b32.xlu0 %v5306_v47, %s5647_s22  ;;  %3918 = vmatpush.xpose.msk.msra.mxu2 %vm196_vm10, %v3254_v48 }
0x1f42   :  { %3118 = vrot.lane.b32.xlu1 %v5310_v20, %s5646_s18 }
0x1f44   :  { %v3123_v36 = vpop.permute.xlu2 %3122 }
0x1f45   :  { %3249 = vrot.lane.b32.xlu0 %v5310_v20, %s5638_s28 }
0x1f4c   :  { %v3248_v58 = vpop.permute.xlu2 %3247 }
0x1f54   :  { %v3117_v1 = vpop.permute.xlu2 %3116 }
0x1f8c   :  { %v2913_v49 = vpop.xlane.xlu0 %2912 }
0x1f8d   :  { %4130 = vrcp.f32 %v2913_v49 }
0x1f93   :  { %v4131_v10 = vpop.eup %4130 }
0x1f94   :  { %v2919_v51 = vmul.f32 %v4131_v10, %v4127_v61  ;;  %v2916_v46 = vpop.xlane.xlu1 %2915 }
0x1f95   :  { %4132 = vrcp.f32 %v2916_v46 }
0x1f96   :  { %3896 = vmatmul.msk.f32.vlgmr.msra.gmra.mxu1 %vm230_vm11, %v2919_v51 }
0x1f9b   :  { %v4133_v52 = vpop.eup %4132 }
0x1f9c   :  { %v2920_v53 = vmul.f32 %v4133_v52, %v4129_v41 }
0x1f9e   :  { %3897 = vmatmul.msk.f32.gmra.mxu1 %vm230_vm11, %v2920_v53 }
0x1f9f   :  { %v2963_v63 = vpop.permute.xlu0 %2962 }
0x1fa0   :  { %3899 = vmatpush.xpose.msk.msrb.mxu0 %vm196_vm10, %v2963_v63 }
0x1fa3   :  { %3900 = vmatmul.msk.f32.vlgmr.msrb.gmra.mxu0 %vm196_vm10, %v2959_v42 }
0x1fa4   :  { %3909 = vmatpush.xpose.msk.msra.mxu0 %vm196_vm10, %v3123_v36 }
0x1fa7   :  { %v3252_v54 = vpop.permute.xlu0 %3251 }
0x1fa8   :  { %3919 = vmatpush.xpose.msk.msra.mxu2 %vm196_vm10, %v3252_v54 }
0x1fac   :  { %v2961_v59 = vpop.permute.xlu1 %2960 }
0x1fad   :  { %3901 = vmatmul.msk.f32.gmra.mxu0 %vm196_vm10, %v2961_v59 }
0x1faf   :  { %v3121_v0 = vpop.permute.xlu0 %3120 }
0x1fb0   :  { %3910 = vmatpush.xpose.msk.msra.mxu0 %vm196_vm10, %v3121_v0 }
0x1fb4   :  { %v3119_v3 = vpop.permute.xlu1 %3118 }
0x1fb5   :  { %3911 = vmatmul.msk.f32.vlgmr.msra.gmra.mxu0 %vm196_vm10, %v3117_v1 }
0x1fb7   :  { %v3250_v23 = vpop.permute.xlu0 %3249 }
0x1fbd   :  { %3912 = vmatmul.msk.f32.gmra.mxu0 %vm196_vm10, %v3119_v3 }
0x2013   :  { %v2951_v38 = vpop.f32.mrf.mxu1 }
0x2014   :  { %3907 = vmatmul.msk.f32.vlgmr.msrb.gmra.mxu2 %vm196_vm10, %v2951_v38 }
0x201b   :  { %v2954_v8 = vpop.f32.mrf.mxu1 }
0x201c   :  { %3908 = vmatmul.msk.f32.gmra.mxu2 %vm196_vm10, %v2954_v8 }
0x2020   :  { %v2991_v56 = vpop.f32.mrf.mxu0 }
0x2021   :  { %v2997_v37 = vmul.f32 0.35355338, %v2991_v56 }
0x2023   :  { %v2999_v6 = vsel %vm230_vm11, %v2997_v37, -inf }
0x2024   :  { %3000 = vmax.xlane.f32.xlu2 %v2999_v6  ;;  %3920 = vmatmul.msk.f32.vlgmr.msra.gmra.mxu2 %vm196_vm10, %v3248_v58 }
0x202a   :  { %v2994_v7 = vpop.f32.mrf.mxu0 }
0x202b   :  { %v2998_v62 = vmul.f32 0.35355338, %v2994_v7 }
0x202c   :  { %3921 = vmatmul.msk.f32.gmra.mxu2 %vm196_vm10, %v3250_v23 }
0x202d   :  { %v3002_v11 = vsel %vm234_vm12, %v2998_v62, -inf }
0x202e   :  { %3003 = vmax.xlane.f32.xlu0 %v3002_v11 }
0x2032   :  { %v3149_v50 = vpop.f32.mrf.mxu0 }
0x2033   :  { %v3155_v13 = vmul.f32 0.35355338, %v3149_v50 }
0x2035   :  { %v3157_v9 = vsel %vm230_vm11, %v3155_v13, -inf }
0x2036   :  { %3158 = vmax.xlane.f32.xlu1 %v3157_v9 }
0x203a   :  { %v3152_v14 = vpop.f32.mrf.mxu0 }
0x203b   :  { %v3156_v15 = vmul.f32 0.35355338, %v3152_v14  ;;  %v3057_v14 = vld [vmem:[%s5613_s10 + $0x8] sm:$0xff] }
0x203c   :  { %3079 = vmatpush.msrb.mxu1 %v3057_v14 }
0x203d   :  { %v3160_v16 = vsel %vm234_vm12, %v3156_v15, -inf }
0x203e   :  { %3161 = vmax.xlane.f32.xlu0 %v3160_v16  ;;  %v3215_v16 = vld [vmem:[%s5613_s10 + $0x10] sm:$0xff] }
0x203f   :  { %3237 = vmatpush.msra.mxu1 %v3215_v16 }
0x2052   :  { %3023 = vrot.lane.b32.xlu0 %v5310_v20, %s5640_s29 }
0x205a   :  { %3181 = vrot.lane.b32.xlu0 %v5310_v20, %s5641_s24 }
0x2062   :  { %3312 = vrot.lane.b32.xlu0 %v5310_v20, %s5642_s26 }
0x2097   :  { %v5382_v17 = vpop.f32.mrf.mxu2  ;;  %v3001_v19 = vpop.xlane.xlu2 %3000 }
0x2098   :  { %v3005_v5 = vsub.f32 %v2997_v37, %v3001_v19 }
0x209a   :  { %v3007_v21 = vmul.f32 1.442695, %v3005_v5 }
0x209c   :  { %4134 = vpow2.f32 %v3007_v21 }
0x209f   :  { %v5384_v57 = vpop.f32.mrf.mxu2 }
0x20a1   :  { %v3004_v22 = vpop.xlane.xlu0 %3003 }
0x20a2   :  { %v3006_v28 = vsub.f32 %v2998_v62, %v3004_v22  ;;  %v4135_v2 = vpop.eup %4134  ;;  %v3346_v22 = vld [vmem:[%s5613_s10 + $0x18] sm:$0xff] }
0x20a3   :  { %v3011_v12 = vsel %vm230_vm11, %v4135_v2, 0.0 }
0x20a4   :  { %v3009_v29 = vmul.f32 1.442695, %v3006_v28 }
0x20a6   :  { %4136 = vpow2.f32 %v3009_v29 }
0x20a7   :  { %v3280_v24 = vpop.f32.mrf.mxu2 }
0x20a8   :  { %v3286_v27 = vmul.f32 0.35355338, %v3280_v24 }
0x20a9   :  { %v3159_v32 = vpop.xlane.xlu1 %3158 }
0x20aa   :  { %v3288_v55 = vsel %vm230_vm11, %v3286_v27, -inf  ;;  %v3163_v30 = vsub.f32 %v3155_v13, %v3159_v32 }
0x20ab   :  { %3289 = vmax.xlane.f32.xlu2 %v3288_v55 }
0x20ac   :  { %v3165_v61 = vmul.f32 1.442695, %v3163_v30  ;;  %v4137_v35 = vpop.eup %4136 }
0x20ad   :  { %v3014_v40 = vsel %vm234_vm12, %v4137_v35, 0.0 }
0x20ae   :  { %4138 = vpow2.f32 %v3165_v61 }
0x20af   :  { %v3283_v33 = vpop.f32.mrf.mxu2 }
0x20b0   :  { %v3287_v20 = vmul.f32 0.35355338, %v3283_v33 }
0x20b1   :  { %v3162_v4 = vpop.xlane.xlu0 %3161 }
0x20b2   :  { %v3291_v31 = vsel %vm234_vm12, %v3287_v20, -inf  ;;  %v3164_v39 = vsub.f32 %v3156_v15, %v3162_v4 }
0x20b3   :  { %3292 = vmax.xlane.f32.xlu1 %v3291_v31  ;;  %3012 = vadd.xlane.f32.xlu2 %v3011_v12 }
0x20b4   :  { %v3167_v41 = vmul.f32 1.442695, %v3164_v39  ;;  %v4139_v25 = vpop.eup %4138  ;;  %v3977_v39 = vld [vmem:[%s5606_s3 + $0xb] ss:$0 sm:$0xff] }
0x20b5   :  { %v3169_v43 = vsel %vm230_vm11, %v4139_v25, 0.0 }
0x20b6   :  { %4140 = vpow2.f32 %v3167_v41 }
0x20bb   :  { %3015 = vadd.xlane.f32.xlu1 %v3014_v40 }
0x20bc   :  { %v4141_v42 = vpop.eup %4140 }
0x20bd   :  { %v3172_v48 = vsel %vm234_vm12, %v4141_v42, 0.0 }
0x20c3   :  { %3170 = vadd.xlane.f32.xlu1 %v3169_v43 }
0x20c4   :  { %v3024_v45 = vpop.permute.xlu0 %3023 }
0x20c5   :  { %3902 = vmatpush.msk.msra.mxu3 %vm265_vm13, %v3024_v45 }
0x20cb   :  { %3173 = vadd.xlane.f32.xlu1 %v3172_v48  ;;  %3021 = vrot.lane.b32.xlu2 %v5306_v47, %s5640_s29 }
0x20cc   :  { %v3182_v49 = vpop.permute.xlu0 %3181 }
0x20d3   :  { %3179 = vrot.lane.b32.xlu2 %v5306_v47, %s5641_s24 }
0x20d4   :  { %v3313_v10 = vpop.permute.xlu0 %3312 }
0x20d5   :  { %3922 = vmatpush.msk.msrb.mxu0 %vm265_vm13, %v3313_v10 }
0x20db   :  { %3310 = vrot.lane.b32.xlu2 %v5306_v47, %s5642_s26 }
0x211e   :  { %v3290_v51 = vpop.xlane.xlu2 %3289 }
0x211f   :  { %v3294_v46 = vsub.f32 %v3286_v27, %v3290_v51 }
0x2121   :  { %v3296_v52 = vmul.f32 1.442695, %v3294_v46 }
0x2123   :  { %4142 = vpow2.f32 %v3296_v52 }
0x2126   :  { %v3293_v53 = vpop.xlane.xlu1 %3292  ;;  %v3013_v63 = vpop.xlane.xlu2 %3012 }
0x2127   :  { %v3295_v36 = vsub.f32 %v3287_v20, %v3293_v53  ;;  %4144 = vrcp.f32 %v3013_v63 }
0x2129   :  { %v4143_v54 = vpop.eup %4142  ;;  %v3298_v58 = vmul.f32 1.442695, %v3295_v36 }
0x212a   :  { %v3300_v59 = vsel %vm230_vm11, %v4143_v54, 0.0 }
0x212b   :  { %4146 = vpow2.f32 %v3298_v58  ;;  %3301 = vadd.xlane.f32.xlu1 %v3300_v59  ;;  %v3439_v59 = vld [vmem:[%s5614_s11 + $0x18] sm:$0xff] }
0x212d   :  { %v4145_v0 = vpop.eup %4144 }
0x212e   :  { %v3019_v1 = vmul.f32 %v4145_v0, %v4135_v2  ;;  %v3016_v3 = vpop.xlane.xlu1 %3015  ;;  %v3022_v38 = vpop.permute.xlu2 %3021  ;;  %v3438_v0 = vld [vmem:[%s5614_s11 + $0x10] sm:$0xff] }
0x212f   :  { %4148 = vrcp.f32 %v3016_v3  ;;  %3049 = vmatpush.msra.mxu3 %v3022_v38  ;;  %v3436_v3 = vld [vmem:[%s5614_s11] sm:$0xff] }
0x2130   :  { %3903 = vmatmul.msk.f32.vlgmr.msra.gmra.mxu3 %vm230_vm11, %v3019_v1  ;;  %v3437_v1 = vld [vmem:[%s5614_s11 + $0x8] sm:$0xff] }
0x2131   :  { %v4147_v47 = vpop.eup %4146  ;;  %3913 = vmatpush.msk.msrb.mxu3 %vm265_vm13, %v3182_v49 }
0x2132   :  { %v3303_v8 = vsel %vm234_vm12, %v4147_v47, 0.0 }
0x2133   :  { %3304 = vadd.xlane.f32.xlu1 %v3303_v8 }
0x2135   :  { %v4149_v56 = vpop.eup %4148 }
0x2136   :  { %v3171_v37 = vpop.xlane.xlu1 %3170  ;;  %v3180_v6 = vpop.permute.xlu2 %3179  ;;  %v3020_v7 = vmul.f32 %v4149_v56, %v4137_v35 }
0x2137   :  { %4150 = vrcp.f32 %v3171_v37  ;;  %3207 = vmatpush.msrb.mxu3 %v3180_v6 }
0x2138   :  { %3904 = vmatmul.msk.f32.gmra.mxu3 %vm230_vm11, %v3020_v7 }
0x2139   :  { %3368 = vmatpush.msra.mxu3 %v3346_v22 }
0x213d   :  { %v4151_v23 = vpop.eup %4150 }
0x213e   :  { %v3177_v62 = vmul.f32 %v4151_v23, %v4139_v25  ;;  %v3174_v11 = vpop.xlane.xlu1 %3173  ;;  %v3311_v50 = vpop.permute.xlu2 %3310 }
0x213f   :  { %4152 = vrcp.f32 %v3174_v11  ;;  %3338 = vmatpush.msrb.mxu0 %v3311_v50 }
0x2140   :  { %3914 = vmatmul.msk.f32.vlgmr.msrb.gmra.mxu3 %vm230_vm11, %v3177_v62 }
0x2145   :  { %v4153_v13 = vpop.eup %4152 }
0x2146   :  { %v3178_v9 = vmul.f32 %v4153_v13, %v4141_v42 }
0x2148   :  { %3915 = vmatmul.msk.f32.gmra.mxu3 %vm230_vm11, %v3178_v9 }
0x219e   :  { %v3302_v15 = vpop.xlane.xlu1 %3301 }
0x219f   :  { %4154 = vrcp.f32 %v3302_v15  ;;  %v3978_v15 = vld [vmem:[%s5606_s3 + $0xc] ss:$0 sm:$0xff] }
0x21a5   :  { %v4155_v19 = vpop.eup %4154 }
0x21a6   :  { %v3308_v5 = vmul.f32 %v4155_v19, %v4143_v54  ;;  %v3305_v21 = vpop.xlane.xlu1 %3304 }
0x21a7   :  { %4156 = vrcp.f32 %v3305_v21 }
0x21a8   :  { %3923 = vmatmul.msk.f32.vlgmr.msrb.gmra.mxu0 %vm230_vm11, %v3308_v5  ;;  %v3979_v5 = vld [vmem:[%s5606_s3 + $0xd] ss:$0 sm:$0xff] }
0x21ad   :  { %v4157_v24 = vpop.eup %4156 }
0x21ae   :  { %v3309_v27 = vmul.f32 %v4157_v24, %v4147_v47 }
0x21b0   :  { %3924 = vmatmul.msk.f32.gmra.mxu0 %vm230_vm11, %v3309_v27 }
0x21b3   :  { %v3051_v28 = vpop.f32.mrf.mxu3 }
0x21b4   :  { %3905 = vmatmul.msk.f32.vlgmr.msrb.gmra.mxu1 %vm196_vm10, %v3051_v28 }
0x21b5   :  { %3460 = vmatpush.msrb.mxu1 %v3439_v59  ;;  %v3563_v59 = vld [vmem:[%s5615_s12 + $0x20] sm:$0xff] }
0x21b7   :  { %3461 = vmatpush.msrb.mxu1 %v3438_v0 }
0x21b9   :  { %3462 = vmatpush.msrb.mxu1 %v3437_v1 }
0x21bb   :  { %v3054_v55 = vpop.f32.mrf.mxu3  ;;  %3463 = vmatpush.msrb.mxu1 %v3436_v3 }
0x21bc   :  { %3906 = vmatmul.msk.f32.gmra.mxu1 %vm196_vm10, %v3054_v55 }
0x21c3   :  { %v3209_v29 = vpop.f32.mrf.mxu3 }
0x21c4   :  { %3916 = vmatmul.msk.f32.vlgmr.msra.gmra.mxu1 %vm196_vm10, %v3209_v29 }
0x21cb   :  { %v3212_v32 = vpop.f32.mrf.mxu3 }
0x21cc   :  { %3917 = vmatmul.msk.f32.gmra.mxu1 %vm196_vm10, %v3212_v32 }
0x2225   :  { %v3340_v2 = vpop.f32.mrf.mxu0 }
0x2226   :  { %3925 = vmatmul.msk.f32.vlgmr.msra.gmra.mxu3 %vm196_vm10, %v3340_v2 }
0x222d   :  { %v3343_v33 = vpop.f32.mrf.mxu0 }
0x222e   :  { %3926 = vmatmul.msk.f32.gmra.mxu3 %vm196_vm10, %v3343_v33 }
0x2231   :  { %v3081_v20 = vpop.f32.mrf.mxu1 }
0x2232   :  { %v3111_v12 = vadd.f32 %v5382_v17, %v3081_v20  ;;  %v3574_v20 = vld [vmem:[%s5615_s12 + $0x78] sm:$0xff] }
0x2233   :  { %3575 = vmatpush.msrb.mxu2 %v3574_v20 }
0x2239   :  { %v3084_v30 = vpop.f32.mrf.mxu1 }
0x223a   :  { %v3114_v25 = vadd.f32 %v5384_v57, %v3084_v30  ;;  %v3573_v30 = vld [vmem:[%s5615_s12 + $0x70] sm:$0xff] }
0x223b   :  { %3576 = vmatpush.msrb.mxu2 %v3573_v30 }
0x2241   :  { %v3239_v31 = vpop.f32.mrf.mxu1 }
0x2242   :  { %v3245_v61 = vadd.f32 %v3239_v31, %v3111_v12  ;;  %v3572_v31 = vld [vmem:[%s5615_s12 + $0x68] sm:$0xff] }
0x2243   :  { %v3980_v12 = vld [vmem:[%s5606_s3 + $0xe] ss:$0 sm:$0xff]  ;;  %3577 = vmatpush.msrb.mxu2 %v3572_v31 }
0x2249   :  { %v3242_v41 = vpop.f32.mrf.mxu1 }
0x224a   :  { %v3246_v45 = vadd.f32 %v3242_v41, %v3114_v25  ;;  %v3568_v25 = vld [vmem:[%s5615_s12 + $0x48] sm:$0xff] }
0x22a9   :  { %v3370_v4 = vpop.f32.mrf.mxu3 }
0x22aa   :  { %v3376_v35 = vadd.f32 %v3370_v4, %v3245_v61  ;;  %v3571_v61 = vld [vmem:[%s5615_s12 + $0x60] sm:$0xff] }
0x22ab   :  { %3578 = vmatpush.msrb.mxu2 %v3571_v61 }
0x22ac   :  { %v3378_v40 = vadd.f32 %v3376_v35, %v5266_v60  ;;  %v3570_v35 = vld [vmem:[%s5615_s12 + $0x58] sm:$0xff] }
0x22ad   :  { %3579 = vmatpush.msrb.mxu2 %v3570_v35 }
0x22ae   :  { %v5430_v43 = vadd.f32 %v3977_v39, %v3378_v40  ;;  %v3569_v40 = vld [vmem:[%s5615_s12 + $0x50] sm:$0xff] }
0x22af   :  { %3580 = vmatpush.msrb.mxu2 %v3569_v40 }
0x22b0   :  { %v3386_v42 = vsel %vm96_vm1, %v5430_v43, 0.0 }
0x22b1   :  { %3387 = vadd.xlane.f32.xlu0 %v3386_v42  ;;  %v3373_v17 = vpop.f32.mrf.mxu3  ;;  %3581 = vmatpush.msrb.mxu2 %v3568_v25  ;;  %v3567_v42 = vld [vmem:[%s5615_s12 + $0x40] sm:$0xff] }
0x22b2   :  { %v3377_v48 = vadd.f32 %v3373_v17, %v3246_v45 }
0x22b3   :  { %3582 = vmatpush.msrb.mxu2 %v3567_v42 }
0x22b4   :  { %v3379_v49 = vadd.f32 %v3377_v48, %v5271_v18 }
0x22b6   :  { %v5435_v10 = vadd.f32 %v3977_v39, %v3379_v49  ;;  %v3566_v49 = vld [vmem:[%s5615_s12 + $0x38] sm:$0xff] }
0x22b7   :  { %3583 = vmatpush.msrb.mxu2 %v3566_v49 }
0x22b8   :  { %v3389_v51 = vsel %vm100_vm2, %v5435_v10, 0.0 }
0x22b9   :  { %3390 = vadd.xlane.f32.xlu1 %v3389_v51 }
0x2324   :  { %v3388_v60 = vpop.xlane.xlu0 %3387 }
0x2325   :  { %v3392_v57 = vmul.f32 %v3388_v60, %v4344_v26 }
0x2327   :  { %v3394_v46 = vsub.f32 %v5430_v43, %v3392_v57 }
0x2329   :  { %v3396_v52 = vmul.f32 %v3394_v46, %v3394_v46 }
0x232b   :  { %v3398_v53 = vsel %vm96_vm1, %v3396_v52, 0.0 }
0x232c   :  { %3399 = vadd.xlane.f32.xlu2 %v3398_v53  ;;  %v3391_v63 = vpop.xlane.xlu1 %3390 }
0x232d   :  { %v3393_v36 = vmul.f32 %v3391_v63, %v4344_v26 }
0x232f   :  { %v3395_v18 = vsub.f32 %v5435_v10, %v3393_v36  ;;  %v3564_v36 = vld [vmem:[%s5615_s12 + $0x28] sm:$0xff] }
0x2331   :  { %v3397_v54 = vmul.f32 %v3395_v18, %v3395_v18 }
0x2333   :  { %v3401_v58 = vsel %vm100_vm2, %v3397_v54, 0.0 }
0x2334   :  { %3402 = vadd.xlane.f32.xlu1 %v3401_v58 }
0x239f   :  { %v3400_v38 = vpop.xlane.xlu2 %3399 }
0x23a0   :  { %v3404_v47 = vmul.f32 %v3400_v38, %v4344_v26  ;;  %v3562_v38 = vld [vmem:[%s5615_s12 + $0x18] sm:$0xff] }
0x23a2   :  { %v3406_v8 = vadd.f32 1e-12, %v3404_v47 }
0x23a4   :  { %4158 = vrsqrt.f32 %v3406_v8  ;;  %vm3414_vm11 = vweird.f32 %v3406_v8 }
0x23a7   :  { %v3403_v56 = vpop.xlane.xlu1 %3402 }
0x23a8   :  { %v3405_v37 = vmul.f32 %v3403_v56, %v4344_v26 }
0x23aa   :  { %v4159_v6 = vpop.eup %4158  ;;  %v3407_v7 = vadd.f32 1e-12, %v3405_v37  ;;  %v3561_v37 = vld [vmem:[%s5615_s12 + $0x10] sm:$0xff] }
0x23ab   :  { %v3409_v23 = vmul.f32 %v4159_v6, %v3406_v8  ;;  %vm3415_vm10 = vweird.f32 %v4159_v6 }
0x23ac   :  { %4160 = vrsqrt.f32 %v3407_v7  ;;  %vm3416_vm12 = vmor %vm3414_vm11, %vm3415_vm10  ;;  %vm3424_vm14 = vweird.f32 %v3407_v7 }
0x23ad   :  { %v3410_v62 = vmul.f32 %v4159_v6, %v3409_v23 }
0x23af   :  { %v3411_v11 = vmul.f32 0.5, %v3410_v62 }
0x23b1   :  { %v3412_v50 = vsub.f32 1.5, %v3411_v11  ;;  %v3560_v11 = vld [vmem:[%s5615_s12 + $0x8] sm:$0xff] }
0x23b2   :  { %v4161_v13 = vpop.eup %4160 }
0x23b3   :  { %v3413_v9 = vmul.f32 %v4159_v6, %v3412_v50  ;;  %v3419_v14 = vmul.f32 %v4161_v13, %v3407_v7  ;;  %vm3425_vm9 = vweird.f32 %v4161_v13 }
0x23b4   :  { %vm3426_vm15 = vmor %vm3424_vm14, %vm3425_vm9 }
0x23b5   :  { %v3417_v16 = vsel %vm3416_vm12, %v4159_v6, %v3413_v9  ;;  %v3420_v19 = vmul.f32 %v4161_v13, %v3419_v14  ;;  %v3559_v14 = vld [vmem:[%s5615_s12] sm:$0xff] }
0x23b6   :  { %v3428_v21 = vmul.f32 %v3417_v16, %v3394_v46  ;;  %v3565_v46 = vld [vmem:[%s5615_s12 + $0x30] sm:$0xff] }
0x23b7   :  { %v3421_v22 = vmul.f32 0.5, %v3420_v19  ;;  %3584 = vmatpush.msrb.mxu2 %v3565_v46 }
0x23b8   :  { %v3431_v24 = vmul.f32 %v3978_v15, %v3428_v21 }
0x23b9   :  { %v3422_v27 = vsub.f32 1.5, %v3421_v22  ;;  %3585 = vmatpush.msrb.mxu2 %v3564_v36 }
0x23ba   :  { %v3434_v28 = vadd.f32 %v3979_v5, %v3431_v24 }
0x23bb   :  { %v3423_v55 = vmul.f32 %v4161_v13, %v3422_v27  ;;  %3586 = vmatpush.msrb.mxu2 %v3563_v59 }
0x23bc   :  { %3927 = vmatmul.msk.f32.vlgmr.msrb.gmra.mxu1 %vm96_vm1, %v3434_v28 }
0x23bd   :  { %v3427_v29 = vsel %vm3426_vm15, %v4161_v13, %v3423_v55  ;;  %3587 = vmatpush.msrb.mxu2 %v3562_v38 }
0x23be   :  { %v3429_v32 = vmul.f32 %v3427_v29, %v3395_v18 }
0x23bf   :  { %3588 = vmatpush.msrb.mxu2 %v3561_v37 }
0x23c0   :  { %v3432_v2 = vmul.f32 %v3978_v15, %v3429_v32 }
0x23c1   :  { %3589 = vmatpush.msrb.mxu2 %v3560_v11 }
0x23c2   :  { %v3435_v33 = vadd.f32 %v3979_v5, %v3432_v2 }
0x23c3   :  { %3590 = vmatpush.msrb.mxu2 %v3559_v14 }
0x23c4   :  { %3928 = vmatmul.msk.f32.gmra.mxu1 %vm96_vm1, %v3435_v33 }
0x2439   :  { %v3465_v4 = vpop.f32.mrf.mxu1 }
0x243a   :  { %v5485_v39 = vadd.f32 %v3980_v12, %v3465_v4 }
0x243c   :  { %v5491_v41 = vmul.f32 0.70710677, %v5485_v39 }
0x243e   :  { %v3475_v45 = vmul.f32 %v5491_v41, %v5491_v41 }
0x2440   :  { %v3476_v17 = vmin.f32 %v3475_v45, 16.0 }
0x2441   :  { %v3468_v48 = vpop.f32.mrf.mxu1 }
0x2442   :  { %v3477_v51 = vmul.f32 2.1237322e-06, %v3476_v17  ;;  %v3488_v60 = vmul.f32 3.8918573e-05, %v3476_v17  ;;  %v5504_v57 = vadd.f32 %v3980_v12, %v3468_v48 }
0x2444   :  { %v3478_v52 = vadd.f32 0.00028619796, %v3477_v51  ;;  %v3489_v53 = vadd.f32 0.001143296, %v3488_v60  ;;  %v5510_v63 = vmul.f32 0.70710677, %v5504_v57 }
0x2445   :  { %v3472_v11 = vmul.f32 0.5, %v5504_v57 }
0x2446   :  { %v3479_v18 = vmul.f32 %v3478_v52, %v3476_v17  ;;  %v3490_v54 = vmul.f32 %v3489_v53, %v3476_v17  ;;  %v3515_v58 = vmul.f32 %v5510_v63, %v5510_v63 }
0x2448   :  { %v3491_v0 = vadd.f32 0.014752088, %v3490_v54  ;;  %v3480_v1 = vadd.f32 0.0036580483, %v3479_v18  ;;  %v3516_v3 = vmin.f32 %v3515_v58, 16.0 }
0x244a   :  { %v3492_v47 = vmul.f32 %v3491_v0, %v3476_v17  ;;  %v3517_v8 = vmul.f32 2.1237322e-06, %v3516_v3  ;;  %v3528_v56 = vmul.f32 3.8918573e-05, %v3516_v3  ;;  %v3481_v7 = vmul.f32 %v3480_v1, %v3476_v17 }
0x244c   :  { %v3493_v6 = vadd.f32 0.112945676, %v3492_v47  ;;  %v3518_v23 = vadd.f32 0.00028619796, %v3517_v8  ;;  %v3529_v62 = vadd.f32 0.001143296, %v3528_v56 }
0x244d   :  { %v3482_v16 = vadd.f32 0.05243302, %v3481_v7  ;;  %v3471_v47 = vmul.f32 0.5, %v5485_v39  ;;  %v3981_v39 = vld [vmem:[%s5606_s3 + $0xf] ss:$0 sm:$0xff] }
0x244e   :  { %v3494_v50 = vmul.f32 %v3493_v6, %v3476_v17  ;;  %v3519_v13 = vmul.f32 %v3518_v23, %v3516_v3  ;;  %v3530_v9 = vmul.f32 %v3529_v62, %v3516_v3 }
0x244f   :  { %v3483_v27 = vmul.f32 %v3482_v16, %v3476_v17 }
0x2450   :  { %v3495_v15 = vadd.f32 0.4994258, %v3494_v50  ;;  %v3531_v19 = vadd.f32 0.014752088, %v3530_v9  ;;  %v3520_v21 = vadd.f32 0.0036580483, %v3519_v13 }
0x2451   :  { %v3484_v32 = vadd.f32 0.18741608, %v3483_v27 }
0x2452   :  { %v3496_v5 = vmul.f32 %v3495_v15, %v3476_v17  ;;  %v3532_v22 = vmul.f32 %v3531_v19, %v3516_v3  ;;  %v3521_v55 = vmul.f32 %v3520_v21, %v3516_v3 }
0x2453   :  { %v3485_v31 = vmul.f32 %v3484_v32, %v3476_v17 }
0x2454   :  { %v3497_v24 = vadd.f32 1.0, %v3496_v5  ;;  %v3533_v28 = vadd.f32 0.112945676, %v3532_v22  ;;  %v3522_v33 = vadd.f32 0.05243302, %v3521_v55 }
0x2455   :  { %v3486_v25 = vadd.f32 1.1283791, %v3485_v31  ;;  %v1886_v55 = vld [vmem:[%s5606_s3 + $0x12] sm:$0x1]  ;;  %v3668_v31 = vld [vmem:[%s5616_s13 + $0x8] sm:$0xff] }
0x2456   :  { %4162 = vrcp.f32 %v3497_v24  ;;  %v3534_v29 = vmul.f32 %v3533_v28, %v3516_v3  ;;  %v3523_v4 = vmul.f32 %v3522_v33, %v3516_v3  ;;  %v3509_v40 = vand.u32 2147483648, %v3497_v24 }
0x2457   :  { %v3507_v42 = vand.u32 2147483647, %v3497_v24  ;;  %vm3503_vm4 = vweird.f32 %v3497_v24  ;;  %v3487_v46 = vmul.f32 %v3486_v25, %v5491_v41  ;;  %v1884_v28 = vadd.f32 %v5061_v44, %v5021_v34  ;;  %v3670_v44 = vld [vmem:[%s5616_s13 + $0x18] sm:$0xff] }
0x2458   :  { %v3535_v2 = vadd.f32 0.4994258, %v3534_v29  ;;  %v3524_v48 = vadd.f32 0.18741608, %v3523_v4  ;;  %v3510_v51 = vor.u32 1.1754944e-38, %v3509_v40  ;;  %3713 = vmatpush.msrb.mxu3 %v3670_v44 }
0x2459   :  { %vm3508_vm6 = vcmp.eq.f32.partialorder %v3507_v42, 8.507059e+37  ;;  %v1887_v32 = vadd.f32 %v1886_v55, %v1884_v28 }
0x245a   :  { %v3536_v20 = vmul.f32 %v3535_v2, %v3516_v3  ;;  %v3525_v53 = vmul.f32 %v3524_v48, %v3516_v3 }
0x245c   :  { %v4163_v30 = vpop.eup %4162  ;;  %v3537_v61 = vadd.f32 1.0, %v3536_v20  ;;  %v3526_v0 = vadd.f32 1.1283791, %v3525_v53  ;;  %v1888_v20 = vsel %vm265_vm13, %v1887_v32, -inf }
0x245d   :  { %v3499_v12 = vmul.f32 %v4163_v30, %v3497_v24  ;;  %vm3504_vm3 = vweird.f32 %v4163_v30 }
0x245e   :  { %4164 = vrcp.f32 %v3537_v61  ;;  %vm3505_vm5 = vmor %vm3503_vm4, %vm3504_vm3  ;;  %v3549_v59 = vand.u32 2147483648, %v3537_v61  ;;  %v3547_v38 = vand.u32 2147483647, %v3537_v61  ;;  %vm3543_vm7 = vweird.f32 %v3537_v61 }
0x245f   :  { %v3500_v35 = vsub.f32 1.0, %v3499_v12  ;;  %v3527_v6 = vmul.f32 %v3526_v0, %v5510_v63  ;;  %v3667_v12 = vld [vmem:[%s5616_s13] sm:$0xff] }
0x2460   :  { %v3550_v41 = vor.u32 1.1754944e-38, %v3549_v59  ;;  %vm3548_vm10 = vcmp.eq.f32.partialorder %v3547_v38, 8.507059e+37 }
0x2461   :  { %v3501_v45 = vmul.f32 %v4163_v30, %v3500_v35 }
0x2463   :  { %v3502_v49 = vadd.f32 %v4163_v30, %v3501_v45 }
0x2464   :  { %v4165_v60 = vpop.eup %4164 }
0x2465   :  { %v3506_v52 = vsel %vm3505_vm5, %v4163_v30, %v3502_v49  ;;  %v3539_v36 = vmul.f32 %v4165_v60, %v3537_v61  ;;  %vm3544_vm0 = vweird.f32 %v4165_v60  ;;  %v3669_v30 = vld [vmem:[%s5616_s13 + $0x10] sm:$0xff] }
0x2466   :  { %v3511_v17 = vsel %vm3508_vm6, %v3510_v51, %v3506_v52  ;;  %vm3545_vm8 = vmor %vm3543_vm7, %vm3544_vm0  ;;  %3714 = vmatpush.msrb.mxu3 %v3669_v30  ;;  %v3674_v52 = vld [vmem:[%s5616_s13 + $0x38] sm:$0xff] }
0x2467   :  { %v3512_v18 = vmul.f32 %v3511_v17, %v3487_v46  ;;  %v3540_v54 = vsub.f32 1.0, %v3539_v36  ;;  %v3673_v17 = vld [vmem:[%s5616_s13 + $0x30] sm:$0xff]  ;;  %3690 = vmatpush.msra.mxu0 %v3674_v52 }
0x2468   :  { %3715 = vmatpush.msrb.mxu3 %v3668_v31 }
0x2469   :  { %v3929_v58 = vclamps-f32 %v3512_v18, 1.0  ;;  %v3541_v1 = vmul.f32 %v4165_v60, %v3540_v54  ;;  %3691 = vmatpush.msra.mxu0 %v3673_v17  ;;  %v3671_v54 = vld [vmem:[%s5616_s13 + $0x20] sm:$0xff] }
0x246a   :  { %3716 = vmatpush.msrb.mxu3 %v3667_v12 }
0x246b   :  { %v3555_v8 = vadd.f32 1.0, %v3929_v58  ;;  %v3542_v56 = vadd.f32 %v4165_v60, %v3541_v1  ;;  %v3982_v1 = vld [vmem:[%s5606_s3 + $0x10] ss:$0 sm:$0xff] }
0x246d   :  { %v3557_v37 = vmul.f32 %v3555_v8, %v3471_v47  ;;  %v3546_v3 = vsel %vm3545_vm8, %v4165_v60, %v3542_v56  ;;  %v3983_v8 = vld [vmem:[%s5606_s3 + $0x11] ss:$0 sm:$0xff] }
0x246e   :  { %v3551_v7 = vsel %vm3548_vm10, %v3550_v41, %v3546_v3 }
0x246f   :  { %3591 = vmatmul.f32.vlgmr.msrb.gmra.mxu2 %v3557_v37  ;;  %v3552_v23 = vmul.f32 %v3551_v7, %v3527_v6 }
0x2471   :  { %v3930_v62 = vclamps-f32 %v3552_v23, 1.0 }
0x2473   :  { %v3556_v50 = vadd.f32 1.0, %v3930_v62 }
0x2475   :  { %v3558_v13 = vmul.f32 %v3556_v50, %v3472_v11 }
0x2477   :  { %3594 = vmatmul.f32.gmra.mxu2 %v3558_v13 }
0x24f2   :  { %v3592_v9 = vpop.f32.mrf.mxu2 }
0x24f3   :  { %v3598_v14 = vadd.f32 %v3592_v9, %v5430_v43 }
0x24f5   :  { %v3602_v15 = vadd.f32 %v3981_v39, %v3598_v14 }
0x24f7   :  { %v3606_v63 = vsel %vm96_vm1, %v3602_v15, 0.0 }
0x24f8   :  { %3607 = vadd.xlane.f32.xlu1 %v3606_v63 }
0x24fa   :  { %v3595_v16 = vpop.f32.mrf.mxu2 }
0x24fb   :  { %v3599_v19 = vadd.f32 %v3595_v16, %v5435_v10 }
0x24fd   :  { %v3603_v5 = vadd.f32 %v3981_v39, %v3599_v19 }
0x24ff   :  { %v3609_v57 = vsel %vm100_vm2, %v3603_v5, 0.0 }
0x2500   :  { %3610 = vadd.xlane.f32.xlu1 %v3609_v57 }
0x256b   :  { %v3608_v21 = vpop.xlane.xlu1 %3607 }
0x256c   :  { %v3612_v22 = vmul.f32 %v3608_v21, %v4344_v26 }
0x256e   :  { %v3614_v24 = vsub.f32 %v3602_v15, %v3612_v22 }
0x2570   :  { %v3616_v27 = vmul.f32 %v3614_v24, %v3614_v24 }
0x2572   :  { %v3618_v43 = vsel %vm96_vm1, %v3616_v27, 0.0 }
0x2573   :  { %3619 = vadd.xlane.f32.xlu1 %v3618_v43  ;;  %v3611_v10 = vpop.xlane.xlu1 %3610 }
0x2574   :  { %v3613_v29 = vmul.f32 %v3611_v10, %v4344_v26  ;;  %v3721_v10 = vld [vmem:[%s5606_s3 + $0x12] sm:$0x1]  ;;  %s3742_s3 = sshll.u32 %s5617_s14, 4  ;;  %s3743_s3 = int_to_ptr.hbm [resolvable:$true] %s3742_s3 }
0x2576   :  { %v5551_v2 = vsub.f32 %v3603_v5, %v3613_v29 }
0x2578   :  { %v3617_v33 = vmul.f32 %v5551_v2, %v5551_v2 }
0x257a   :  { %v3621_v34 = vsel %vm100_vm2, %v3617_v33, 0.0 }
0x257b   :  { %1889 = vmax.xlane.f32.xlu1 %v1888_v20  ;;  %3622 = vadd.xlane.f32.xlu0 %v3621_v34 }
0x25e6   :  { %v3620_v61 = vpop.xlane.xlu1 %3619 }
0x25e7   :  { %v3624_v4 = vmul.f32 %v3620_v61, %v4344_v26 }
0x25e9   :  { %v3626_v35 = vadd.f32 1e-12, %v3624_v4 }
0x25eb   :  { %4166 = vrsqrt.f32 %v3626_v35  ;;  %vm3634_vm12 = vweird.f32 %v3626_v35 }
0x25ee   :  { %v1890_v40 = vpop.xlane.xlu1 %1889  ;;  %v3623_v25 = vpop.xlane.xlu0 %3622 }
0x25ef   :  { %v1891_v45 = vsub.f32 %v1887_v32, %v1890_v40  ;;  %v3625_v42 = vmul.f32 %v3623_v25, %v4344_v26  ;;  %v3672_v26 = vld [vmem:[%s5616_s13 + $0x28] sm:$0xff] }
0x25f0   :  { %3692 = vmatpush.msra.mxu0 %v3672_v26 }
0x25f1   :  { %v4167_v48 = vpop.eup %4166  ;;  %v1892_v49 = vmul.f32 1.442695, %v1891_v45  ;;  %v3627_v60 = vadd.f32 1e-12, %v3625_v42 }
0x25f2   :  { %v3629_v51 = vmul.f32 %v4167_v48, %v3626_v35  ;;  %vm3635_vm11 = vweird.f32 %v4167_v48  ;;  %3693 = vmatpush.msra.mxu0 %v3671_v54 }
0x25f3   :  { %4168 = vpow2.f32 %v1892_v49  ;;  %vm3636_vm9 = vmor %vm3634_vm12, %vm3635_vm11  ;;  %vm3644_vm15 = vweird.f32 %v3627_v60 }
0x25f4   :  { %v3630_v46 = vmul.f32 %v4167_v48, %v3629_v51  ;;  %4170 = vrsqrt.f32 %v3627_v60 }
0x25f6   :  { %v3631_v53 = vmul.f32 0.5, %v3630_v46 }
0x25f8   :  { %v3632_v36 = vsub.f32 1.5, %v3631_v53 }
0x25f9   :  { %v4169_v18 = vpop.eup %4168 }
0x25fa   :  { %v4171_v58 = vpop.eup %4170  ;;  %v3633_v59 = vmul.f32 %v4167_v48, %v3632_v36  ;;  %v1894_v0 = vsel %vm265_vm13, %v4169_v18, 0.0 }
0x25fb   :  { %v3639_v38 = vmul.f32 %v4171_v58, %v3627_v60  ;;  %1895 = vadd.xlane.f32.xlu0 %v1894_v0  ;;  %vm3645_vm14 = vweird.f32 %v4171_v58 }
0x25fc   :  { %v3637_v47 = vsel %vm3636_vm9, %v4167_v48, %v3633_v59  ;;  %vm3646_vm3 = vmor %vm3644_vm15, %vm3645_vm14 }
0x25fd   :  { %v3648_v56 = vmul.f32 %v3637_v47, %v3614_v24  ;;  %v3640_v37 = vmul.f32 %v4171_v58, %v3639_v38 }
0x25ff   :  { %v3651_v41 = vmul.f32 %v3982_v1, %v3648_v56  ;;  %v3641_v6 = vmul.f32 0.5, %v3640_v37 }
0x2601   :  { %v3654_v3 = vadd.f32 %v3983_v8, %v3651_v41  ;;  %v3642_v7 = vsub.f32 1.5, %v3641_v6 }
0x2603   :  { %v3643_v23 = vmul.f32 %v4171_v58, %v3642_v7  ;;  %3932 = vmatmul.msk.f32.vlgmr.msrb.gmra.mxu3 %vm96_vm1, %v3654_v3  ;;  %v3656_v39 = vsel %vm96_vm1, %v3654_v3, 0.0 }
0x2605   :  { %v3647_v62 = vsel %vm3646_vm3, %v4171_v58, %v3643_v23 }
0x2606   :  { %v3649_v11 = vmul.f32 %v3647_v62, %v5551_v2 }
0x2608   :  { %v3652_v50 = vmul.f32 %v3982_v1, %v3649_v11 }
0x260a   :  { %v3655_v13 = vadd.f32 %v3983_v8, %v3652_v50 }
0x260c   :  { %v3657_v9 = vsel %vm100_vm2, %v3655_v13, 0.0 }
0x260d   :  { %v3658_v14 = vadd.f32 %v3657_v9, %v3656_v39 }
0x260f   :  { %v3659_v15 = vrot.slane %v3658_v14, 4 }
0x2611   :  { %v3660_v63 = vadd.f32 %v3659_v15, %v3658_v14 }
0x2613   :  { %v3661_v16 = vrot.slane %v3660_v63, 2 }
0x2615   :  { %v3662_v19 = vadd.f32 %v3661_v16, %v3660_v63 }
0x2617   :  { %v3663_v5 = vrot.slane %v3662_v19, 1 }
0x2619   :  { %v3664_v57 = vadd.f32 %v3663_v5, %v3662_v19 }
0x261b   :  { %v3665_v21 = vsub.f32 %v3664_v57, %v3654_v3 }
0x261d   :  { %v3666_v22 = vmul.f32 0.125, %v3665_v21 }
0x261f   :  { %3931 = vmatmul.msk.f32.vlgmr.msra.gmra.mxu0 %vm96_vm1, %v3666_v22 }
0x266e   :  { %v1896_v24 = vpop.xlane.xlu0 %1895 }
0x266f   :  { %4172 = vrcp.f32 %v1896_v24 }
0x2675   :  { %v4173_v27 = vpop.eup %4172 }
0x2676   :  { %v1898_v28 = vmul.f32 %v4173_v27, %v4169_v18 }
0x2678   :  { %1899 = vst [vmem:[#allocation2] sm:$0x1] %v1898_v28 }
0x2686   :  { %v3718_v43 = vpop.f32.mrf.mxu3 }
0x269c   :  { %v3695_v55 = vpop.f32.mrf.mxu0 }
0x269d   :  { %v3719_v29 = vadd.f32 %v3718_v43, %v3695_v55 }
0x269f   :  { %v3722_v32 = vadd.f32 %v3721_v10, %v3719_v29 }
0x26a1   :  { %v3723_v2 = vsel %vm265_vm13, %v3722_v32, -inf }
0x26a2   :  { %3724 = vmax.xlane.f32.xlu2 %v3723_v2 }
0x2715   :  { %v3725_v33 = vpop.xlane.xlu2 %3724 }
0x2716   :  { %v3726_v20 = vsub.f32 %v3722_v32, %v3725_v33 }
0x2718   :  { %v3727_v34 = vmul.f32 1.442695, %v3726_v20 }
0x271a   :  { %4174 = vpow2.f32 %v3727_v34 }
0x2720   :  { %v4175_v44 = vpop.eup %4174 }
0x2721   :  { %v3729_v30 = vsel %vm265_vm13, %v4175_v44, 0.0 }
0x2722   :  { %3730 = vadd.xlane.f32.xlu1 %v3729_v30 }
0x2795   :  { %v3731_v31 = vpop.xlane.xlu1 %3730 }
0x2796   :  { %4176 = vrcp.f32 %v3731_v31 }
0x279c   :  { %v4177_v12 = vpop.eup %4176 }
0x279d   :  { %v3733_v61 = vmul.f32 %v4177_v12, %v4175_v44 }
0x279f   :  { %3734 = vst [vmem:[#allocation2 + $0x1] sm:$0x1] %v3733_v61 }
0x27a0   :  { %3745 = dma.vmem_to_hbm [thread:$0]  %s3741_s19, 32, %s3743_s3, [#allocation3]  }
0x27a1   :  { %4208 = dma.done.wait [#allocation3], 32  }
0x27a2   :  { %4209 = vsyncadd [#allocation3], 4294967264 }
0x27a3   :  { %3750 = vsyncpa [#allocation3], 1 }

</bundles_post_ra>
